<compile_context>
chip_gen: v6e
topology: v6e:2x2x1
jax: 0.10.0
libtpu: 0.0.40
codegen_flags: <defaults>
</compile_context>

<pallas_src>
import functools

import jax
import jax.numpy as jnp
from jax.experimental import pallas as pl
from jax.experimental.pallas import tpu as pltpu

# ---------------- static configuration (small but shape-consistent) ----------
B = 2            # batch
T = 8            # seqlen
H = W = 16       # frame spatial size
CIN = 3          # frame channels (RGB-like)
COUT = 8         # backbone conv channels
POOLS = (1, 2, 6)                       # SPP pool sizes (module default)
E = 32           # embed_size
D = 32           # dense_units (256 in the module; shrunk for the example)
GATES = 4 * D    # 128: one fused gate matmul per direction per step
N = B * T        # 16 frames
WLANES = W * COUT                       # 128: lane-dense conv/pool layout
HP, WP = H + 2, W + 2
K_IN = WP * CIN                         # 54 contraction lanes for the banded conv

assert WLANES == 128 and GATES == 128, "lane-dense layout assumes 128-wide rows"


def _adaptive_bins(size, k):
    """PyTorch AdaptiveMaxPool bin boundaries: [floor(i*s/k), ceil((i+1)*s/k))."""
    return [((i * size) // k, -((-(i + 1) * size) // k)) for i in range(k)]


# Static SPP plan: one "slab" per (row-range, column-window-width).  Each slab is
# a (N, W*COUT) sliding-window max; every SPP bin reads lanes
# [c0*COUT, c0*COUT+COUT) of exactly one slab, so the 41-bin FC becomes ONE
# matmul against a pre-masked (NSLABS*128, E) weight built in pack_params().
_SLAB_KEYS = []            # (r0, r1, width)
_SLAB_INDEX = {}
_BIN_PLACEMENTS = []       # (bin_idx, slab_idx, c0) in reference bin order
_bin = 0
for _k in POOLS:
    for (_r0, _r1) in _adaptive_bins(H, _k):
        for (_c0, _c1) in _adaptive_bins(W, _k):
            _key = (_r0, _r1, _c1 - _c0)
            if _key not in _SLAB_INDEX:
                _SLAB_INDEX[_key] = len(_SLAB_KEYS)
                _SLAB_KEYS.append(_key)
            _BIN_PLACEMENTS.append((_bin, _SLAB_INDEX[_key], _c0))
            _bin += 1
NBINS = _bin                            # 41
NSLABS = len(_SLAB_KEYS)                # 15
# masked-weight FC requires every bin to own a distinct (slab, lane-group) pair
assert len({(s, c) for (_, s, c) in _BIN_PLACEMENTS}) == NBINS

_ROW_PLAN = []                          # [((r0, r1), [(width, slab_idx), ...])]
for _sidx, (_r0, _r1, _wd) in enumerate(_SLAB_KEYS):
    for _entry in _ROW_PLAN:
        if _entry[0] == (_r0, _r1):
            _entry[1].append((_wd, _sidx))
            break
    else:
        _ROW_PLAN.append(((_r0, _r1), [(_wd, _sidx)]))


# ------------------------------ fused kernel ---------------------------------
def _shift_lanes(x, k):
    """y[:, j] = x[:, (j + k) % nlanes]  (left rotation along the lane axis)."""
    return jnp.concatenate([x[:, k:], x[:, :k]], axis=1)


def _window_max(x, width):
    """Sliding max over `width` consecutive w-groups of COUT lanes (wraps at the
    end; only lane groups whose window stays in range are consumed downstream)."""
    m = x
    covered = 1
    while covered * 2 <= width:
        m = jnp.maximum(m, _shift_lanes(m, covered * COUT))
        covered *= 2
    if covered < width:                  # max is idempotent -> overlap is fine
        m = jnp.maximum(m, _shift_lanes(m, (width - covered) * COUT))
    return m


def sppseq_kernel(xpp_ref, cmat_ref, cbias_ref, fc_ref, wih_ref, bih_ref,
                  whh_ref, w1_ref, b1_ref, wo_ref, bo_ref, out_ref, bins_ref):
    # xpp_ref : (HP*N, K_IN)   padded frames, rows (h_pad, t, b), lanes (w', cin)
    # cmat_ref: (3, K_IN, 128) banded 3x3-conv matrices (one per kh)
    # cbias_ref: (1, 128)      conv bias tiled over w
    # fc_ref  : (NSLABS*128, E) pre-masked SPP->embed FC weight
    # wih_ref : (E, 256)       [Wih_fwd | Wih_bwd], gate order (i, f, g, o)
    # bih_ref : (1, 256)       gate biases (b_ih + b_hh + folded SPP-FC bias)
    # whh_ref : (2, D, 128)    recurrent weights, [fwd, bwd]
    # w1/b1/wo/bo              residual head;  out_ref: (B, 1)
    # bins_ref: (N, NSLABS*128) VMEM scratch holding the SPP slabs
    f32 = jnp.float32

    # ---- 3x3 "same" conv + bias + ReLU as 3 banded matmuls (lanes = (w, cout))
    acc = jnp.dot(xpp_ref[0:H * N, :], cmat_ref[0], preferred_element_type=f32)
    acc = acc + jnp.dot(xpp_ref[N:(H + 1) * N, :], cmat_ref[1],
                        preferred_element_type=f32)
    acc = acc + jnp.dot(xpp_ref[2 * N:(H + 2) * N, :], cmat_ref[2],
                        preferred_element_type=f32)
    feat = jnp.maximum(acc + cbias_ref[...], 0.0)          # (H*N, 128) rows (h, n)

    # ---- SPP: row-range maxima (tile-aligned slices, pure VPU), then lane-group
    #      sliding-window maxima; each slab stored lane-aligned into scratch.
    for (r0, r1), entries in _ROW_PLAN:
        rmax = functools.reduce(
            jnp.maximum, [feat[h * N:(h + 1) * N, :] for h in range(r0, r1)])
        for wd, sidx in entries:
            bins_ref[:, sidx * WLANES:(sidx + 1) * WLANES] = _window_max(rmax, wd)

    # ---- SPP -> embedding: ONE matmul against the pre-masked FC weight.
    emb = jnp.dot(bins_ref[...], fc_ref[...], preferred_element_type=f32)  # (N, E)

    # ---- BiLSTM: hoisted input projection for both directions (one matmul),
    #      then T unrolled steps with the fwd/bwd chains interleaved.
    gx = jnp.dot(emb, wih_ref[...], preferred_element_type=f32) + bih_ref[...]
    gxf = gx[:, :GATES]                                    # rows are t*B + b
    gxb = gx[:, GATES:]
    whf = whh_ref[0]
    whb = whh_ref[1]

    zeros = jnp.zeros((B, D), f32)
    ninf = jnp.full((B, D), -jnp.inf, f32)
    h_f, c_f, m_f = zeros, zeros, ninf
    h_b, c_b, m_b = zeros, zeros, ninf

    def cell(g, c):
        i = jax.nn.sigmoid(g[:, 0:D])
        f = jax.nn.sigmoid(g[:, D:2 * D])
        u = jnp.tanh(g[:, 2 * D:3 * D])
        o = jax.nn.sigmoid(g[:, 3 * D:4 * D])
        c = f * c + i * u
        return c, o * jnp.tanh(c)

    for s in range(T):                                     # static unroll, T small
        rf = s * B                                         # gx slices are off the
        rb = (T - 1 - s) * B                               # serial dependency chain
        gf = gxf[rf:rf + B, :] + jnp.dot(h_f, whf, preferred_element_type=f32)
        gb = gxb[rb:rb + B, :] + jnp.dot(h_b, whb, preferred_element_type=f32)
        c_f, h_f = cell(gf, c_f)
        c_b, h_b = cell(gb, c_b)
        m_f = jnp.maximum(m_f, h_f)
        m_b = jnp.maximum(m_b, h_b)

    # ---- head: max-pool over time (running max above), residual MLP, scalar out.
    max_pool = jnp.concatenate([m_f, m_b], axis=1)         # (B, 2D)
    hp = jnp.maximum(jnp.dot(max_pool, w1_ref[...], preferred_element_type=f32)
                     + b1_ref[...], 0.0)
    hidden = max_pool + hp
    out_ref[...] = (jnp.sum(hidden * wo_ref[...], axis=1, keepdims=True)
                    + bo_ref[...])


# --------------------------- parameter repacking ------------------------------
def pack_params(p):
    """One-time (eager) repack of raw module parameters into kernel operands."""
    # (a) 3x3 conv as 3 banded (WP*CIN, W*COUT) matrices: out lane = w*COUT+co,
    #     in lane = w'*CIN+ci, entry = conv_w[kh, w'-w, ci, co] for 0 <= w'-w < 3.
    wprime = jnp.arange(WP)[:, None]
    wout = jnp.arange(W)[None, :]
    kw = wprime - wout
    valid = (kw >= 0) & (kw < 3)
    g = p["conv_w"][:, jnp.clip(kw, 0, 2)]                 # (3, WP, W, CIN, COUT)
    g = jnp.where(valid[None, :, :, None, None], g, 0.0)
    cmat = jnp.transpose(g, (0, 1, 3, 2, 4)).reshape(3, K_IN, WLANES)
    cbias = jnp.tile(p["conv_b"].reshape(1, COUT), (1, W))  # (1, 128)

    # (b) SPP FC as one (NSLABS*128, E) weight: bin at (slab, c0) occupies rows
    #     slab*128 + c0*COUT .. +COUT; all other rows are zero (masked).
    fcw = jnp.zeros((NSLABS, W, COUT, E), jnp.float32)
    for (b, s, c0) in _BIN_PLACEMENTS:
        fcw = fcw.at[s, c0].set(p["fc_w"][b])
    fc_big = fcw.reshape(NSLABS * WLANES, E)

    # (c) LSTM: both directions' input projections stacked to (E, 256); the SPP
    #     FC bias is folded into the gate biases (emb only feeds the LSTM).
    wih = jnp.concatenate([p["wih_f"], p["wih_b"]], axis=1)
    bih = jnp.concatenate([p["fc_b"] @ p["wih_f"] + p["b_f"],
                           p["fc_b"] @ p["wih_b"] + p["b_b"]], axis=1)
    whh = jnp.stack([p["whh_f"], p["whh_b"]])              # (2, D, 128)
    return dict(cmat=cmat, cbias=cbias, fc=fc_big, wih=wih, bih=bih, whh=whh,
                w1=p["w1"], b1=p["b1"], wo=p["wo"], bo=p["bo"])


# ------------------------------ full forward ----------------------------------
@jax.jit
def sppseqnet_forward(x, pp):
    """x: (B, T, H, W, CIN) frame sequences; pp: pack_params(...) -> (B, 1)."""
    # Frame prep only: zero-pad H/W and lay rows out as (h_pad, t, b) with lanes
    # (w', cin).  Rows are time-major (t*B + b), which the in-kernel LSTM expects.
    xp = jnp.pad(x, ((0, 0), (0, 0), (1, 1), (1, 1), (0, 0)))
    xpp = jnp.transpose(xp, (2, 1, 0, 3, 4)).reshape(HP * N, K_IN)
    return pl.pallas_call(
        sppseq_kernel,
        out_shape=jax.ShapeDtypeStruct((B, 1), jnp.float32),
        grid_spec=pltpu.PrefetchScalarGridSpec(
            num_scalar_prefetch=0,
            grid=(1,),     # single step; total VMEM footprint ~3.5 MiB
            in_specs=[
                pl.BlockSpec((HP * N, K_IN), lambda i: (0, 0)),
                pl.BlockSpec((3, K_IN, WLANES), lambda i: (0, 0, 0)),
                pl.BlockSpec((1, WLANES), lambda i: (0, 0)),
                pl.BlockSpec((NSLABS * WLANES, E), lambda i: (0, 0)),
                pl.BlockSpec((E, 2 * GATES), lambda i: (0, 0)),
                pl.BlockSpec((1, 2 * GATES), lambda i: (0, 0)),
                pl.BlockSpec((2, D, GATES), lambda i: (0, 0, 0)),
                pl.BlockSpec((2 * D, 2 * D), lambda i: (0, 0)),
                pl.BlockSpec((1, 2 * D), lambda i: (0, 0)),
                pl.BlockSpec((1, 2 * D), lambda i: (0, 0)),
                pl.BlockSpec((1, 1), lambda i: (0, 0)),
            ],
            out_specs=pl.BlockSpec((B, 1), lambda i: (0, 0)),
            scratch_shapes=[pltpu.VMEM((N, NSLABS * WLANES), jnp.float32)],
        ),
        compiler_params=pltpu.CompilerParams(
            dimension_semantics=("arbitrary",)),
    )(xpp, pp["cmat"], pp["cbias"], pp["fc"], pp["wih"], pp["bih"], pp["whh"],
      pp["w1"], pp["b1"], pp["wo"], pp["bo"])


# ------------------------ deterministic parameter init ------------------------
def init_params(key):
    ks = jax.random.split(key, 12)
    s = 0.1
    nrm = lambda k, shp, sc=s: sc * jax.random.normal(k, shp, jnp.float32)
    return dict(
        conv_w=nrm(ks[0], (3, 3, CIN, COUT)),
        conv_b=nrm(ks[1], (1, COUT)),
        fc_w=nrm(ks[2], (NBINS, COUT, E), 0.05),
        fc_b=nrm(ks[3], (1, E)),
        wih_f=nrm(ks[4], (E, 4 * D)),     # torch weight_ih_l0.T, gates [i|f|g|o]
        whh_f=nrm(ks[5], (D, 4 * D)),
        b_f=nrm(ks[6], (1, 4 * D)),       # b_ih + b_hh combined
        wih_b=nrm(ks[7], (E, 4 * D)),
        whh_b=nrm(ks[8], (D, 4 * D)),
        b_b=nrm(ks[9], (1, 4 * D)),
        w1=nrm(ks[10], (2 * D, 2 * D)),
        b1=jnp.zeros((1, 2 * D), jnp.float32),
        wo=nrm(ks[11], (1, 2 * D)),       # linear_out weight as a row vector
        bo=jnp.zeros((1, 1), jnp.float32),
    )


# ------------------------------ pure-JAX reference -----------------------------
def ref_forward(x, p):
    bsz, tlen = x.shape[:2]
    frames = x.reshape(bsz * tlen, H, W, CIN)
    xp = jnp.pad(frames, ((0, 0), (1, 1), (1, 1), (0, 0)))
    acc = jnp.zeros((bsz * tlen, H, W, COUT), jnp.float32)
    for kh in range(3):
        for kw in range(3):
            acc = acc + jnp.einsum("nhwc,cd->nhwd",
                                   xp[:, kh:kh + H, kw:kw + W, :],
                                   p["conv_w"][kh, kw])
    feat = jnp.maximum(acc + p["conv_b"].reshape(1, 1, 1, COUT), 0.0)
    emb = p["fc_b"]
    bin_idx = 0
    for k in POOLS:
        for (r0, r1) in _adaptive_bins(H, k):
            for (c0, c1) in _adaptive_bins(W, k):
                v = jnp.max(feat[:, r0:r1, c0:c1, :], axis=(1, 2))
                emb = emb + v @ p["fc_w"][bin_idx]
                bin_idx += 1
    emb = emb.reshape(bsz, tlen, E)

    def run_direction(wih, whh, b, reverse):
        h = jnp.zeros((bsz, D)); c = jnp.zeros((bsz, D))
        m = jnp.full((bsz, D), -jnp.inf)
        steps = range(tlen - 1, -1, -1) if reverse else range(tlen)
        for t in steps:
            gates = emb[:, t] @ wih + h @ whh + b
            i = jax.nn.sigmoid(gates[:, :D]); f = jax.nn.sigmoid(gates[:, D:2 * D])
            g = jnp.tanh(gates[:, 2 * D:3 * D]); o = jax.nn.sigmoid(gates[:, 3 * D:])
            c = f * c + i * g
            h = o * jnp.tanh(c)
            m = jnp.maximum(m, h)
        return m

    max_pool = jnp.concatenate(
        [run_direction(p["wih_f"], p["whh_f"], p["b_f"], False),
         run_direction(p["wih_b"], p["whh_b"], p["b_b"], True)], axis=1)
    hp = jnp.maximum(max_pool @ p["w1"] + p["b1"], 0.0)
    hidden = max_pool + hp
    return jnp.sum(hidden * p["wo"], axis=1, keepdims=True) + p["bo"]


if __name__ == "__main__":
    key = jax.random.PRNGKey(0)
    kx, kp = jax.random.split(key)
    x = jax.random.normal(kx, (B, T, H, W, CIN), jnp.float32)
    params = init_params(kp)
    packed = pack_params(params)          # one-time eager repack (outside jit)

    out = jax.block_until_ready(sppseqnet_forward(x, packed))
    assert out.shape == (B, 1), out.shape

    ref = ref_forward(x, params)
    if not bool(jnp.allclose(out, ref, atol=1e-2, rtol=1e-2)):
        raise AssertionError(f"mismatch: kernel={out} ref={ref}")

    print("KERNEL_OK")
</pallas_src>

<mosaic_0001>
module attributes {stable_mosaic.version = 11 : i64} {
  func.func @sppseq_kernel(%arg0: i32, %arg1: memref<288x54xf32, #tpu.memory_space<vmem>>, %arg2: memref<3x54x128xf32, #tpu.memory_space<vmem>>, %arg3: memref<1x128xf32, #tpu.memory_space<vmem>>, %arg4: memref<1920x32xf32, #tpu.memory_space<vmem>>, %arg5: memref<32x256xf32, #tpu.memory_space<vmem>>, %arg6: memref<1x256xf32, #tpu.memory_space<vmem>>, %arg7: memref<2x32x128xf32, #tpu.memory_space<vmem>>, %arg8: memref<64x64xf32, #tpu.memory_space<vmem>>, %arg9: memref<1x64xf32, #tpu.memory_space<vmem>>, %arg10: memref<1x64xf32, #tpu.memory_space<vmem>>, %arg11: memref<1x1xf32, #tpu.memory_space<vmem>>, %arg12: memref<2x1xf32, #tpu.memory_space<vmem>>, %arg13: memref<16x1920xf32, #tpu.memory_space<vmem>>) attributes {dimension_semantics = [#tpu.dimension_semantics<arbitrary>], iteration_bounds = array<i64: 1>, scalar_prefetch = 0 : i64, scratch_operands = 1 : i64, tpu.core_type = #tpu.core_type<tc>, window_params = [{pipeline_mode = #tpu.pipeline_mode<synchronous>, transform_indices = @transform_0, window_bounds = array<i64: 288, 54>}, {pipeline_mode = #tpu.pipeline_mode<synchronous>, transform_indices = @transform_1, window_bounds = array<i64: 3, 54, 128>}, {pipeline_mode = #tpu.pipeline_mode<synchronous>, transform_indices = @transform_2, window_bounds = array<i64: 1, 128>}, {pipeline_mode = #tpu.pipeline_mode<synchronous>, transform_indices = @transform_3, window_bounds = array<i64: 1920, 32>}, {pipeline_mode = #tpu.pipeline_mode<synchronous>, transform_indices = @transform_4, window_bounds = array<i64: 32, 256>}, {pipeline_mode = #tpu.pipeline_mode<synchronous>, transform_indices = @transform_5, window_bounds = array<i64: 1, 256>}, {pipeline_mode = #tpu.pipeline_mode<synchronous>, transform_indices = @transform_6, window_bounds = array<i64: 2, 32, 128>}, {pipeline_mode = #tpu.pipeline_mode<synchronous>, transform_indices = @transform_7, window_bounds = array<i64: 64, 64>}, {pipeline_mode = #tpu.pipeline_mode<synchronous>, transform_indices = @transform_8, window_bounds = array<i64: 1, 64>}, {pipeline_mode = #tpu.pipeline_mode<synchronous>, transform_indices = @transform_9, window_bounds = array<i64: 1, 64>}, {pipeline_mode = #tpu.pipeline_mode<synchronous>, transform_indices = @transform_10, window_bounds = array<i64: 1, 1>}, {pipeline_mode = #tpu.pipeline_mode<synchronous>, transform_indices = @transform_11, window_bounds = array<i64: 2, 1>}]} {
    %c0 = arith.constant 0 : index
    %c0_0 = arith.constant 0 : index
    %0 = vector.load %arg1[%c0, %c0_0] : memref<288x54xf32, #tpu.memory_space<vmem>>, vector<256x54xf32>
    %c0_1 = arith.constant 0 : index
    %c0_2 = arith.constant 0 : index
    %c0_3 = arith.constant 0 : index
    %1 = vector.load %arg2[%c0_1, %c0_2, %c0_3] : memref<3x54x128xf32, #tpu.memory_space<vmem>>, vector<1x54x128xf32>
    %2 = vector.shape_cast %1 : vector<1x54x128xf32> to vector<54x128xf32>
    %cst = arith.constant dense<0.000000e+00> : vector<256x128xf32>
    %3 = tpu.matmul %0, %2, %cst {dimension_numbers = #tpu.dot_dimension_numbers<[1], [0], [0], [1], [0, 0, 1, 1], [], []>} : vector<256x54xf32>, vector<54x128xf32>, vector<256x128xf32> -> vector<256x128xf32>
    %c16 = arith.constant 16 : index
    %c0_4 = arith.constant 0 : index
    %4 = vector.load %arg1[%c16, %c0_4] : memref<288x54xf32, #tpu.memory_space<vmem>>, vector<256x54xf32>
    %c1 = arith.constant 1 : index
    %c0_5 = arith.constant 0 : index
    %c0_6 = arith.constant 0 : index
    %5 = vector.load %arg2[%c1, %c0_5, %c0_6] : memref<3x54x128xf32, #tpu.memory_space<vmem>>, vector<1x54x128xf32>
    %6 = vector.shape_cast %5 : vector<1x54x128xf32> to vector<54x128xf32>
    %cst_7 = arith.constant dense<0.000000e+00> : vector<256x128xf32>
    %7 = tpu.matmul %4, %6, %cst_7 {dimension_numbers = #tpu.dot_dimension_numbers<[1], [0], [0], [1], [0, 0, 1, 1], [], []>} : vector<256x54xf32>, vector<54x128xf32>, vector<256x128xf32> -> vector<256x128xf32>
    %8 = arith.addf %3, %7 : vector<256x128xf32>
    %c32 = arith.constant 32 : index
    %c0_8 = arith.constant 0 : index
    %9 = vector.load %arg1[%c32, %c0_8] : memref<288x54xf32, #tpu.memory_space<vmem>>, vector<256x54xf32>
    %c2 = arith.constant 2 : index
    %c0_9 = arith.constant 0 : index
    %c0_10 = arith.constant 0 : index
    %10 = vector.load %arg2[%c2, %c0_9, %c0_10] : memref<3x54x128xf32, #tpu.memory_space<vmem>>, vector<1x54x128xf32>
    %11 = vector.shape_cast %10 : vector<1x54x128xf32> to vector<54x128xf32>
    %cst_11 = arith.constant dense<0.000000e+00> : vector<256x128xf32>
    %12 = tpu.matmul %9, %11, %cst_11 {dimension_numbers = #tpu.dot_dimension_numbers<[1], [0], [0], [1], [0, 0, 1, 1], [], []>} : vector<256x54xf32>, vector<54x128xf32>, vector<256x128xf32> -> vector<256x128xf32>
    %13 = arith.addf %8, %12 : vector<256x128xf32>
    %c0_12 = arith.constant 0 : index
    %c0_13 = arith.constant 0 : index
    %14 = vector.load %arg3[%c0_12, %c0_13] : memref<1x128xf32, #tpu.memory_space<vmem>>, vector<1x128xf32>
    %15 = vector.broadcast %14 : vector<1x128xf32> to vector<256x128xf32>
    %16 = arith.addf %13, %15 : vector<256x128xf32>
    %cst_14 = arith.constant 0.000000e+00 : f32
    %17 = vector.broadcast %cst_14 : f32 to vector<256x128xf32>
    %18 = arith.maximumf %16, %17 : vector<256x128xf32>
    %19 = vector.extract_strided_slice %18 {offsets = [0, 0], sizes = [16, 128], strides = [1, 1]} : vector<256x128xf32> to vector<16x128xf32>
    %20 = vector.extract_strided_slice %18 {offsets = [16, 0], sizes = [16, 128], strides = [1, 1]} : vector<256x128xf32> to vector<16x128xf32>
    %21 = vector.extract_strided_slice %18 {offsets = [32, 0], sizes = [16, 128], strides = [1, 1]} : vector<256x128xf32> to vector<16x128xf32>
    %22 = vector.extract_strided_slice %18 {offsets = [48, 0], sizes = [16, 128], strides = [1, 1]} : vector<256x128xf32> to vector<16x128xf32>
    %23 = vector.extract_strided_slice %18 {offsets = [64, 0], sizes = [16, 128], strides = [1, 1]} : vector<256x128xf32> to vector<16x128xf32>
    %24 = vector.extract_strided_slice %18 {offsets = [80, 0], sizes = [16, 128], strides = [1, 1]} : vector<256x128xf32> to vector<16x128xf32>
    %25 = vector.extract_strided_slice %18 {offsets = [96, 0], sizes = [16, 128], strides = [1, 1]} : vector<256x128xf32> to vector<16x128xf32>
    %26 = vector.extract_strided_slice %18 {offsets = [112, 0], sizes = [16, 128], strides = [1, 1]} : vector<256x128xf32> to vector<16x128xf32>
    %27 = vector.extract_strided_slice %18 {offsets = [128, 0], sizes = [16, 128], strides = [1, 1]} : vector<256x128xf32> to vector<16x128xf32>
    %28 = vector.extract_strided_slice %18 {offsets = [144, 0], sizes = [16, 128], strides = [1, 1]} : vector<256x128xf32> to vector<16x128xf32>
    %29 = vector.extract_strided_slice %18 {offsets = [160, 0], sizes = [16, 128], strides = [1, 1]} : vector<256x128xf32> to vector<16x128xf32>
    %30 = vector.extract_strided_slice %18 {offsets = [176, 0], sizes = [16, 128], strides = [1, 1]} : vector<256x128xf32> to vector<16x128xf32>
    %31 = vector.extract_strided_slice %18 {offsets = [192, 0], sizes = [16, 128], strides = [1, 1]} : vector<256x128xf32> to vector<16x128xf32>
    %32 = vector.extract_strided_slice %18 {offsets = [208, 0], sizes = [16, 128], strides = [1, 1]} : vector<256x128xf32> to vector<16x128xf32>
    %33 = vector.extract_strided_slice %18 {offsets = [224, 0], sizes = [16, 128], strides = [1, 1]} : vector<256x128xf32> to vector<16x128xf32>
    %34 = vector.extract_strided_slice %18 {offsets = [240, 0], sizes = [16, 128], strides = [1, 1]} : vector<256x128xf32> to vector<16x128xf32>
    %35 = arith.maximumf %19, %20 : vector<16x128xf32>
    %36 = arith.maximumf %35, %21 : vector<16x128xf32>
    %37 = arith.maximumf %36, %22 : vector<16x128xf32>
    %38 = arith.maximumf %37, %23 : vector<16x128xf32>
    %39 = arith.maximumf %38, %24 : vector<16x128xf32>
    %40 = arith.maximumf %39, %25 : vector<16x128xf32>
    %41 = arith.maximumf %40, %26 : vector<16x128xf32>
    %42 = arith.maximumf %41, %27 : vector<16x128xf32>
    %43 = arith.maximumf %42, %28 : vector<16x128xf32>
    %44 = arith.maximumf %43, %29 : vector<16x128xf32>
    %45 = arith.maximumf %44, %30 : vector<16x128xf32>
    %46 = arith.maximumf %45, %31 : vector<16x128xf32>
    %47 = arith.maximumf %46, %32 : vector<16x128xf32>
    %48 = arith.maximumf %47, %33 : vector<16x128xf32>
    %49 = arith.maximumf %48, %34 : vector<16x128xf32>
    %50 = vector.extract_strided_slice %49 {offsets = [0, 8], sizes = [16, 120], strides = [1, 1]} : vector<16x128xf32> to vector<16x120xf32>
    %51 = vector.extract_strided_slice %49 {offsets = [0, 0], sizes = [16, 8], strides = [1, 1]} : vector<16x128xf32> to vector<16x8xf32>
    %52 = tpu.concatenate %50, %51 in 1 : vector<16x120xf32>, vector<16x8xf32> -> vector<16x128xf32>
    %53 = arith.maximumf %49, %52 : vector<16x128xf32>
    %54 = vector.extract_strided_slice %53 {offsets = [0, 16], sizes = [16, 112], strides = [1, 1]} : vector<16x128xf32> to vector<16x112xf32>
    %55 = vector.extract_strided_slice %53 {offsets = [0, 0], sizes = [16, 16], strides = [1, 1]} : vector<16x128xf32> to vector<16x16xf32>
    %56 = tpu.concatenate %54, %55 in 1 : vector<16x112xf32>, vector<16x16xf32> -> vector<16x128xf32>
    %57 = arith.maximumf %53, %56 : vector<16x128xf32>
    %58 = vector.extract_strided_slice %57 {offsets = [0, 32], sizes = [16, 96], strides = [1, 1]} : vector<16x128xf32> to vector<16x96xf32>
    %59 = vector.extract_strided_slice %57 {offsets = [0, 0], sizes = [16, 32], strides = [1, 1]} : vector<16x128xf32> to vector<16x32xf32>
    %60 = tpu.concatenate %58, %59 in 1 : vector<16x96xf32>, vector<16x32xf32> -> vector<16x128xf32>
    %61 = arith.maximumf %57, %60 : vector<16x128xf32>
    %62 = vector.extract_strided_slice %61 {offsets = [0, 64], sizes = [16, 64], strides = [1, 1]} : vector<16x128xf32> to vector<16x64xf32>
    %63 = vector.extract_strided_slice %61 {offsets = [0, 0], sizes = [16, 64], strides = [1, 1]} : vector<16x128xf32> to vector<16x64xf32>
    %64 = tpu.concatenate %62, %63 in 1 : vector<16x64xf32>, vector<16x64xf32> -> vector<16x128xf32>
    %65 = arith.maximumf %61, %64 : vector<16x128xf32>
    %c0_15 = arith.constant 0 : index
    %c0_16 = arith.constant 0 : index
    %66 = vector.load %arg13[%c0_15, %c0_16] : memref<16x1920xf32, #tpu.memory_space<vmem>>, vector<16x128xf32>
    tpu.vector_store %arg13[%c0_15, %c0_16], %65 {strides = array<i32>} : memref<16x1920xf32, #tpu.memory_space<vmem>>, vector<16x128xf32>,
    %67 = vector.extract_strided_slice %18 {offsets = [0, 0], sizes = [16, 128], strides = [1, 1]} : vector<256x128xf32> to vector<16x128xf32>
    %68 = vector.extract_strided_slice %18 {offsets = [16, 0], sizes = [16, 128], strides = [1, 1]} : vector<256x128xf32> to vector<16x128xf32>
    %69 = vector.extract_strided_slice %18 {offsets = [32, 0], sizes = [16, 128], strides = [1, 1]} : vector<256x128xf32> to vector<16x128xf32>
    %70 = vector.extract_strided_slice %18 {offsets = [48, 0], sizes = [16, 128], strides = [1, 1]} : vector<256x128xf32> to vector<16x128xf32>
    %71 = vector.extract_strided_slice %18 {offsets = [64, 0], sizes = [16, 128], strides = [1, 1]} : vector<256x128xf32> to vector<16x128xf32>
    %72 = vector.extract_strided_slice %18 {offsets = [80, 0], sizes = [16, 128], strides = [1, 1]} : vector<256x128xf32> to vector<16x128xf32>
    %73 = vector.extract_strided_slice %18 {offsets = [96, 0], sizes = [16, 128], strides = [1, 1]} : vector<256x128xf32> to vector<16x128xf32>
    %74 = vector.extract_strided_slice %18 {offsets = [112, 0], sizes = [16, 128], strides = [1, 1]} : vector<256x128xf32> to vector<16x128xf32>
    %75 = arith.maximumf %67, %68 : vector<16x128xf32>
    %76 = arith.maximumf %75, %69 : vector<16x128xf32>
    %77 = arith.maximumf %76, %70 : vector<16x128xf32>
    %78 = arith.maximumf %77, %71 : vector<16x128xf32>
    %79 = arith.maximumf %78, %72 : vector<16x128xf32>
    %80 = arith.maximumf %79, %73 : vector<16x128xf32>
    %81 = arith.maximumf %80, %74 : vector<16x128xf32>
    %82 = vector.extract_strided_slice %81 {offsets = [0, 8], sizes = [16, 120], strides = [1, 1]} : vector<16x128xf32> to vector<16x120xf32>
    %83 = vector.extract_strided_slice %81 {offsets = [0, 0], sizes = [16, 8], strides = [1, 1]} : vector<16x128xf32> to vector<16x8xf32>
    %84 = tpu.concatenate %82, %83 in 1 : vector<16x120xf32>, vector<16x8xf32> -> vector<16x128xf32>
    %85 = arith.maximumf %81, %84 : vector<16x128xf32>
    %86 = vector.extract_strided_slice %85 {offsets = [0, 16], sizes = [16, 112], strides = [1, 1]} : vector<16x128xf32> to vector<16x112xf32>
    %87 = vector.extract_strided_slice %85 {offsets = [0, 0], sizes = [16, 16], strides = [1, 1]} : vector<16x128xf32> to vector<16x16xf32>
    %88 = tpu.concatenate %86, %87 in 1 : vector<16x112xf32>, vector<16x16xf32> -> vector<16x128xf32>
    %89 = arith.maximumf %85, %88 : vector<16x128xf32>
    %90 = vector.extract_strided_slice %89 {offsets = [0, 32], sizes = [16, 96], strides = [1, 1]} : vector<16x128xf32> to vector<16x96xf32>
    %91 = vector.extract_strided_slice %89 {offsets = [0, 0], sizes = [16, 32], strides = [1, 1]} : vector<16x128xf32> to vector<16x32xf32>
    %92 = tpu.concatenate %90, %91 in 1 : vector<16x96xf32>, vector<16x32xf32> -> vector<16x128xf32>
    %93 = arith.maximumf %89, %92 : vector<16x128xf32>
    %c0_17 = arith.constant 0 : index
    %c128 = arith.constant 128 : index
    %94 = vector.load %arg13[%c0_17, %c128] : memref<16x1920xf32, #tpu.memory_space<vmem>>, vector<16x128xf32>
    tpu.vector_store %arg13[%c0_17, %c128], %93 {strides = array<i32>} : memref<16x1920xf32, #tpu.memory_space<vmem>>, vector<16x128xf32>,
    %95 = vector.extract_strided_slice %18 {offsets = [128, 0], sizes = [16, 128], strides = [1, 1]} : vector<256x128xf32> to vector<16x128xf32>
    %96 = vector.extract_strided_slice %18 {offsets = [144, 0], sizes = [16, 128], strides = [1, 1]} : vector<256x128xf32> to vector<16x128xf32>
    %97 = vector.extract_strided_slice %18 {offsets = [160, 0], sizes = [16, 128], strides = [1, 1]} : vector<256x128xf32> to vector<16x128xf32>
    %98 = vector.extract_strided_slice %18 {offsets = [176, 0], sizes = [16, 128], strides = [1, 1]} : vector<256x128xf32> to vector<16x128xf32>
    %99 = vector.extract_strided_slice %18 {offsets = [192, 0], sizes = [16, 128], strides = [1, 1]} : vector<256x128xf32> to vector<16x128xf32>
    %100 = vector.extract_strided_slice %18 {offsets = [208, 0], sizes = [16, 128], strides = [1, 1]} : vector<256x128xf32> to vector<16x128xf32>
    %101 = vector.extract_strided_slice %18 {offsets = [224, 0], sizes = [16, 128], strides = [1, 1]} : vector<256x128xf32> to vector<16x128xf32>
    %102 = vector.extract_strided_slice %18 {offsets = [240, 0], sizes = [16, 128], strides = [1, 1]} : vector<256x128xf32> to vector<16x128xf32>
    %103 = arith.maximumf %95, %96 : vector<16x128xf32>
    %104 = arith.maximumf %103, %97 : vector<16x128xf32>
    %105 = arith.maximumf %104, %98 : vector<16x128xf32>
    %106 = arith.maximumf %105, %99 : vector<16x128xf32>
    %107 = arith.maximumf %106, %100 : vector<16x128xf32>
    %108 = arith.maximumf %107, %101 : vector<16x128xf32>
    %109 = arith.maximumf %108, %102 : vector<16x128xf32>
    %110 = vector.extract_strided_slice %109 {offsets = [0, 8], sizes = [16, 120], strides = [1, 1]} : vector<16x128xf32> to vector<16x120xf32>
    %111 = vector.extract_strided_slice %109 {offsets = [0, 0], sizes = [16, 8], strides = [1, 1]} : vector<16x128xf32> to vector<16x8xf32>
    %112 = tpu.concatenate %110, %111 in 1 : vector<16x120xf32>, vector<16x8xf32> -> vector<16x128xf32>
    %113 = arith.maximumf %109, %112 : vector<16x128xf32>
    %114 = vector.extract_strided_slice %113 {offsets = [0, 16], sizes = [16, 112], strides = [1, 1]} : vector<16x128xf32> to vector<16x112xf32>
    %115 = vector.extract_strided_slice %113 {offsets = [0, 0], sizes = [16, 16], strides = [1, 1]} : vector<16x128xf32> to vector<16x16xf32>
    %116 = tpu.concatenate %114, %115 in 1 : vector<16x112xf32>, vector<16x16xf32> -> vector<16x128xf32>
    %117 = arith.maximumf %113, %116 : vector<16x128xf32>
    %118 = vector.extract_strided_slice %117 {offsets = [0, 32], sizes = [16, 96], strides = [1, 1]} : vector<16x128xf32> to vector<16x96xf32>
    %119 = vector.extract_strided_slice %117 {offsets = [0, 0], sizes = [16, 32], strides = [1, 1]} : vector<16x128xf32> to vector<16x32xf32>
    %120 = tpu.concatenate %118, %119 in 1 : vector<16x96xf32>, vector<16x32xf32> -> vector<16x128xf32>
    %121 = arith.maximumf %117, %120 : vector<16x128xf32>
    %c0_18 = arith.constant 0 : index
    %c256 = arith.constant 256 : index
    %122 = vector.load %arg13[%c0_18, %c256] : memref<16x1920xf32, #tpu.memory_space<vmem>>, vector<16x128xf32>
    tpu.vector_store %arg13[%c0_18, %c256], %121 {strides = array<i32>} : memref<16x1920xf32, #tpu.memory_space<vmem>>, vector<16x128xf32>,
    %123 = vector.extract_strided_slice %18 {offsets = [0, 0], sizes = [16, 128], strides = [1, 1]} : vector<256x128xf32> to vector<16x128xf32>
    %124 = vector.extract_strided_slice %18 {offsets = [16, 0], sizes = [16, 128], strides = [1, 1]} : vector<256x128xf32> to vector<16x128xf32>
    %125 = vector.extract_strided_slice %18 {offsets = [32, 0], sizes = [16, 128], strides = [1, 1]} : vector<256x128xf32> to vector<16x128xf32>
    %126 = arith.maximumf %123, %124 : vector<16x128xf32>
    %127 = arith.maximumf %126, %125 : vector<16x128xf32>
    %128 = vector.extract_strided_slice %127 {offsets = [0, 8], sizes = [16, 120], strides = [1, 1]} : vector<16x128xf32> to vector<16x120xf32>
    %129 = vector.extract_strided_slice %127 {offsets = [0, 0], sizes = [16, 8], strides = [1, 1]} : vector<16x128xf32> to vector<16x8xf32>
    %130 = tpu.concatenate %128, %129 in 1 : vector<16x120xf32>, vector<16x8xf32> -> vector<16x128xf32>
    %131 = arith.maximumf %127, %130 : vector<16x128xf32>
    %132 = vector.extract_strided_slice %131 {offsets = [0, 8], sizes = [16, 120], strides = [1, 1]} : vector<16x128xf32> to vector<16x120xf32>
    %133 = vector.extract_strided_slice %131 {offsets = [0, 0], sizes = [16, 8], strides = [1, 1]} : vector<16x128xf32> to vector<16x8xf32>
    %134 = tpu.concatenate %132, %133 in 1 : vector<16x120xf32>, vector<16x8xf32> -> vector<16x128xf32>
    %135 = arith.maximumf %131, %134 : vector<16x128xf32>
    %c0_19 = arith.constant 0 : index
    %c384 = arith.constant 384 : index
    %136 = vector.load %arg13[%c0_19, %c384] : memref<16x1920xf32, #tpu.memory_space<vmem>>, vector<16x128xf32>
    tpu.vector_store %arg13[%c0_19, %c384], %135 {strides = array<i32>} : memref<16x1920xf32, #tpu.memory_space<vmem>>, vector<16x128xf32>,
    %137 = vector.extract_strided_slice %127 {offsets = [0, 8], sizes = [16, 120], strides = [1, 1]} : vector<16x128xf32> to vector<16x120xf32>
    %138 = vector.extract_strided_slice %127 {offsets = [0, 0], sizes = [16, 8], strides = [1, 1]} : vector<16x128xf32> to vector<16x8xf32>
    %139 = tpu.concatenate %137, %138 in 1 : vector<16x120xf32>, vector<16x8xf32> -> vector<16x128xf32>
    %140 = arith.maximumf %127, %139 : vector<16x128xf32>
    %141 = vector.extract_strided_slice %140 {offsets = [0, 16], sizes = [16, 112], strides = [1, 1]} : vector<16x128xf32> to vector<16x112xf32>
    %142 = vector.extract_strided_slice %140 {offsets = [0, 0], sizes = [16, 16], strides = [1, 1]} : vector<16x128xf32> to vector<16x16xf32>
    %143 = tpu.concatenate %141, %142 in 1 : vector<16x112xf32>, vector<16x16xf32> -> vector<16x128xf32>
    %144 = arith.maximumf %140, %143 : vector<16x128xf32>
    %c0_20 = arith.constant 0 : index
    %c512 = arith.constant 512 : index
    %145 = vector.load %arg13[%c0_20, %c512] : memref<16x1920xf32, #tpu.memory_space<vmem>>, vector<16x128xf32>
    tpu.vector_store %arg13[%c0_20, %c512], %144 {strides = array<i32>} : memref<16x1920xf32, #tpu.memory_space<vmem>>, vector<16x128xf32>,
    %146 = vector.extract_strided_slice %18 {offsets = [32, 0], sizes = [16, 128], strides = [1, 1]} : vector<256x128xf32> to vector<16x128xf32>
    %147 = vector.extract_strided_slice %18 {offsets = [48, 0], sizes = [16, 128], strides = [1, 1]} : vector<256x128xf32> to vector<16x128xf32>
    %148 = vector.extract_strided_slice %18 {offsets = [64, 0], sizes = [16, 128], strides = [1, 1]} : vector<256x128xf32> to vector<16x128xf32>
    %149 = vector.extract_strided_slice %18 {offsets = [80, 0], sizes = [16, 128], strides = [1, 1]} : vector<256x128xf32> to vector<16x128xf32>
    %150 = arith.maximumf %146, %147 : vector<16x128xf32>
    %151 = arith.maximumf %150, %148 : vector<16x128xf32>
    %152 = arith.maximumf %151, %149 : vector<16x128xf32>
    %153 = vector.extract_strided_slice %152 {offsets = [0, 8], sizes = [16, 120], strides = [1, 1]} : vector<16x128xf32> to vector<16x120xf32>
    %154 = vector.extract_strided_slice %152 {offsets = [0, 0], sizes = [16, 8], strides = [1, 1]} : vector<16x128xf32> to vector<16x8xf32>
    %155 = tpu.concatenate %153, %154 in 1 : vector<16x120xf32>, vector<16x8xf32> -> vector<16x128xf32>
    %156 = arith.maximumf %152, %155 : vector<16x128xf32>
    %157 = vector.extract_strided_slice %156 {offsets = [0, 8], sizes = [16, 120], strides = [1, 1]} : vector<16x128xf32> to vector<16x120xf32>
    %158 = vector.extract_strided_slice %156 {offsets = [0, 0], sizes = [16, 8], strides = [1, 1]} : vector<16x128xf32> to vector<16x8xf32>
    %159 = tpu.concatenate %157, %158 in 1 : vector<16x120xf32>, vector<16x8xf32> -> vector<16x128xf32>
    %160 = arith.maximumf %156, %159 : vector<16x128xf32>
    %c0_21 = arith.constant 0 : index
    %c640 = arith.constant 640 : index
    %161 = vector.load %arg13[%c0_21, %c640] : memref<16x1920xf32, #tpu.memory_space<vmem>>, vector<16x128xf32>
    tpu.vector_store %arg13[%c0_21, %c640], %160 {strides = array<i32>} : memref<16x1920xf32, #tpu.memory_space<vmem>>, vector<16x128xf32>,
    %162 = vector.extract_strided_slice %152 {offsets = [0, 8], sizes = [16, 120], strides = [1, 1]} : vector<16x128xf32> to vector<16x120xf32>
    %163 = vector.extract_strided_slice %152 {offsets = [0, 0], sizes = [16, 8], strides = [1, 1]} : vector<16x128xf32> to vector<16x8xf32>
    %164 = tpu.concatenate %162, %163 in 1 : vector<16x120xf32>, vector<16x8xf32> -> vector<16x128xf32>
    %165 = arith.maximumf %152, %164 : vector<16x128xf32>
    %166 = vector.extract_strided_slice %165 {offsets = [0, 16], sizes = [16, 112], strides = [1, 1]} : vector<16x128xf32> to vector<16x112xf32>
    %167 = vector.extract_strided_slice %165 {offsets = [0, 0], sizes = [16, 16], strides = [1, 1]} : vector<16x128xf32> to vector<16x16xf32>
    %168 = tpu.concatenate %166, %167 in 1 : vector<16x112xf32>, vector<16x16xf32> -> vector<16x128xf32>
    %169 = arith.maximumf %165, %168 : vector<16x128xf32>
    %c0_22 = arith.constant 0 : index
    %c768 = arith.constant 768 : index
    %170 = vector.load %arg13[%c0_22, %c768] : memref<16x1920xf32, #tpu.memory_space<vmem>>, vector<16x128xf32>
    tpu.vector_store %arg13[%c0_22, %c768], %169 {strides = array<i32>} : memref<16x1920xf32, #tpu.memory_space<vmem>>, vector<16x128xf32>,
    %171 = vector.extract_strided_slice %18 {offsets = [80, 0], sizes = [16, 128], strides = [1, 1]} : vector<256x128xf32> to vector<16x128xf32>
    %172 = vector.extract_strided_slice %18 {offsets = [96, 0], sizes = [16, 128], strides = [1, 1]} : vector<256x128xf32> to vector<16x128xf32>
    %173 = vector.extract_strided_slice %18 {offsets = [112, 0], sizes = [16, 128], strides = [1, 1]} : vector<256x128xf32> to vector<16x128xf32>
    %174 = arith.maximumf %171, %172 : vector<16x128xf32>
    %175 = arith.maximumf %174, %173 : vector<16x128xf32>
    %176 = vector.extract_strided_slice %175 {offsets = [0, 8], sizes = [16, 120], strides = [1, 1]} : vector<16x128xf32> to vector<16x120xf32>
    %177 = vector.extract_strided_slice %175 {offsets = [0, 0], sizes = [16, 8], strides = [1, 1]} : vector<16x128xf32> to vector<16x8xf32>
    %178 = tpu.concatenate %176, %177 in 1 : vector<16x120xf32>, vector<16x8xf32> -> vector<16x128xf32>
    %179 = arith.maximumf %175, %178 : vector<16x128xf32>
    %180 = vector.extract_strided_slice %179 {offsets = [0, 8], sizes = [16, 120], strides = [1, 1]} : vector<16x128xf32> to vector<16x120xf32>
    %181 = vector.extract_strided_slice %179 {offsets = [0, 0], sizes = [16, 8], strides = [1, 1]} : vector<16x128xf32> to vector<16x8xf32>
    %182 = tpu.concatenate %180, %181 in 1 : vector<16x120xf32>, vector<16x8xf32> -> vector<16x128xf32>
    %183 = arith.maximumf %179, %182 : vector<16x128xf32>
    %c0_23 = arith.constant 0 : index
    %c896 = arith.constant 896 : index
    %184 = vector.load %arg13[%c0_23, %c896] : memref<16x1920xf32, #tpu.memory_space<vmem>>, vector<16x128xf32>
    tpu.vector_store %arg13[%c0_23, %c896], %183 {strides = array<i32>} : memref<16x1920xf32, #tpu.memory_space<vmem>>, vector<16x128xf32>,
    %185 = vector.extract_strided_slice %175 {offsets = [0, 8], sizes = [16, 120], strides = [1, 1]} : vector<16x128xf32> to vector<16x120xf32>
    %186 = vector.extract_strided_slice %175 {offsets = [0, 0], sizes = [16, 8], strides = [1, 1]} : vector<16x128xf32> to vector<16x8xf32>
    %187 = tpu.concatenate %185, %186 in 1 : vector<16x120xf32>, vector<16x8xf32> -> vector<16x128xf32>
    %188 = arith.maximumf %175, %187 : vector<16x128xf32>
    %189 = vector.extract_strided_slice %188 {offsets = [0, 16], sizes = [16, 112], strides = [1, 1]} : vector<16x128xf32> to vector<16x112xf32>
    %190 = vector.extract_strided_slice %188 {offsets = [0, 0], sizes = [16, 16], strides = [1, 1]} : vector<16x128xf32> to vector<16x16xf32>
    %191 = tpu.concatenate %189, %190 in 1 : vector<16x112xf32>, vector<16x16xf32> -> vector<16x128xf32>
    %192 = arith.maximumf %188, %191 : vector<16x128xf32>
    %c0_24 = arith.constant 0 : index
    %c1024 = arith.constant 1024 : index
    %193 = vector.load %arg13[%c0_24, %c1024] : memref<16x1920xf32, #tpu.memory_space<vmem>>, vector<16x128xf32>
    tpu.vector_store %arg13[%c0_24, %c1024], %192 {strides = array<i32>} : memref<16x1920xf32, #tpu.memory_space<vmem>>, vector<16x128xf32>,
    %194 = vector.extract_strided_slice %18 {offsets = [128, 0], sizes = [16, 128], strides = [1, 1]} : vector<256x128xf32> to vector<16x128xf32>
    %195 = vector.extract_strided_slice %18 {offsets = [144, 0], sizes = [16, 128], strides = [1, 1]} : vector<256x128xf32> to vector<16x128xf32>
    %196 = vector.extract_strided_slice %18 {offsets = [160, 0], sizes = [16, 128], strides = [1, 1]} : vector<256x128xf32> to vector<16x128xf32>
    %197 = arith.maximumf %194, %195 : vector<16x128xf32>
    %198 = arith.maximumf %197, %196 : vector<16x128xf32>
    %199 = vector.extract_strided_slice %198 {offsets = [0, 8], sizes = [16, 120], strides = [1, 1]} : vector<16x128xf32> to vector<16x120xf32>
    %200 = vector.extract_strided_slice %198 {offsets = [0, 0], sizes = [16, 8], strides = [1, 1]} : vector<16x128xf32> to vector<16x8xf32>
    %201 = tpu.concatenate %199, %200 in 1 : vector<16x120xf32>, vector<16x8xf32> -> vector<16x128xf32>
    %202 = arith.maximumf %198, %201 : vector<16x128xf32>
    %203 = vector.extract_strided_slice %202 {offsets = [0, 8], sizes = [16, 120], strides = [1, 1]} : vector<16x128xf32> to vector<16x120xf32>
    %204 = vector.extract_strided_slice %202 {offsets = [0, 0], sizes = [16, 8], strides = [1, 1]} : vector<16x128xf32> to vector<16x8xf32>
    %205 = tpu.concatenate %203, %204 in 1 : vector<16x120xf32>, vector<16x8xf32> -> vector<16x128xf32>
    %206 = arith.maximumf %202, %205 : vector<16x128xf32>
    %c0_25 = arith.constant 0 : index
    %c1152 = arith.constant 1152 : index
    %207 = vector.load %arg13[%c0_25, %c1152] : memref<16x1920xf32, #tpu.memory_space<vmem>>, vector<16x128xf32>
    tpu.vector_store %arg13[%c0_25, %c1152], %206 {strides = array<i32>} : memref<16x1920xf32, #tpu.memory_space<vmem>>, vector<16x128xf32>,
    %208 = vector.extract_strided_slice %198 {offsets = [0, 8], sizes = [16, 120], strides = [1, 1]} : vector<16x128xf32> to vector<16x120xf32>
    %209 = vector.extract_strided_slice %198 {offsets = [0, 0], sizes = [16, 8], strides = [1, 1]} : vector<16x128xf32> to vector<16x8xf32>
    %210 = tpu.concatenate %208, %209 in 1 : vector<16x120xf32>, vector<16x8xf32> -> vector<16x128xf32>
    %211 = arith.maximumf %198, %210 : vector<16x128xf32>
    %212 = vector.extract_strided_slice %211 {offsets = [0, 16], sizes = [16, 112], strides = [1, 1]} : vector<16x128xf32> to vector<16x112xf32>
    %213 = vector.extract_strided_slice %211 {offsets = [0, 0], sizes = [16, 16], strides = [1, 1]} : vector<16x128xf32> to vector<16x16xf32>
    %214 = tpu.concatenate %212, %213 in 1 : vector<16x112xf32>, vector<16x16xf32> -> vector<16x128xf32>
    %215 = arith.maximumf %211, %214 : vector<16x128xf32>
    %c0_26 = arith.constant 0 : index
    %c1280 = arith.constant 1280 : index
    %216 = vector.load %arg13[%c0_26, %c1280] : memref<16x1920xf32, #tpu.memory_space<vmem>>, vector<16x128xf32>
    tpu.vector_store %arg13[%c0_26, %c1280], %215 {strides = array<i32>} : memref<16x1920xf32, #tpu.memory_space<vmem>>, vector<16x128xf32>,
    %217 = vector.extract_strided_slice %18 {offsets = [160, 0], sizes = [16, 128], strides = [1, 1]} : vector<256x128xf32> to vector<16x128xf32>
    %218 = vector.extract_strided_slice %18 {offsets = [176, 0], sizes = [16, 128], strides = [1, 1]} : vector<256x128xf32> to vector<16x128xf32>
    %219 = vector.extract_strided_slice %18 {offsets = [192, 0], sizes = [16, 128], strides = [1, 1]} : vector<256x128xf32> to vector<16x128xf32>
    %220 = vector.extract_strided_slice %18 {offsets = [208, 0], sizes = [16, 128], strides = [1, 1]} : vector<256x128xf32> to vector<16x128xf32>
    %221 = arith.maximumf %217, %218 : vector<16x128xf32>
    %222 = arith.maximumf %221, %219 : vector<16x128xf32>
    %223 = arith.maximumf %222, %220 : vector<16x128xf32>
    %224 = vector.extract_strided_slice %223 {offsets = [0, 8], sizes = [16, 120], strides = [1, 1]} : vector<16x128xf32> to vector<16x120xf32>
    %225 = vector.extract_strided_slice %223 {offsets = [0, 0], sizes = [16, 8], strides = [1, 1]} : vector<16x128xf32> to vector<16x8xf32>
    %226 = tpu.concatenate %224, %225 in 1 : vector<16x120xf32>, vector<16x8xf32> -> vector<16x128xf32>
    %227 = arith.maximumf %223, %226 : vector<16x128xf32>
    %228 = vector.extract_strided_slice %227 {offsets = [0, 8], sizes = [16, 120], strides = [1, 1]} : vector<16x128xf32> to vector<16x120xf32>
    %229 = vector.extract_strided_slice %227 {offsets = [0, 0], sizes = [16, 8], strides = [1, 1]} : vector<16x128xf32> to vector<16x8xf32>
    %230 = tpu.concatenate %228, %229 in 1 : vector<16x120xf32>, vector<16x8xf32> -> vector<16x128xf32>
    %231 = arith.maximumf %227, %230 : vector<16x128xf32>
    %c0_27 = arith.constant 0 : index
    %c1408 = arith.constant 1408 : index
    %232 = vector.load %arg13[%c0_27, %c1408] : memref<16x1920xf32, #tpu.memory_space<vmem>>, vector<16x128xf32>
    tpu.vector_store %arg13[%c0_27, %c1408], %231 {strides = array<i32>} : memref<16x1920xf32, #tpu.memory_space<vmem>>, vector<16x128xf32>,
    %233 = vector.extract_strided_slice %223 {offsets = [0, 8], sizes = [16, 120], strides = [1, 1]} : vector<16x128xf32> to vector<16x120xf32>
    %234 = vector.extract_strided_slice %223 {offsets = [0, 0], sizes = [16, 8], strides = [1, 1]} : vector<16x128xf32> to vector<16x8xf32>
    %235 = tpu.concatenate %233, %234 in 1 : vector<16x120xf32>, vector<16x8xf32> -> vector<16x128xf32>
    %236 = arith.maximumf %223, %235 : vector<16x128xf32>
    %237 = vector.extract_strided_slice %236 {offsets = [0, 16], sizes = [16, 112], strides = [1, 1]} : vector<16x128xf32> to vector<16x112xf32>
    %238 = vector.extract_strided_slice %236 {offsets = [0, 0], sizes = [16, 16], strides = [1, 1]} : vector<16x128xf32> to vector<16x16xf32>
    %239 = tpu.concatenate %237, %238 in 1 : vector<16x112xf32>, vector<16x16xf32> -> vector<16x128xf32>
    %240 = arith.maximumf %236, %239 : vector<16x128xf32>
    %c0_28 = arith.constant 0 : index
    %c1536 = arith.constant 1536 : index
    %241 = vector.load %arg13[%c0_28, %c1536] : memref<16x1920xf32, #tpu.memory_space<vmem>>, vector<16x128xf32>
    tpu.vector_store %arg13[%c0_28, %c1536], %240 {strides = array<i32>} : memref<16x1920xf32, #tpu.memory_space<vmem>>, vector<16x128xf32>,
    %242 = vector.extract_strided_slice %18 {offsets = [208, 0], sizes = [16, 128], strides = [1, 1]} : vector<256x128xf32> to vector<16x128xf32>
    %243 = vector.extract_strided_slice %18 {offsets = [224, 0], sizes = [16, 128], strides = [1, 1]} : vector<256x128xf32> to vector<16x128xf32>
    %244 = vector.extract_strided_slice %18 {offsets = [240, 0], sizes = [16, 128], strides = [1, 1]} : vector<256x128xf32> to vector<16x128xf32>
    %245 = arith.maximumf %242, %243 : vector<16x128xf32>
    %246 = arith.maximumf %245, %244 : vector<16x128xf32>
    %247 = vector.extract_strided_slice %246 {offsets = [0, 8], sizes = [16, 120], strides = [1, 1]} : vector<16x128xf32> to vector<16x120xf32>
    %248 = vector.extract_strided_slice %246 {offsets = [0, 0], sizes = [16, 8], strides = [1, 1]} : vector<16x128xf32> to vector<16x8xf32>
    %249 = tpu.concatenate %247, %248 in 1 : vector<16x120xf32>, vector<16x8xf32> -> vector<16x128xf32>
    %250 = arith.maximumf %246, %249 : vector<16x128xf32>
    %251 = vector.extract_strided_slice %250 {offsets = [0, 8], sizes = [16, 120], strides = [1, 1]} : vector<16x128xf32> to vector<16x120xf32>
    %252 = vector.extract_strided_slice %250 {offsets = [0, 0], sizes = [16, 8], strides = [1, 1]} : vector<16x128xf32> to vector<16x8xf32>
    %253 = tpu.concatenate %251, %252 in 1 : vector<16x120xf32>, vector<16x8xf32> -> vector<16x128xf32>
    %254 = arith.maximumf %250, %253 : vector<16x128xf32>
    %c0_29 = arith.constant 0 : index
    %c1664 = arith.constant 1664 : index
    %255 = vector.load %arg13[%c0_29, %c1664] : memref<16x1920xf32, #tpu.memory_space<vmem>>, vector<16x128xf32>
    tpu.vector_store %arg13[%c0_29, %c1664], %254 {strides = array<i32>} : memref<16x1920xf32, #tpu.memory_space<vmem>>, vector<16x128xf32>,
    %256 = vector.extract_strided_slice %246 {offsets = [0, 8], sizes = [16, 120], strides = [1, 1]} : vector<16x128xf32> to vector<16x120xf32>
    %257 = vector.extract_strided_slice %246 {offsets = [0, 0], sizes = [16, 8], strides = [1, 1]} : vector<16x128xf32> to vector<16x8xf32>
    %258 = tpu.concatenate %256, %257 in 1 : vector<16x120xf32>, vector<16x8xf32> -> vector<16x128xf32>
    %259 = arith.maximumf %246, %258 : vector<16x128xf32>
    %260 = vector.extract_strided_slice %259 {offsets = [0, 16], sizes = [16, 112], strides = [1, 1]} : vector<16x128xf32> to vector<16x112xf32>
    %261 = vector.extract_strided_slice %259 {offsets = [0, 0], sizes = [16, 16], strides = [1, 1]} : vector<16x128xf32> to vector<16x16xf32>
    %262 = tpu.concatenate %260, %261 in 1 : vector<16x112xf32>, vector<16x16xf32> -> vector<16x128xf32>
    %263 = arith.maximumf %259, %262 : vector<16x128xf32>
    %c0_30 = arith.constant 0 : index
    %c1792 = arith.constant 1792 : index
    %264 = vector.load %arg13[%c0_30, %c1792] : memref<16x1920xf32, #tpu.memory_space<vmem>>, vector<16x128xf32>
    tpu.vector_store %arg13[%c0_30, %c1792], %263 {strides = array<i32>} : memref<16x1920xf32, #tpu.memory_space<vmem>>, vector<16x128xf32>,
    %c0_31 = arith.constant 0 : index
    %c0_32 = arith.constant 0 : index
    %265 = vector.load %arg13[%c0_31, %c0_32] : memref<16x1920xf32, #tpu.memory_space<vmem>>, vector<16x1920xf32>
    %c0_33 = arith.constant 0 : index
    %c0_34 = arith.constant 0 : index
    %266 = vector.load %arg4[%c0_33, %c0_34] : memref<1920x32xf32, #tpu.memory_space<vmem>>, vector<1920x32xf32>
    %cst_35 = arith.constant dense<0.000000e+00> : vector<16x32xf32>
    %267 = tpu.matmul %265, %266, %cst_35 {dimension_numbers = #tpu.dot_dimension_numbers<[1], [0], [0], [1], [0, 0, 1, 1], [], []>} : vector<16x1920xf32>, vector<1920x32xf32>, vector<16x32xf32> -> vector<16x32xf32>
    %c0_36 = arith.constant 0 : index
    %c0_37 = arith.constant 0 : index
    %268 = vector.load %arg5[%c0_36, %c0_37] : memref<32x256xf32, #tpu.memory_space<vmem>>, vector<32x256xf32>
    %cst_38 = arith.constant dense<0.000000e+00> : vector<16x256xf32>
    %269 = tpu.matmul %267, %268, %cst_38 {dimension_numbers = #tpu.dot_dimension_numbers<[1], [0], [0], [1], [0, 0, 1, 1], [], []>} : vector<16x32xf32>, vector<32x256xf32>, vector<16x256xf32> -> vector<16x256xf32>
    %c0_39 = arith.constant 0 : index
    %c0_40 = arith.constant 0 : index
    %270 = vector.load %arg6[%c0_39, %c0_40] : memref<1x256xf32, #tpu.memory_space<vmem>>, vector<1x256xf32>
    %271 = vector.broadcast %270 : vector<1x256xf32> to vector<16x256xf32>
    %272 = arith.addf %269, %271 : vector<16x256xf32>
    %273 = vector.extract_strided_slice %272 {offsets = [0, 0], sizes = [16, 128], strides = [1, 1]} : vector<16x256xf32> to vector<16x128xf32>
    %274 = vector.extract_strided_slice %272 {offsets = [0, 128], sizes = [16, 128], strides = [1, 1]} : vector<16x256xf32> to vector<16x128xf32>
    %c0_41 = arith.constant 0 : index
    %c0_42 = arith.constant 0 : index
    %c0_43 = arith.constant 0 : index
    %275 = vector.load %arg7[%c0_41, %c0_42, %c0_43] : memref<2x32x128xf32, #tpu.memory_space<vmem>>, vector<1x32x128xf32>
    %276 = vector.shape_cast %275 : vector<1x32x128xf32> to vector<32x128xf32>
    %c1_44 = arith.constant 1 : index
    %c0_45 = arith.constant 0 : index
    %c0_46 = arith.constant 0 : index
    %277 = vector.load %arg7[%c1_44, %c0_45, %c0_46] : memref<2x32x128xf32, #tpu.memory_space<vmem>>, vector<1x32x128xf32>
    %278 = vector.shape_cast %277 : vector<1x32x128xf32> to vector<32x128xf32>
    %cst_47 = arith.constant 0.000000e+00 : f32
    %279 = vector.broadcast %cst_47 : f32 to vector<2x32xf32>
    %cst_48 = arith.constant 0xFF800000 : f32
    %280 = vector.broadcast %cst_48 : f32 to vector<2x32xf32>
    %281 = vector.extract_strided_slice %273 {offsets = [0, 0], sizes = [2, 128], strides = [1, 1]} : vector<16x128xf32> to vector<2x128xf32>
    %cst_49 = arith.constant dense<0.000000e+00> : vector<2x128xf32>
    %282 = tpu.matmul %279, %276, %cst_49 {dimension_numbers = #tpu.dot_dimension_numbers<[1], [0], [0], [1], [0, 0, 1, 1], [], []>} : vector<2x32xf32>, vector<32x128xf32>, vector<2x128xf32> -> vector<2x128xf32>
    %283 = arith.addf %281, %282 : vector<2x128xf32>
    %284 = vector.extract_strided_slice %274 {offsets = [14, 0], sizes = [2, 128], strides = [1, 1]} : vector<16x128xf32> to vector<2x128xf32>
    %cst_50 = arith.constant dense<0.000000e+00> : vector<2x128xf32>
    %285 = tpu.matmul %279, %278, %cst_50 {dimension_numbers = #tpu.dot_dimension_numbers<[1], [0], [0], [1], [0, 0, 1, 1], [], []>} : vector<2x32xf32>, vector<32x128xf32>, vector<2x128xf32> -> vector<2x128xf32>
    %286 = arith.addf %284, %285 : vector<2x128xf32>
    %287 = vector.extract_strided_slice %283 {offsets = [0, 0], sizes = [2, 32], strides = [1, 1]} : vector<2x128xf32> to vector<2x32xf32>
    %288 = arith.negf %287 : vector<2x32xf32>
    %289 = math.exp %288 : vector<2x32xf32>
    %cst_51 = arith.constant 1.000000e+00 : f32
    %290 = vector.broadcast %cst_51 : f32 to vector<2x32xf32>
    %291 = arith.addf %290, %289 : vector<2x32xf32>
    %292 = arith.divf %290, %291 : vector<2x32xf32>
    %293 = vector.extract_strided_slice %283 {offsets = [0, 32], sizes = [2, 32], strides = [1, 1]} : vector<2x128xf32> to vector<2x32xf32>
    %294 = arith.negf %293 : vector<2x32xf32>
    %295 = math.exp %294 : vector<2x32xf32>
    %cst_52 = arith.constant 1.000000e+00 : f32
    %296 = vector.broadcast %cst_52 : f32 to vector<2x32xf32>
    %297 = arith.addf %296, %295 : vector<2x32xf32>
    %298 = arith.divf %296, %297 : vector<2x32xf32>
    %299 = vector.extract_strided_slice %283 {offsets = [0, 64], sizes = [2, 32], strides = [1, 1]} : vector<2x128xf32> to vector<2x32xf32>
    %300 = math.tanh %299 : vector<2x32xf32>
    %301 = vector.extract_strided_slice %283 {offsets = [0, 96], sizes = [2, 32], strides = [1, 1]} : vector<2x128xf32> to vector<2x32xf32>
    %302 = arith.negf %301 : vector<2x32xf32>
    %303 = math.exp %302 : vector<2x32xf32>
    %cst_53 = arith.constant 1.000000e+00 : f32
    %304 = vector.broadcast %cst_53 : f32 to vector<2x32xf32>
    %305 = arith.addf %304, %303 : vector<2x32xf32>
    %306 = arith.divf %304, %305 : vector<2x32xf32>
    %307 = arith.mulf %298, %279 : vector<2x32xf32>
    %308 = arith.mulf %292, %300 : vector<2x32xf32>
    %309 = arith.addf %307, %308 : vector<2x32xf32>
    %310 = math.tanh %309 : vector<2x32xf32>
    %311 = arith.mulf %306, %310 : vector<2x32xf32>
    %312 = vector.extract_strided_slice %286 {offsets = [0, 0], sizes = [2, 32], strides = [1, 1]} : vector<2x128xf32> to vector<2x32xf32>
    %313 = arith.negf %312 : vector<2x32xf32>
    %314 = math.exp %313 : vector<2x32xf32>
    %cst_54 = arith.constant 1.000000e+00 : f32
    %315 = vector.broadcast %cst_54 : f32 to vector<2x32xf32>
    %316 = arith.addf %315, %314 : vector<2x32xf32>
    %317 = arith.divf %315, %316 : vector<2x32xf32>
    %318 = vector.extract_strided_slice %286 {offsets = [0, 32], sizes = [2, 32], strides = [1, 1]} : vector<2x128xf32> to vector<2x32xf32>
    %319 = arith.negf %318 : vector<2x32xf32>
    %320 = math.exp %319 : vector<2x32xf32>
    %cst_55 = arith.constant 1.000000e+00 : f32
    %321 = vector.broadcast %cst_55 : f32 to vector<2x32xf32>
    %322 = arith.addf %321, %320 : vector<2x32xf32>
    %323 = arith.divf %321, %322 : vector<2x32xf32>
    %324 = vector.extract_strided_slice %286 {offsets = [0, 64], sizes = [2, 32], strides = [1, 1]} : vector<2x128xf32> to vector<2x32xf32>
    %325 = math.tanh %324 : vector<2x32xf32>
    %326 = vector.extract_strided_slice %286 {offsets = [0, 96], sizes = [2, 32], strides = [1, 1]} : vector<2x128xf32> to vector<2x32xf32>
    %327 = arith.negf %326 : vector<2x32xf32>
    %328 = math.exp %327 : vector<2x32xf32>
    %cst_56 = arith.constant 1.000000e+00 : f32
    %329 = vector.broadcast %cst_56 : f32 to vector<2x32xf32>
    %330 = arith.addf %329, %328 : vector<2x32xf32>
    %331 = arith.divf %329, %330 : vector<2x32xf32>
    %332 = arith.mulf %323, %279 : vector<2x32xf32>
    %333 = arith.mulf %317, %325 : vector<2x32xf32>
    %334 = arith.addf %332, %333 : vector<2x32xf32>
    %335 = math.tanh %334 : vector<2x32xf32>
    %336 = arith.mulf %331, %335 : vector<2x32xf32>
    %337 = arith.maximumf %280, %311 : vector<2x32xf32>
    %338 = arith.maximumf %280, %336 : vector<2x32xf32>
    %339 = vector.extract_strided_slice %273 {offsets = [2, 0], sizes = [2, 128], strides = [1, 1]} : vector<16x128xf32> to vector<2x128xf32>
    %cst_57 = arith.constant dense<0.000000e+00> : vector<2x128xf32>
    %340 = tpu.matmul %311, %276, %cst_57 {dimension_numbers = #tpu.dot_dimension_numbers<[1], [0], [0], [1], [0, 0, 1, 1], [], []>} : vector<2x32xf32>, vector<32x128xf32>, vector<2x128xf32> -> vector<2x128xf32>
    %341 = arith.addf %339, %340 : vector<2x128xf32>
    %342 = vector.extract_strided_slice %274 {offsets = [12, 0], sizes = [2, 128], strides = [1, 1]} : vector<16x128xf32> to vector<2x128xf32>
    %cst_58 = arith.constant dense<0.000000e+00> : vector<2x128xf32>
    %343 = tpu.matmul %336, %278, %cst_58 {dimension_numbers = #tpu.dot_dimension_numbers<[1], [0], [0], [1], [0, 0, 1, 1], [], []>} : vector<2x32xf32>, vector<32x128xf32>, vector<2x128xf32> -> vector<2x128xf32>
    %344 = arith.addf %342, %343 : vector<2x128xf32>
    %345 = vector.extract_strided_slice %341 {offsets = [0, 0], sizes = [2, 32], strides = [1, 1]} : vector<2x128xf32> to vector<2x32xf32>
    %346 = arith.negf %345 : vector<2x32xf32>
    %347 = math.exp %346 : vector<2x32xf32>
    %cst_59 = arith.constant 1.000000e+00 : f32
    %348 = vector.broadcast %cst_59 : f32 to vector<2x32xf32>
    %349 = arith.addf %348, %347 : vector<2x32xf32>
    %350 = arith.divf %348, %349 : vector<2x32xf32>
    %351 = vector.extract_strided_slice %341 {offsets = [0, 32], sizes = [2, 32], strides = [1, 1]} : vector<2x128xf32> to vector<2x32xf32>
    %352 = arith.negf %351 : vector<2x32xf32>
    %353 = math.exp %352 : vector<2x32xf32>
    %cst_60 = arith.constant 1.000000e+00 : f32
    %354 = vector.broadcast %cst_60 : f32 to vector<2x32xf32>
    %355 = arith.addf %354, %353 : vector<2x32xf32>
    %356 = arith.divf %354, %355 : vector<2x32xf32>
    %357 = vector.extract_strided_slice %341 {offsets = [0, 64], sizes = [2, 32], strides = [1, 1]} : vector<2x128xf32> to vector<2x32xf32>
    %358 = math.tanh %357 : vector<2x32xf32>
    %359 = vector.extract_strided_slice %341 {offsets = [0, 96], sizes = [2, 32], strides = [1, 1]} : vector<2x128xf32> to vector<2x32xf32>
    %360 = arith.negf %359 : vector<2x32xf32>
    %361 = math.exp %360 : vector<2x32xf32>
    %cst_61 = arith.constant 1.000000e+00 : f32
    %362 = vector.broadcast %cst_61 : f32 to vector<2x32xf32>
    %363 = arith.addf %362, %361 : vector<2x32xf32>
    %364 = arith.divf %362, %363 : vector<2x32xf32>
    %365 = arith.mulf %356, %309 : vector<2x32xf32>
    %366 = arith.mulf %350, %358 : vector<2x32xf32>
    %367 = arith.addf %365, %366 : vector<2x32xf32>
    %368 = math.tanh %367 : vector<2x32xf32>
    %369 = arith.mulf %364, %368 : vector<2x32xf32>
    %370 = vector.extract_strided_slice %344 {offsets = [0, 0], sizes = [2, 32], strides = [1, 1]} : vector<2x128xf32> to vector<2x32xf32>
    %371 = arith.negf %370 : vector<2x32xf32>
    %372 = math.exp %371 : vector<2x32xf32>
    %cst_62 = arith.constant 1.000000e+00 : f32
    %373 = vector.broadcast %cst_62 : f32 to vector<2x32xf32>
    %374 = arith.addf %373, %372 : vector<2x32xf32>
    %375 = arith.divf %373, %374 : vector<2x32xf32>
    %376 = vector.extract_strided_slice %344 {offsets = [0, 32], sizes = [2, 32], strides = [1, 1]} : vector<2x128xf32> to vector<2x32xf32>
    %377 = arith.negf %376 : vector<2x32xf32>
    %378 = math.exp %377 : vector<2x32xf32>
    %cst_63 = arith.constant 1.000000e+00 : f32
    %379 = vector.broadcast %cst_63 : f32 to vector<2x32xf32>
    %380 = arith.addf %379, %378 : vector<2x32xf32>
    %381 = arith.divf %379, %380 : vector<2x32xf32>
    %382 = vector.extract_strided_slice %344 {offsets = [0, 64], sizes = [2, 32], strides = [1, 1]} : vector<2x128xf32> to vector<2x32xf32>
    %383 = math.tanh %382 : vector<2x32xf32>
    %384 = vector.extract_strided_slice %344 {offsets = [0, 96], sizes = [2, 32], strides = [1, 1]} : vector<2x128xf32> to vector<2x32xf32>
    %385 = arith.negf %384 : vector<2x32xf32>
    %386 = math.exp %385 : vector<2x32xf32>
    %cst_64 = arith.constant 1.000000e+00 : f32
    %387 = vector.broadcast %cst_64 : f32 to vector<2x32xf32>
    %388 = arith.addf %387, %386 : vector<2x32xf32>
    %389 = arith.divf %387, %388 : vector<2x32xf32>
    %390 = arith.mulf %381, %334 : vector<2x32xf32>
    %391 = arith.mulf %375, %383 : vector<2x32xf32>
    %392 = arith.addf %390, %391 : vector<2x32xf32>
    %393 = math.tanh %392 : vector<2x32xf32>
    %394 = arith.mulf %389, %393 : vector<2x32xf32>
    %395 = arith.maximumf %337, %369 : vector<2x32xf32>
    %396 = arith.maximumf %338, %394 : vector<2x32xf32>
    %397 = vector.extract_strided_slice %273 {offsets = [4, 0], sizes = [2, 128], strides = [1, 1]} : vector<16x128xf32> to vector<2x128xf32>
    %cst_65 = arith.constant dense<0.000000e+00> : vector<2x128xf32>
    %398 = tpu.matmul %369, %276, %cst_65 {dimension_numbers = #tpu.dot_dimension_numbers<[1], [0], [0], [1], [0, 0, 1, 1], [], []>} : vector<2x32xf32>, vector<32x128xf32>, vector<2x128xf32> -> vector<2x128xf32>
    %399 = arith.addf %397, %398 : vector<2x128xf32>
    %400 = vector.extract_strided_slice %274 {offsets = [10, 0], sizes = [2, 128], strides = [1, 1]} : vector<16x128xf32> to vector<2x128xf32>
    %cst_66 = arith.constant dense<0.000000e+00> : vector<2x128xf32>
    %401 = tpu.matmul %394, %278, %cst_66 {dimension_numbers = #tpu.dot_dimension_numbers<[1], [0], [0], [1], [0, 0, 1, 1], [], []>} : vector<2x32xf32>, vector<32x128xf32>, vector<2x128xf32> -> vector<2x128xf32>
    %402 = arith.addf %400, %401 : vector<2x128xf32>
    %403 = vector.extract_strided_slice %399 {offsets = [0, 0], sizes = [2, 32], strides = [1, 1]} : vector<2x128xf32> to vector<2x32xf32>
    %404 = arith.negf %403 : vector<2x32xf32>
    %405 = math.exp %404 : vector<2x32xf32>
    %cst_67 = arith.constant 1.000000e+00 : f32
    %406 = vector.broadcast %cst_67 : f32 to vector<2x32xf32>
    %407 = arith.addf %406, %405 : vector<2x32xf32>
    %408 = arith.divf %406, %407 : vector<2x32xf32>
    %409 = vector.extract_strided_slice %399 {offsets = [0, 32], sizes = [2, 32], strides = [1, 1]} : vector<2x128xf32> to vector<2x32xf32>
    %410 = arith.negf %409 : vector<2x32xf32>
    %411 = math.exp %410 : vector<2x32xf32>
    %cst_68 = arith.constant 1.000000e+00 : f32
    %412 = vector.broadcast %cst_68 : f32 to vector<2x32xf32>
    %413 = arith.addf %412, %411 : vector<2x32xf32>
    %414 = arith.divf %412, %413 : vector<2x32xf32>
    %415 = vector.extract_strided_slice %399 {offsets = [0, 64], sizes = [2, 32], strides = [1, 1]} : vector<2x128xf32> to vector<2x32xf32>
    %416 = math.tanh %415 : vector<2x32xf32>
    %417 = vector.extract_strided_slice %399 {offsets = [0, 96], sizes = [2, 32], strides = [1, 1]} : vector<2x128xf32> to vector<2x32xf32>
    %418 = arith.negf %417 : vector<2x32xf32>
    %419 = math.exp %418 : vector<2x32xf32>
    %cst_69 = arith.constant 1.000000e+00 : f32
    %420 = vector.broadcast %cst_69 : f32 to vector<2x32xf32>
    %421 = arith.addf %420, %419 : vector<2x32xf32>
    %422 = arith.divf %420, %421 : vector<2x32xf32>
    %423 = arith.mulf %414, %367 : vector<2x32xf32>
    %424 = arith.mulf %408, %416 : vector<2x32xf32>
    %425 = arith.addf %423, %424 : vector<2x32xf32>
    %426 = math.tanh %425 : vector<2x32xf32>
    %427 = arith.mulf %422, %426 : vector<2x32xf32>
    %428 = vector.extract_strided_slice %402 {offsets = [0, 0], sizes = [2, 32], strides = [1, 1]} : vector<2x128xf32> to vector<2x32xf32>
    %429 = arith.negf %428 : vector<2x32xf32>
    %430 = math.exp %429 : vector<2x32xf32>
    %cst_70 = arith.constant 1.000000e+00 : f32
    %431 = vector.broadcast %cst_70 : f32 to vector<2x32xf32>
    %432 = arith.addf %431, %430 : vector<2x32xf32>
    %433 = arith.divf %431, %432 : vector<2x32xf32>
    %434 = vector.extract_strided_slice %402 {offsets = [0, 32], sizes = [2, 32], strides = [1, 1]} : vector<2x128xf32> to vector<2x32xf32>
    %435 = arith.negf %434 : vector<2x32xf32>
    %436 = math.exp %435 : vector<2x32xf32>
    %cst_71 = arith.constant 1.000000e+00 : f32
    %437 = vector.broadcast %cst_71 : f32 to vector<2x32xf32>
    %438 = arith.addf %437, %436 : vector<2x32xf32>
    %439 = arith.divf %437, %438 : vector<2x32xf32>
    %440 = vector.extract_strided_slice %402 {offsets = [0, 64], sizes = [2, 32], strides = [1, 1]} : vector<2x128xf32> to vector<2x32xf32>
    %441 = math.tanh %440 : vector<2x32xf32>
    %442 = vector.extract_strided_slice %402 {offsets = [0, 96], sizes = [2, 32], strides = [1, 1]} : vector<2x128xf32> to vector<2x32xf32>
    %443 = arith.negf %442 : vector<2x32xf32>
    %444 = math.exp %443 : vector<2x32xf32>
    %cst_72 = arith.constant 1.000000e+00 : f32
    %445 = vector.broadcast %cst_72 : f32 to vector<2x32xf32>
    %446 = arith.addf %445, %444 : vector<2x32xf32>
    %447 = arith.divf %445, %446 : vector<2x32xf32>
    %448 = arith.mulf %439, %392 : vector<2x32xf32>
    %449 = arith.mulf %433, %441 : vector<2x32xf32>
    %450 = arith.addf %448, %449 : vector<2x32xf32>
    %451 = math.tanh %450 : vector<2x32xf32>
    %452 = arith.mulf %447, %451 : vector<2x32xf32>
    %453 = arith.maximumf %395, %427 : vector<2x32xf32>
    %454 = arith.maximumf %396, %452 : vector<2x32xf32>
    %455 = vector.extract_strided_slice %273 {offsets = [6, 0], sizes = [2, 128], strides = [1, 1]} : vector<16x128xf32> to vector<2x128xf32>
    %cst_73 = arith.constant dense<0.000000e+00> : vector<2x128xf32>
    %456 = tpu.matmul %427, %276, %cst_73 {dimension_numbers = #tpu.dot_dimension_numbers<[1], [0], [0], [1], [0, 0, 1, 1], [], []>} : vector<2x32xf32>, vector<32x128xf32>, vector<2x128xf32> -> vector<2x128xf32>
    %457 = arith.addf %455, %456 : vector<2x128xf32>
    %458 = vector.extract_strided_slice %274 {offsets = [8, 0], sizes = [2, 128], strides = [1, 1]} : vector<16x128xf32> to vector<2x128xf32>
    %cst_74 = arith.constant dense<0.000000e+00> : vector<2x128xf32>
    %459 = tpu.matmul %452, %278, %cst_74 {dimension_numbers = #tpu.dot_dimension_numbers<[1], [0], [0], [1], [0, 0, 1, 1], [], []>} : vector<2x32xf32>, vector<32x128xf32>, vector<2x128xf32> -> vector<2x128xf32>
    %460 = arith.addf %458, %459 : vector<2x128xf32>
    %461 = vector.extract_strided_slice %457 {offsets = [0, 0], sizes = [2, 32], strides = [1, 1]} : vector<2x128xf32> to vector<2x32xf32>
    %462 = arith.negf %461 : vector<2x32xf32>
    %463 = math.exp %462 : vector<2x32xf32>
    %cst_75 = arith.constant 1.000000e+00 : f32
    %464 = vector.broadcast %cst_75 : f32 to vector<2x32xf32>
    %465 = arith.addf %464, %463 : vector<2x32xf32>
    %466 = arith.divf %464, %465 : vector<2x32xf32>
    %467 = vector.extract_strided_slice %457 {offsets = [0, 32], sizes = [2, 32], strides = [1, 1]} : vector<2x128xf32> to vector<2x32xf32>
    %468 = arith.negf %467 : vector<2x32xf32>
    %469 = math.exp %468 : vector<2x32xf32>
    %cst_76 = arith.constant 1.000000e+00 : f32
    %470 = vector.broadcast %cst_76 : f32 to vector<2x32xf32>
    %471 = arith.addf %470, %469 : vector<2x32xf32>
    %472 = arith.divf %470, %471 : vector<2x32xf32>
    %473 = vector.extract_strided_slice %457 {offsets = [0, 64], sizes = [2, 32], strides = [1, 1]} : vector<2x128xf32> to vector<2x32xf32>
    %474 = math.tanh %473 : vector<2x32xf32>
    %475 = vector.extract_strided_slice %457 {offsets = [0, 96], sizes = [2, 32], strides = [1, 1]} : vector<2x128xf32> to vector<2x32xf32>
    %476 = arith.negf %475 : vector<2x32xf32>
    %477 = math.exp %476 : vector<2x32xf32>
    %cst_77 = arith.constant 1.000000e+00 : f32
    %478 = vector.broadcast %cst_77 : f32 to vector<2x32xf32>
    %479 = arith.addf %478, %477 : vector<2x32xf32>
    %480 = arith.divf %478, %479 : vector<2x32xf32>
    %481 = arith.mulf %472, %425 : vector<2x32xf32>
    %482 = arith.mulf %466, %474 : vector<2x32xf32>
    %483 = arith.addf %481, %482 : vector<2x32xf32>
    %484 = math.tanh %483 : vector<2x32xf32>
    %485 = arith.mulf %480, %484 : vector<2x32xf32>
    %486 = vector.extract_strided_slice %460 {offsets = [0, 0], sizes = [2, 32], strides = [1, 1]} : vector<2x128xf32> to vector<2x32xf32>
    %487 = arith.negf %486 : vector<2x32xf32>
    %488 = math.exp %487 : vector<2x32xf32>
    %cst_78 = arith.constant 1.000000e+00 : f32
    %489 = vector.broadcast %cst_78 : f32 to vector<2x32xf32>
    %490 = arith.addf %489, %488 : vector<2x32xf32>
    %491 = arith.divf %489, %490 : vector<2x32xf32>
    %492 = vector.extract_strided_slice %460 {offsets = [0, 32], sizes = [2, 32], strides = [1, 1]} : vector<2x128xf32> to vector<2x32xf32>
    %493 = arith.negf %492 : vector<2x32xf32>
    %494 = math.exp %493 : vector<2x32xf32>
    %cst_79 = arith.constant 1.000000e+00 : f32
    %495 = vector.broadcast %cst_79 : f32 to vector<2x32xf32>
    %496 = arith.addf %495, %494 : vector<2x32xf32>
    %497 = arith.divf %495, %496 : vector<2x32xf32>
    %498 = vector.extract_strided_slice %460 {offsets = [0, 64], sizes = [2, 32], strides = [1, 1]} : vector<2x128xf32> to vector<2x32xf32>
    %499 = math.tanh %498 : vector<2x32xf32>
    %500 = vector.extract_strided_slice %460 {offsets = [0, 96], sizes = [2, 32], strides = [1, 1]} : vector<2x128xf32> to vector<2x32xf32>
    %501 = arith.negf %500 : vector<2x32xf32>
    %502 = math.exp %501 : vector<2x32xf32>
    %cst_80 = arith.constant 1.000000e+00 : f32
    %503 = vector.broadcast %cst_80 : f32 to vector<2x32xf32>
    %504 = arith.addf %503, %502 : vector<2x32xf32>
    %505 = arith.divf %503, %504 : vector<2x32xf32>
    %506 = arith.mulf %497, %450 : vector<2x32xf32>
    %507 = arith.mulf %491, %499 : vector<2x32xf32>
    %508 = arith.addf %506, %507 : vector<2x32xf32>
    %509 = math.tanh %508 : vector<2x32xf32>
    %510 = arith.mulf %505, %509 : vector<2x32xf32>
    %511 = arith.maximumf %453, %485 : vector<2x32xf32>
    %512 = arith.maximumf %454, %510 : vector<2x32xf32>
    %513 = vector.extract_strided_slice %273 {offsets = [8, 0], sizes = [2, 128], strides = [1, 1]} : vector<16x128xf32> to vector<2x128xf32>
    %cst_81 = arith.constant dense<0.000000e+00> : vector<2x128xf32>
    %514 = tpu.matmul %485, %276, %cst_81 {dimension_numbers = #tpu.dot_dimension_numbers<[1], [0], [0], [1], [0, 0, 1, 1], [], []>} : vector<2x32xf32>, vector<32x128xf32>, vector<2x128xf32> -> vector<2x128xf32>
    %515 = arith.addf %513, %514 : vector<2x128xf32>
    %516 = vector.extract_strided_slice %274 {offsets = [6, 0], sizes = [2, 128], strides = [1, 1]} : vector<16x128xf32> to vector<2x128xf32>
    %cst_82 = arith.constant dense<0.000000e+00> : vector<2x128xf32>
    %517 = tpu.matmul %510, %278, %cst_82 {dimension_numbers = #tpu.dot_dimension_numbers<[1], [0], [0], [1], [0, 0, 1, 1], [], []>} : vector<2x32xf32>, vector<32x128xf32>, vector<2x128xf32> -> vector<2x128xf32>
    %518 = arith.addf %516, %517 : vector<2x128xf32>
    %519 = vector.extract_strided_slice %515 {offsets = [0, 0], sizes = [2, 32], strides = [1, 1]} : vector<2x128xf32> to vector<2x32xf32>
    %520 = arith.negf %519 : vector<2x32xf32>
    %521 = math.exp %520 : vector<2x32xf32>
    %cst_83 = arith.constant 1.000000e+00 : f32
    %522 = vector.broadcast %cst_83 : f32 to vector<2x32xf32>
    %523 = arith.addf %522, %521 : vector<2x32xf32>
    %524 = arith.divf %522, %523 : vector<2x32xf32>
    %525 = vector.extract_strided_slice %515 {offsets = [0, 32], sizes = [2, 32], strides = [1, 1]} : vector<2x128xf32> to vector<2x32xf32>
    %526 = arith.negf %525 : vector<2x32xf32>
    %527 = math.exp %526 : vector<2x32xf32>
    %cst_84 = arith.constant 1.000000e+00 : f32
    %528 = vector.broadcast %cst_84 : f32 to vector<2x32xf32>
    %529 = arith.addf %528, %527 : vector<2x32xf32>
    %530 = arith.divf %528, %529 : vector<2x32xf32>
    %531 = vector.extract_strided_slice %515 {offsets = [0, 64], sizes = [2, 32], strides = [1, 1]} : vector<2x128xf32> to vector<2x32xf32>
    %532 = math.tanh %531 : vector<2x32xf32>
    %533 = vector.extract_strided_slice %515 {offsets = [0, 96], sizes = [2, 32], strides = [1, 1]} : vector<2x128xf32> to vector<2x32xf32>
    %534 = arith.negf %533 : vector<2x32xf32>
    %535 = math.exp %534 : vector<2x32xf32>
    %cst_85 = arith.constant 1.000000e+00 : f32
    %536 = vector.broadcast %cst_85 : f32 to vector<2x32xf32>
    %537 = arith.addf %536, %535 : vector<2x32xf32>
    %538 = arith.divf %536, %537 : vector<2x32xf32>
    %539 = arith.mulf %530, %483 : vector<2x32xf32>
    %540 = arith.mulf %524, %532 : vector<2x32xf32>
    %541 = arith.addf %539, %540 : vector<2x32xf32>
    %542 = math.tanh %541 : vector<2x32xf32>
    %543 = arith.mulf %538, %542 : vector<2x32xf32>
    %544 = vector.extract_strided_slice %518 {offsets = [0, 0], sizes = [2, 32], strides = [1, 1]} : vector<2x128xf32> to vector<2x32xf32>
    %545 = arith.negf %544 : vector<2x32xf32>
    %546 = math.exp %545 : vector<2x32xf32>
    %cst_86 = arith.constant 1.000000e+00 : f32
    %547 = vector.broadcast %cst_86 : f32 to vector<2x32xf32>
    %548 = arith.addf %547, %546 : vector<2x32xf32>
    %549 = arith.divf %547, %548 : vector<2x32xf32>
    %550 = vector.extract_strided_slice %518 {offsets = [0, 32], sizes = [2, 32], strides = [1, 1]} : vector<2x128xf32> to vector<2x32xf32>
    %551 = arith.negf %550 : vector<2x32xf32>
    %552 = math.exp %551 : vector<2x32xf32>
    %cst_87 = arith.constant 1.000000e+00 : f32
    %553 = vector.broadcast %cst_87 : f32 to vector<2x32xf32>
    %554 = arith.addf %553, %552 : vector<2x32xf32>
    %555 = arith.divf %553, %554 : vector<2x32xf32>
    %556 = vector.extract_strided_slice %518 {offsets = [0, 64], sizes = [2, 32], strides = [1, 1]} : vector<2x128xf32> to vector<2x32xf32>
    %557 = math.tanh %556 : vector<2x32xf32>
    %558 = vector.extract_strided_slice %518 {offsets = [0, 96], sizes = [2, 32], strides = [1, 1]} : vector<2x128xf32> to vector<2x32xf32>
    %559 = arith.negf %558 : vector<2x32xf32>
    %560 = math.exp %559 : vector<2x32xf32>
    %cst_88 = arith.constant 1.000000e+00 : f32
    %561 = vector.broadcast %cst_88 : f32 to vector<2x32xf32>
    %562 = arith.addf %561, %560 : vector<2x32xf32>
    %563 = arith.divf %561, %562 : vector<2x32xf32>
    %564 = arith.mulf %555, %508 : vector<2x32xf32>
    %565 = arith.mulf %549, %557 : vector<2x32xf32>
    %566 = arith.addf %564, %565 : vector<2x32xf32>
    %567 = math.tanh %566 : vector<2x32xf32>
    %568 = arith.mulf %563, %567 : vector<2x32xf32>
    %569 = arith.maximumf %511, %543 : vector<2x32xf32>
    %570 = arith.maximumf %512, %568 : vector<2x32xf32>
    %571 = vector.extract_strided_slice %273 {offsets = [10, 0], sizes = [2, 128], strides = [1, 1]} : vector<16x128xf32> to vector<2x128xf32>
    %cst_89 = arith.constant dense<0.000000e+00> : vector<2x128xf32>
    %572 = tpu.matmul %543, %276, %cst_89 {dimension_numbers = #tpu.dot_dimension_numbers<[1], [0], [0], [1], [0, 0, 1, 1], [], []>} : vector<2x32xf32>, vector<32x128xf32>, vector<2x128xf32> -> vector<2x128xf32>
    %573 = arith.addf %571, %572 : vector<2x128xf32>
    %574 = vector.extract_strided_slice %274 {offsets = [4, 0], sizes = [2, 128], strides = [1, 1]} : vector<16x128xf32> to vector<2x128xf32>
    %cst_90 = arith.constant dense<0.000000e+00> : vector<2x128xf32>
    %575 = tpu.matmul %568, %278, %cst_90 {dimension_numbers = #tpu.dot_dimension_numbers<[1], [0], [0], [1], [0, 0, 1, 1], [], []>} : vector<2x32xf32>, vector<32x128xf32>, vector<2x128xf32> -> vector<2x128xf32>
    %576 = arith.addf %574, %575 : vector<2x128xf32>
    %577 = vector.extract_strided_slice %573 {offsets = [0, 0], sizes = [2, 32], strides = [1, 1]} : vector<2x128xf32> to vector<2x32xf32>
    %578 = arith.negf %577 : vector<2x32xf32>
    %579 = math.exp %578 : vector<2x32xf32>
    %cst_91 = arith.constant 1.000000e+00 : f32
    %580 = vector.broadcast %cst_91 : f32 to vector<2x32xf32>
    %581 = arith.addf %580, %579 : vector<2x32xf32>
    %582 = arith.divf %580, %581 : vector<2x32xf32>
    %583 = vector.extract_strided_slice %573 {offsets = [0, 32], sizes = [2, 32], strides = [1, 1]} : vector<2x128xf32> to vector<2x32xf32>
    %584 = arith.negf %583 : vector<2x32xf32>
    %585 = math.exp %584 : vector<2x32xf32>
    %cst_92 = arith.constant 1.000000e+00 : f32
    %586 = vector.broadcast %cst_92 : f32 to vector<2x32xf32>
    %587 = arith.addf %586, %585 : vector<2x32xf32>
    %588 = arith.divf %586, %587 : vector<2x32xf32>
    %589 = vector.extract_strided_slice %573 {offsets = [0, 64], sizes = [2, 32], strides = [1, 1]} : vector<2x128xf32> to vector<2x32xf32>
    %590 = math.tanh %589 : vector<2x32xf32>
    %591 = vector.extract_strided_slice %573 {offsets = [0, 96], sizes = [2, 32], strides = [1, 1]} : vector<2x128xf32> to vector<2x32xf32>
    %592 = arith.negf %591 : vector<2x32xf32>
    %593 = math.exp %592 : vector<2x32xf32>
    %cst_93 = arith.constant 1.000000e+00 : f32
    %594 = vector.broadcast %cst_93 : f32 to vector<2x32xf32>
    %595 = arith.addf %594, %593 : vector<2x32xf32>
    %596 = arith.divf %594, %595 : vector<2x32xf32>
    %597 = arith.mulf %588, %541 : vector<2x32xf32>
    %598 = arith.mulf %582, %590 : vector<2x32xf32>
    %599 = arith.addf %597, %598 : vector<2x32xf32>
    %600 = math.tanh %599 : vector<2x32xf32>
    %601 = arith.mulf %596, %600 : vector<2x32xf32>
    %602 = vector.extract_strided_slice %576 {offsets = [0, 0], sizes = [2, 32], strides = [1, 1]} : vector<2x128xf32> to vector<2x32xf32>
    %603 = arith.negf %602 : vector<2x32xf32>
    %604 = math.exp %603 : vector<2x32xf32>
    %cst_94 = arith.constant 1.000000e+00 : f32
    %605 = vector.broadcast %cst_94 : f32 to vector<2x32xf32>
    %606 = arith.addf %605, %604 : vector<2x32xf32>
    %607 = arith.divf %605, %606 : vector<2x32xf32>
    %608 = vector.extract_strided_slice %576 {offsets = [0, 32], sizes = [2, 32], strides = [1, 1]} : vector<2x128xf32> to vector<2x32xf32>
    %609 = arith.negf %608 : vector<2x32xf32>
    %610 = math.exp %609 : vector<2x32xf32>
    %cst_95 = arith.constant 1.000000e+00 : f32
    %611 = vector.broadcast %cst_95 : f32 to vector<2x32xf32>
    %612 = arith.addf %611, %610 : vector<2x32xf32>
    %613 = arith.divf %611, %612 : vector<2x32xf32>
    %614 = vector.extract_strided_slice %576 {offsets = [0, 64], sizes = [2, 32], strides = [1, 1]} : vector<2x128xf32> to vector<2x32xf32>
    %615 = math.tanh %614 : vector<2x32xf32>
    %616 = vector.extract_strided_slice %576 {offsets = [0, 96], sizes = [2, 32], strides = [1, 1]} : vector<2x128xf32> to vector<2x32xf32>
    %617 = arith.negf %616 : vector<2x32xf32>
    %618 = math.exp %617 : vector<2x32xf32>
    %cst_96 = arith.constant 1.000000e+00 : f32
    %619 = vector.broadcast %cst_96 : f32 to vector<2x32xf32>
    %620 = arith.addf %619, %618 : vector<2x32xf32>
    %621 = arith.divf %619, %620 : vector<2x32xf32>
    %622 = arith.mulf %613, %566 : vector<2x32xf32>
    %623 = arith.mulf %607, %615 : vector<2x32xf32>
    %624 = arith.addf %622, %623 : vector<2x32xf32>
    %625 = math.tanh %624 : vector<2x32xf32>
    %626 = arith.mulf %621, %625 : vector<2x32xf32>
    %627 = arith.maximumf %569, %601 : vector<2x32xf32>
    %628 = arith.maximumf %570, %626 : vector<2x32xf32>
    %629 = vector.extract_strided_slice %273 {offsets = [12, 0], sizes = [2, 128], strides = [1, 1]} : vector<16x128xf32> to vector<2x128xf32>
    %cst_97 = arith.constant dense<0.000000e+00> : vector<2x128xf32>
    %630 = tpu.matmul %601, %276, %cst_97 {dimension_numbers = #tpu.dot_dimension_numbers<[1], [0], [0], [1], [0, 0, 1, 1], [], []>} : vector<2x32xf32>, vector<32x128xf32>, vector<2x128xf32> -> vector<2x128xf32>
    %631 = arith.addf %629, %630 : vector<2x128xf32>
    %632 = vector.extract_strided_slice %274 {offsets = [2, 0], sizes = [2, 128], strides = [1, 1]} : vector<16x128xf32> to vector<2x128xf32>
    %cst_98 = arith.constant dense<0.000000e+00> : vector<2x128xf32>
    %633 = tpu.matmul %626, %278, %cst_98 {dimension_numbers = #tpu.dot_dimension_numbers<[1], [0], [0], [1], [0, 0, 1, 1], [], []>} : vector<2x32xf32>, vector<32x128xf32>, vector<2x128xf32> -> vector<2x128xf32>
    %634 = arith.addf %632, %633 : vector<2x128xf32>
    %635 = vector.extract_strided_slice %631 {offsets = [0, 0], sizes = [2, 32], strides = [1, 1]} : vector<2x128xf32> to vector<2x32xf32>
    %636 = arith.negf %635 : vector<2x32xf32>
    %637 = math.exp %636 : vector<2x32xf32>
    %cst_99 = arith.constant 1.000000e+00 : f32
    %638 = vector.broadcast %cst_99 : f32 to vector<2x32xf32>
    %639 = arith.addf %638, %637 : vector<2x32xf32>
    %640 = arith.divf %638, %639 : vector<2x32xf32>
    %641 = vector.extract_strided_slice %631 {offsets = [0, 32], sizes = [2, 32], strides = [1, 1]} : vector<2x128xf32> to vector<2x32xf32>
    %642 = arith.negf %641 : vector<2x32xf32>
    %643 = math.exp %642 : vector<2x32xf32>
    %cst_100 = arith.constant 1.000000e+00 : f32
    %644 = vector.broadcast %cst_100 : f32 to vector<2x32xf32>
    %645 = arith.addf %644, %643 : vector<2x32xf32>
    %646 = arith.divf %644, %645 : vector<2x32xf32>
    %647 = vector.extract_strided_slice %631 {offsets = [0, 64], sizes = [2, 32], strides = [1, 1]} : vector<2x128xf32> to vector<2x32xf32>
    %648 = math.tanh %647 : vector<2x32xf32>
    %649 = vector.extract_strided_slice %631 {offsets = [0, 96], sizes = [2, 32], strides = [1, 1]} : vector<2x128xf32> to vector<2x32xf32>
    %650 = arith.negf %649 : vector<2x32xf32>
    %651 = math.exp %650 : vector<2x32xf32>
    %cst_101 = arith.constant 1.000000e+00 : f32
    %652 = vector.broadcast %cst_101 : f32 to vector<2x32xf32>
    %653 = arith.addf %652, %651 : vector<2x32xf32>
    %654 = arith.divf %652, %653 : vector<2x32xf32>
    %655 = arith.mulf %646, %599 : vector<2x32xf32>
    %656 = arith.mulf %640, %648 : vector<2x32xf32>
    %657 = arith.addf %655, %656 : vector<2x32xf32>
    %658 = math.tanh %657 : vector<2x32xf32>
    %659 = arith.mulf %654, %658 : vector<2x32xf32>
    %660 = vector.extract_strided_slice %634 {offsets = [0, 0], sizes = [2, 32], strides = [1, 1]} : vector<2x128xf32> to vector<2x32xf32>
    %661 = arith.negf %660 : vector<2x32xf32>
    %662 = math.exp %661 : vector<2x32xf32>
    %cst_102 = arith.constant 1.000000e+00 : f32
    %663 = vector.broadcast %cst_102 : f32 to vector<2x32xf32>
    %664 = arith.addf %663, %662 : vector<2x32xf32>
    %665 = arith.divf %663, %664 : vector<2x32xf32>
    %666 = vector.extract_strided_slice %634 {offsets = [0, 32], sizes = [2, 32], strides = [1, 1]} : vector<2x128xf32> to vector<2x32xf32>
    %667 = arith.negf %666 : vector<2x32xf32>
    %668 = math.exp %667 : vector<2x32xf32>
    %cst_103 = arith.constant 1.000000e+00 : f32
    %669 = vector.broadcast %cst_103 : f32 to vector<2x32xf32>
    %670 = arith.addf %669, %668 : vector<2x32xf32>
    %671 = arith.divf %669, %670 : vector<2x32xf32>
    %672 = vector.extract_strided_slice %634 {offsets = [0, 64], sizes = [2, 32], strides = [1, 1]} : vector<2x128xf32> to vector<2x32xf32>
    %673 = math.tanh %672 : vector<2x32xf32>
    %674 = vector.extract_strided_slice %634 {offsets = [0, 96], sizes = [2, 32], strides = [1, 1]} : vector<2x128xf32> to vector<2x32xf32>
    %675 = arith.negf %674 : vector<2x32xf32>
    %676 = math.exp %675 : vector<2x32xf32>
    %cst_104 = arith.constant 1.000000e+00 : f32
    %677 = vector.broadcast %cst_104 : f32 to vector<2x32xf32>
    %678 = arith.addf %677, %676 : vector<2x32xf32>
    %679 = arith.divf %677, %678 : vector<2x32xf32>
    %680 = arith.mulf %671, %624 : vector<2x32xf32>
    %681 = arith.mulf %665, %673 : vector<2x32xf32>
    %682 = arith.addf %680, %681 : vector<2x32xf32>
    %683 = math.tanh %682 : vector<2x32xf32>
    %684 = arith.mulf %679, %683 : vector<2x32xf32>
    %685 = arith.maximumf %627, %659 : vector<2x32xf32>
    %686 = arith.maximumf %628, %684 : vector<2x32xf32>
    %687 = vector.extract_strided_slice %273 {offsets = [14, 0], sizes = [2, 128], strides = [1, 1]} : vector<16x128xf32> to vector<2x128xf32>
    %cst_105 = arith.constant dense<0.000000e+00> : vector<2x128xf32>
    %688 = tpu.matmul %659, %276, %cst_105 {dimension_numbers = #tpu.dot_dimension_numbers<[1], [0], [0], [1], [0, 0, 1, 1], [], []>} : vector<2x32xf32>, vector<32x128xf32>, vector<2x128xf32> -> vector<2x128xf32>
    %689 = arith.addf %687, %688 : vector<2x128xf32>
    %690 = vector.extract_strided_slice %274 {offsets = [0, 0], sizes = [2, 128], strides = [1, 1]} : vector<16x128xf32> to vector<2x128xf32>
    %cst_106 = arith.constant dense<0.000000e+00> : vector<2x128xf32>
    %691 = tpu.matmul %684, %278, %cst_106 {dimension_numbers = #tpu.dot_dimension_numbers<[1], [0], [0], [1], [0, 0, 1, 1], [], []>} : vector<2x32xf32>, vector<32x128xf32>, vector<2x128xf32> -> vector<2x128xf32>
    %692 = arith.addf %690, %691 : vector<2x128xf32>
    %693 = vector.extract_strided_slice %689 {offsets = [0, 0], sizes = [2, 32], strides = [1, 1]} : vector<2x128xf32> to vector<2x32xf32>
    %694 = arith.negf %693 : vector<2x32xf32>
    %695 = math.exp %694 : vector<2x32xf32>
    %cst_107 = arith.constant 1.000000e+00 : f32
    %696 = vector.broadcast %cst_107 : f32 to vector<2x32xf32>
    %697 = arith.addf %696, %695 : vector<2x32xf32>
    %698 = arith.divf %696, %697 : vector<2x32xf32>
    %699 = vector.extract_strided_slice %689 {offsets = [0, 32], sizes = [2, 32], strides = [1, 1]} : vector<2x128xf32> to vector<2x32xf32>
    %700 = arith.negf %699 : vector<2x32xf32>
    %701 = math.exp %700 : vector<2x32xf32>
    %cst_108 = arith.constant 1.000000e+00 : f32
    %702 = vector.broadcast %cst_108 : f32 to vector<2x32xf32>
    %703 = arith.addf %702, %701 : vector<2x32xf32>
    %704 = arith.divf %702, %703 : vector<2x32xf32>
    %705 = vector.extract_strided_slice %689 {offsets = [0, 64], sizes = [2, 32], strides = [1, 1]} : vector<2x128xf32> to vector<2x32xf32>
    %706 = math.tanh %705 : vector<2x32xf32>
    %707 = vector.extract_strided_slice %689 {offsets = [0, 96], sizes = [2, 32], strides = [1, 1]} : vector<2x128xf32> to vector<2x32xf32>
    %708 = arith.negf %707 : vector<2x32xf32>
    %709 = math.exp %708 : vector<2x32xf32>
    %cst_109 = arith.constant 1.000000e+00 : f32
    %710 = vector.broadcast %cst_109 : f32 to vector<2x32xf32>
    %711 = arith.addf %710, %709 : vector<2x32xf32>
    %712 = arith.divf %710, %711 : vector<2x32xf32>
    %713 = arith.mulf %704, %657 : vector<2x32xf32>
    %714 = arith.mulf %698, %706 : vector<2x32xf32>
    %715 = arith.addf %713, %714 : vector<2x32xf32>
    %716 = math.tanh %715 : vector<2x32xf32>
    %717 = arith.mulf %712, %716 : vector<2x32xf32>
    %718 = vector.extract_strided_slice %692 {offsets = [0, 0], sizes = [2, 32], strides = [1, 1]} : vector<2x128xf32> to vector<2x32xf32>
    %719 = arith.negf %718 : vector<2x32xf32>
    %720 = math.exp %719 : vector<2x32xf32>
    %cst_110 = arith.constant 1.000000e+00 : f32
    %721 = vector.broadcast %cst_110 : f32 to vector<2x32xf32>
    %722 = arith.addf %721, %720 : vector<2x32xf32>
    %723 = arith.divf %721, %722 : vector<2x32xf32>
    %724 = vector.extract_strided_slice %692 {offsets = [0, 32], sizes = [2, 32], strides = [1, 1]} : vector<2x128xf32> to vector<2x32xf32>
    %725 = arith.negf %724 : vector<2x32xf32>
    %726 = math.exp %725 : vector<2x32xf32>
    %cst_111 = arith.constant 1.000000e+00 : f32
    %727 = vector.broadcast %cst_111 : f32 to vector<2x32xf32>
    %728 = arith.addf %727, %726 : vector<2x32xf32>
    %729 = arith.divf %727, %728 : vector<2x32xf32>
    %730 = vector.extract_strided_slice %692 {offsets = [0, 64], sizes = [2, 32], strides = [1, 1]} : vector<2x128xf32> to vector<2x32xf32>
    %731 = math.tanh %730 : vector<2x32xf32>
    %732 = vector.extract_strided_slice %692 {offsets = [0, 96], sizes = [2, 32], strides = [1, 1]} : vector<2x128xf32> to vector<2x32xf32>
    %733 = arith.negf %732 : vector<2x32xf32>
    %734 = math.exp %733 : vector<2x32xf32>
    %cst_112 = arith.constant 1.000000e+00 : f32
    %735 = vector.broadcast %cst_112 : f32 to vector<2x32xf32>
    %736 = arith.addf %735, %734 : vector<2x32xf32>
    %737 = arith.divf %735, %736 : vector<2x32xf32>
    %738 = arith.mulf %729, %682 : vector<2x32xf32>
    %739 = arith.mulf %723, %731 : vector<2x32xf32>
    %740 = arith.addf %738, %739 : vector<2x32xf32>
    %741 = math.tanh %740 : vector<2x32xf32>
    %742 = arith.mulf %737, %741 : vector<2x32xf32>
    %743 = arith.maximumf %685, %717 : vector<2x32xf32>
    %744 = arith.maximumf %686, %742 : vector<2x32xf32>
    %745 = tpu.concatenate %743, %744 in 1 : vector<2x32xf32>, vector<2x32xf32> -> vector<2x64xf32>
    %c0_113 = arith.constant 0 : index
    %c0_114 = arith.constant 0 : index
    %746 = vector.load %arg8[%c0_113, %c0_114] : memref<64x64xf32, #tpu.memory_space<vmem>>, vector<64x64xf32>
    %cst_115 = arith.constant dense<0.000000e+00> : vector<2x64xf32>
    %747 = tpu.matmul %745, %746, %cst_115 {dimension_numbers = #tpu.dot_dimension_numbers<[1], [0], [0], [1], [0, 0, 1, 1], [], []>} : vector<2x64xf32>, vector<64x64xf32>, vector<2x64xf32> -> vector<2x64xf32>
    %c0_116 = arith.constant 0 : index
    %c0_117 = arith.constant 0 : index
    %748 = vector.load %arg9[%c0_116, %c0_117] : memref<1x64xf32, #tpu.memory_space<vmem>>, vector<1x64xf32>
    %749 = vector.broadcast %748 : vector<1x64xf32> to vector<2x64xf32>
    %750 = arith.addf %747, %749 : vector<2x64xf32>
    %cst_118 = arith.constant 0.000000e+00 : f32
    %751 = vector.broadcast %cst_118 : f32 to vector<2x64xf32>
    %752 = arith.maximumf %750, %751 : vector<2x64xf32>
    %753 = arith.addf %745, %752 : vector<2x64xf32>
    %c0_119 = arith.constant 0 : index
    %c0_120 = arith.constant 0 : index
    %754 = vector.load %arg10[%c0_119, %c0_120] : memref<1x64xf32, #tpu.memory_space<vmem>>, vector<1x64xf32>
    %755 = vector.broadcast %754 : vector<1x64xf32> to vector<2x64xf32>
    %756 = arith.mulf %753, %755 : vector<2x64xf32>
    %cst_121 = arith.constant dense<0.000000e+00> : vector<2xf32>
    %757 = vector.multi_reduction <add>, %756, %cst_121 [1] : vector<2x64xf32> to vector<2xf32>
    %758 = vector.shape_cast %757 : vector<2xf32> to vector<2x1xf32>
    %c0_122 = arith.constant 0 : index
    %c0_123 = arith.constant 0 : index
    %759 = vector.load %arg11[%c0_122, %c0_123] : memref<1x1xf32, #tpu.memory_space<vmem>>, vector<1x1xf32>
    %760 = vector.broadcast %759 : vector<1x1xf32> to vector<2x1xf32>
    %761 = arith.addf %758, %760 : vector<2x1xf32>
    %c0_124 = arith.constant 0 : index
    %c0_125 = arith.constant 0 : index
    %762 = vector.load %arg12[%c0_124, %c0_125] : memref<2x1xf32, #tpu.memory_space<vmem>>, vector<2x1xf32>
    tpu.vector_store %arg12[%c0_124, %c0_125], %761 {strides = array<i32>} : memref<2x1xf32, #tpu.memory_space<vmem>>, vector<2x1xf32>,
    return
  }
  func.func @transform_0(%arg0: i32) -> (i32, i32) {
    %c0_i32 = arith.constant 0 : i32
    %c0_i32_0 = arith.constant 0 : i32
    %c0_i32_1 = arith.constant 0 : i32
    return %c0_i32, %c0_i32_0 : i32, i32
  }
  func.func @transform_1(%arg0: i32) -> (i32, i32, i32) {
    %c0_i32 = arith.constant 0 : i32
    %c0_i32_0 = arith.constant 0 : i32
    %c0_i32_1 = arith.constant 0 : i32
    %c0_i32_2 = arith.constant 0 : i32
    return %c0_i32, %c0_i32_0, %c0_i32_1 : i32, i32, i32
  }
  func.func @transform_2(%arg0: i32) -> (i32, i32) {
    %c0_i32 = arith.constant 0 : i32
    %c0_i32_0 = arith.constant 0 : i32
    %c0_i32_1 = arith.constant 0 : i32
    return %c0_i32, %c0_i32_0 : i32, i32
  }
  func.func @transform_3(%arg0: i32) -> (i32, i32) {
    %c0_i32 = arith.constant 0 : i32
    %c0_i32_0 = arith.constant 0 : i32
    %c0_i32_1 = arith.constant 0 : i32
    return %c0_i32, %c0_i32_0 : i32, i32
  }
  func.func @transform_4(%arg0: i32) -> (i32, i32) {
    %c0_i32 = arith.constant 0 : i32
    %c0_i32_0 = arith.constant 0 : i32
    %c0_i32_1 = arith.constant 0 : i32
    return %c0_i32, %c0_i32_0 : i32, i32
  }
  func.func @transform_5(%arg0: i32) -> (i32, i32) {
    %c0_i32 = arith.constant 0 : i32
    %c0_i32_0 = arith.constant 0 : i32
    %c0_i32_1 = arith.constant 0 : i32
    return %c0_i32, %c0_i32_0 : i32, i32
  }
  func.func @transform_6(%arg0: i32) -> (i32, i32, i32) {
    %c0_i32 = arith.constant 0 : i32
    %c0_i32_0 = arith.constant 0 : i32
    %c0_i32_1 = arith.constant 0 : i32
    %c0_i32_2 = arith.constant 0 : i32
    return %c0_i32, %c0_i32_0, %c0_i32_1 : i32, i32, i32
  }
  func.func @transform_7(%arg0: i32) -> (i32, i32) {
    %c0_i32 = arith.constant 0 : i32
    %c0_i32_0 = arith.constant 0 : i32
    %c0_i32_1 = arith.constant 0 : i32
    return %c0_i32, %c0_i32_0 : i32, i32
  }
  func.func @transform_8(%arg0: i32) -> (i32, i32) {
    %c0_i32 = arith.constant 0 : i32
    %c0_i32_0 = arith.constant 0 : i32
    %c0_i32_1 = arith.constant 0 : i32
    return %c0_i32, %c0_i32_0 : i32, i32
  }
  func.func @transform_9(%arg0: i32) -> (i32, i32) {
    %c0_i32 = arith.constant 0 : i32
    %c0_i32_0 = arith.constant 0 : i32
    %c0_i32_1 = arith.constant 0 : i32
    return %c0_i32, %c0_i32_0 : i32, i32
  }
  func.func @transform_10(%arg0: i32) -> (i32, i32) {
    %c0_i32 = arith.constant 0 : i32
    %c0_i32_0 = arith.constant 0 : i32
    %c0_i32_1 = arith.constant 0 : i32
    return %c0_i32, %c0_i32_0 : i32, i32
  }
  func.func @transform_11(%arg0: i32) -> (i32, i32) {
    %c0_i32 = arith.constant 0 : i32
    %c0_i32_0 = arith.constant 0 : i32
    %c0_i32_1 = arith.constant 0 : i32
    return %c0_i32, %c0_i32_0 : i32, i32
  }
}

</mosaic_0001>

<bundles_post_ra>
// kernel: sppseqnet_forward.1
= control target key start
LH: loop header
LB: loop body
LE: loop exit
PB: predicated region body
PF: predicated region fallthrough
CT: control target
= control target key end

     0   :  { %vm186_vm0 = vcmask 1045504   ;;  %vm89_vm1 = vcmask 441344   ;;  %s5570_s16 = smov 112   ;;  %s5572_s22 = smov 64   ;;  %vm5574_vm2 = vmmov 0   ;;  %vm2369_vm3 = vcmask 261120   ;;  %s7606_s1 = inlined_call_operand.vmem [shape: f32[3,54,128], index: 1, kind: input, shape index: {}]   ;;  %s7607_s0 = inlined_call_operand.vmem [shape: f32[288,54], index: 0, kind: input, shape index: {}]   ;;  %s7608_s2 = inlined_call_operand.vmem [shape: f32[1,128], index: 2, kind: input, shape index: {}]   ;;  %s7609_s3 = inlined_call_operand.vmem [shape: f32[1920,32], index: 3, kind: input, shape index: {}]   ;;  %s7610_s4 = inlined_call_operand.vmem [shape: f32[32,256], index: 4, kind: input, shape index: {}]   ;;  %s7611_s6 = inlined_call_operand.vmem [shape: f32[2,32,128], index: 6, kind: input, shape index: {}]   ;;  %s7612_s5 = inlined_call_operand.vmem [shape: f32[1,256], index: 5, kind: input, shape index: {}]   ;;  %s7613_s7 = inlined_call_operand.vmem [shape: f32[64,64], index: 7, kind: input, shape index: {}]   ;;  %s7614_s10 = inlined_call_operand.<no memory space> [shape: f32[1,1], index: 10, kind: input, shape index: {}]   ;;  %s7615_s8 = inlined_call_operand.vmem [shape: f32[1,64], index: 8, kind: input, shape index: {}]   ;;  %s7616_s9 = inlined_call_operand.vmem [shape: f32[1,64], index: 9, kind: input, shape index: {}]   ;;  %s7617_s11 = inlined_call_operand.vmem [shape: f32[2,1], index: 11, kind: output, shape index: {}]  }
   0x1   :  { %v4311_v0 = vld [vmem:[%s7606_s1 + $0x68] sm:$0x3f]  ;;  %v78_v1 = vld [vmem:[%s7606_s1 + $0x30] sm:$0x3f]  ;;  %v4310_v2 = vld [vmem:[%s7606_s1 + $0x60] sm:$0xff]  ;;  %vm1184_vm4 = vcmask 523264  }
   0x2   :  { %4949 = vmatprep.subr.msk.mxu0 %vm186_vm0, %v4311_v0  ;;  %5011 = vmatprep.subr.msk.mxu1 %vm186_vm0, %v78_v1  ;;  %v77_v3 = vld [vmem:[%s7606_s1 + $0x28] sm:$0xff]  ;;  %v4309_v4 = vld [vmem:[%s7606_s1 + $0x58] sm:$0xff]  ;;  %v76_v5 = vld [vmem:[%s7606_s1 + $0x20] sm:$0xff]  ;;  %vm4287_vm5 = vcmask 517120   ;;  %vm4299_vm6 = vcmask 1024  }
   0x3   :  { %4950 = vmatpush3.msk.msra.mxu0 %vm186_vm0, %v4311_v0  ;;  %5012 = vmatpush3.msk.msra.mxu1 %vm186_vm0, %v78_v1  ;;  %v4308_v6 = vld [vmem:[%s7606_s1 + $0x50] sm:$0xff]  ;;  %v75_v7 = vld [vmem:[%s7606_s1 + $0x18] sm:$0xff]  ;;  %v4307_v8 = vld [vmem:[%s7606_s1 + $0x48] sm:$0xff] }
   0x4   :  { %4951 = vmatprep.subr.mxu0 %v4310_v2  ;;  %5013 = vmatprep.subr.mxu1 %v77_v3  ;;  %v74_v9 = vld [vmem:[%s7606_s1 + $0x10] sm:$0xff]  ;;  %v4306_v10 = vld [vmem:[%s7606_s1 + $0x40] sm:$0xff]  ;;  %v73_v11 = vld [vmem:[%s7606_s1 + $0x8] sm:$0xff] }
   0x5   :  { %4952 = vmatpush3.msra.mxu0 %v4310_v2  ;;  %5014 = vmatpush3.msra.mxu1 %v77_v3  ;;  %v4305_v12 = vld [vmem:[%s7606_s1 + $0x38] sm:$0xff]  ;;  %v72_v13 = vld [vmem:[%s7606_s1] sm:$0xff]  ;;  %v42_v14 = vld [vmem:[%s7607_s0 + $0x10] sm:$0xff] }
   0x6   :  { %4953 = vmatprep.subr.mxu0 %v4309_v4  ;;  %5015 = vmatprep.subr.mxu1 %v76_v5  ;;  %v40_v15 = vld [vmem:[%s7607_s0] sm:$0xff]  ;;  %v43_v16 = vld [vmem:[%s7607_s0 + $0x18] sm:$0xff]  ;;  %v41_v17 = vld [vmem:[%s7607_s0 + $0x8] sm:$0xff] }
   0x7   :  { %4954 = vmatpush3.msra.mxu0 %v4309_v4  ;;  %5016 = vmatpush3.msra.mxu1 %v76_v5  ;;  %v4384_v18 = vld [vmem:[%s7606_s1 + $0xa0] sm:$0x3f]  ;;  %v4383_v20 = vld [vmem:[%s7606_s1 + $0x98] sm:$0xff]  ;;  %v5715_v21 = vld [vmem:[%s7607_s0 + $0x28] sm:$0xff] }
   0x8   :  { %4955 = vmatprep.subr.mxu0 %v4308_v6  ;;  %5017 = vmatprep.subr.mxu1 %v75_v7  ;;  %v5701_v19 = vld [vmem:[%s7607_s0 + $0x20] sm:$0xff]  ;;  %v5722_v22 = vld [vmem:[%s7607_s0 + $0x30] sm:$0xff]  ;;  %v5737_v24 = vld [vmem:[%s7607_s0 + $0x38] sm:$0xff] }
   0x9   :  { %4956 = vmatpush3.msra.mxu0 %v4308_v6  ;;  %5018 = vmatpush3.msra.mxu1 %v75_v7  ;;  %v4382_v23 = vld [vmem:[%s7606_s1 + $0x90] sm:$0xff]  ;;  %v5742_v25 = vld [vmem:[%s7607_s0 + $0x40] sm:$0xff]  ;;  %v4381_v26 = vld [vmem:[%s7606_s1 + $0x88] sm:$0xff] }
   0xa   :  { %4957 = vmatprep.subr.mxu0 %v4307_v8  ;;  %5019 = vmatprep.subr.mxu1 %v74_v9  ;;  %v5758_v27 = vld [vmem:[%s7607_s0 + $0x48] sm:$0xff]  ;;  %v5763_v28 = vld [vmem:[%s7607_s0 + $0x50] sm:$0xff]  ;;  %v4380_v29 = vld [vmem:[%s7606_s1 + $0x80] sm:$0xff] }
   0xb   :  { %4958 = vmatpush3.msra.mxu0 %v4307_v8  ;;  %5020 = vmatpush3.msra.mxu1 %v74_v9  ;;  %v5779_v30 = vld [vmem:[%s7607_s0 + $0x58] sm:$0xff]  ;;  %v5784_v31 = vld [vmem:[%s7607_s0 + $0x60] sm:$0xff]  ;;  %v5800_v33 = vld [vmem:[%s7607_s0 + $0x68] sm:$0xff] }
   0xc   :  { %4959 = vmatprep.subr.mxu0 %v4306_v10  ;;  %5021 = vmatprep.subr.mxu1 %v73_v11  ;;  %v4379_v32 = vld [vmem:[%s7606_s1 + $0x78] sm:$0xff]  ;;  %v5805_v34 = vld [vmem:[%s7607_s0 + $0x70] sm:$0xff]  ;;  %v5826_v37 = vld [vmem:[%s7607_s0 + $0x80] sm:$0xff] }
   0xd   :  { %4960 = vmatpush3.msra.mxu0 %v4306_v10  ;;  %5022 = vmatpush3.msra.mxu1 %v73_v11  ;;  %v4378_v35 = vld [vmem:[%s7606_s1 + $0x70] sm:$0xff]  ;;  %v5821_v36 = vld [vmem:[%s7607_s0 + $0x78] sm:$0xff]  ;;  %v5839_v38 = vld [vmem:[%s7607_s0 + $0x88] sm:$0xff]  ;;  %s5571_s1 = smov 96  }
   0xe   :  { %4961 = vmatprep.subr.mxu0 %v4305_v12  ;;  %5023 = vmatprep.subr.mxu1 %v72_v13  ;;  %v5844_v39 = vld [vmem:[%s7607_s0 + $0x90] sm:$0xff]  ;;  %v59_v40 = vld [vmem:[%s7607_s0 + $0x98] sm:$0xff]  ;;  %v60_v41 = vld [vmem:[%s7607_s0 + $0xa0] sm:$0xff] }
   0xf   :  { %4962 = vmatpush3.msra.mxu0 %v4305_v12  ;;  %4963 = vmatprep.mubr.msk.f32.mxu0 %vm89_vm1, %v42_v14  ;;  %v61_v42 = vld [vmem:[%s7607_s0 + $0xa8] sm:$0xff]  ;;  %v62_v43 = vld [vmem:[%s7607_s0 + $0xb0] sm:$0xff]  ;;  %v63_v44 = vld [vmem:[%s7607_s0 + $0xb8] sm:$0xff] }
  0x10   :  { %5024 = vmatpush3.msra.mxu1 %v72_v13  ;;  %5025 = vmatprep.mubr.msk.f32.mxu1 %vm89_vm1, %v40_v15  ;;  %v64_v45 = vld [vmem:[%s7607_s0 + $0xc0] sm:$0xff]  ;;  %v65_v46 = vld [vmem:[%s7607_s0 + $0xc8] sm:$0xff]  ;;  %v66_v47 = vld [vmem:[%s7607_s0 + $0xd0] sm:$0xff] }
  0x11   :  { %4964 = vmatmul.mubr.msk.f32.vlgmr.msra.gmra.mxu0 %vm89_vm1, %v43_v16  ;;  %5026 = vmatmul.mubr.msk.f32.vlgmr.msra.gmra.mxu1 %vm89_vm1, %v41_v17  ;;  %v67_v48 = vld [vmem:[%s7607_s0 + $0xd8] sm:$0xff]  ;;  %v68_v49 = vld [vmem:[%s7607_s0 + $0xe0] sm:$0xff]  ;;  %v69_v50 = vld [vmem:[%s7607_s0 + $0xe8] sm:$0xff] }
  0x12   :  { %5073 = vmatprep.subr.msk.mxu0 %vm186_vm0, %v4384_v18  ;;  %4966 = vmatprep.mubr.msk.f32.mxu0 %vm89_vm1, %v5701_v19  ;;  %v70_v51 = vld [vmem:[%s7607_s0 + $0xf0] sm:$0xff]  ;;  %v71_v52 = vld [vmem:[%s7607_s0 + $0xf8] sm:$0xff]  ;;  %v79_v53 = vld [vmem:[%s7607_s0 + $0x100] sm:$0xff] }
  0x13   :  { %5074 = vmatpush3.msk.msra.mxu0 %vm186_vm0, %v4384_v18  ;;  %5028 = vmatprep.mubr.msk.f32.mxu1 %vm89_vm1, %v42_v14  ;;  %v80_v54 = vld [vmem:[%s7607_s0 + $0x108] sm:$0xff]  ;;  %v679_v55 = vld [vmem:[%s7607_s0 + $0x110] sm:$0xff]  ;;  %v680_v56 = vld [vmem:[%s7607_s0 + $0x118] sm:$0xff] }
  0x14   :  { %5075 = vmatprep.subr.mxu0 %v4383_v20 }
  0x15   :  { %4967 = vmatmul.mubr.msk.f32.gmra.mxu0 %vm89_vm1, %v5715_v21  ;;  %5029 = vmatmul.mubr.msk.f32.gmra.mxu1 %vm89_vm1, %v43_v16 }
  0x16   :  { %4969 = vmatprep.mubr.msk.f32.mxu0 %vm89_vm1, %v5722_v22  ;;  %5031 = vmatprep.mubr.msk.f32.mxu1 %vm89_vm1, %v5701_v19 }
  0x17   :  { %5076 = vmatpush3.msra.mxu0 %v4383_v20 }
  0x18   :  { %5077 = vmatprep.subr.mxu0 %v4382_v23 }
  0x19   :  { %4970 = vmatmul.mubr.msk.f32.gmra.mxu0 %vm89_vm1, %v5737_v24  ;;  %5032 = vmatmul.mubr.msk.f32.gmra.mxu1 %vm89_vm1, %v5715_v21 }
  0x1a   :  { %4972 = vmatprep.mubr.msk.f32.mxu0 %vm89_vm1, %v5742_v25  ;;  %5034 = vmatprep.mubr.msk.f32.mxu1 %vm89_vm1, %v5722_v22 }
  0x1b   :  { %5078 = vmatpush3.msra.mxu0 %v4382_v23 }
  0x1c   :  { %5079 = vmatprep.subr.mxu0 %v4381_v26 }
  0x1d   :  { %4973 = vmatmul.mubr.msk.f32.gmra.mxu0 %vm89_vm1, %v5758_v27  ;;  %5035 = vmatmul.mubr.msk.f32.gmra.mxu1 %vm89_vm1, %v5737_v24 }
  0x1e   :  { %4975 = vmatprep.mubr.msk.f32.mxu0 %vm89_vm1, %v5763_v28  ;;  %5037 = vmatprep.mubr.msk.f32.mxu1 %vm89_vm1, %v5742_v25 }
  0x1f   :  { %5080 = vmatpush3.msra.mxu0 %v4381_v26 }
  0x20   :  { %5081 = vmatprep.subr.mxu0 %v4380_v29 }
  0x21   :  { %4976 = vmatmul.mubr.msk.f32.gmra.mxu0 %vm89_vm1, %v5779_v30  ;;  %5038 = vmatmul.mubr.msk.f32.gmra.mxu1 %vm89_vm1, %v5758_v27 }
  0x22   :  { %4978 = vmatprep.mubr.msk.f32.mxu0 %vm89_vm1, %v5784_v31  ;;  %5040 = vmatprep.mubr.msk.f32.mxu1 %vm89_vm1, %v5763_v28 }
  0x23   :  { %5082 = vmatpush3.msra.mxu0 %v4380_v29 }
  0x24   :  { %5083 = vmatprep.subr.mxu0 %v4379_v32 }
  0x25   :  { %4979 = vmatmul.mubr.msk.f32.gmra.mxu0 %vm89_vm1, %v5800_v33  ;;  %5041 = vmatmul.mubr.msk.f32.gmra.mxu1 %vm89_vm1, %v5779_v30 }
  0x26   :  { %4981 = vmatprep.mubr.msk.f32.mxu0 %vm89_vm1, %v5805_v34  ;;  %5043 = vmatprep.mubr.msk.f32.mxu1 %vm89_vm1, %v5784_v31 }
  0x27   :  { %5084 = vmatpush3.msra.mxu0 %v4379_v32 }
  0x28   :  { %5085 = vmatprep.subr.mxu0 %v4378_v35 }
  0x29   :  { %4982 = vmatmul.mubr.msk.f32.gmra.mxu0 %vm89_vm1, %v5821_v36  ;;  %5044 = vmatmul.mubr.msk.f32.gmra.mxu1 %vm89_vm1, %v5800_v33 }
  0x2a   :  { %4984 = vmatprep.mubr.msk.f32.mxu0 %vm89_vm1, %v5826_v37  ;;  %5046 = vmatprep.mubr.msk.f32.mxu1 %vm89_vm1, %v5805_v34 }
  0x2b   :  { %5086 = vmatpush3.msra.mxu0 %v4378_v35 }
  0x2d   :  { %4985 = vmatmul.mubr.msk.f32.gmra.mxu0 %vm89_vm1, %v5839_v38  ;;  %5047 = vmatmul.mubr.msk.f32.gmra.mxu1 %vm89_vm1, %v5821_v36 }
  0x2e   :  { %4987 = vmatprep.mubr.msk.f32.mxu0 %vm89_vm1, %v5844_v39  ;;  %5049 = vmatprep.mubr.msk.f32.mxu1 %vm89_vm1, %v5826_v37 }
  0x31   :  { %4988 = vmatmul.mubr.msk.f32.gmra.mxu0 %vm89_vm1, %v59_v40  ;;  %5050 = vmatmul.mubr.msk.f32.gmra.mxu1 %vm89_vm1, %v5839_v38 }
  0x32   :  { %4990 = vmatprep.mubr.msk.f32.mxu0 %vm89_vm1, %v60_v41  ;;  %5052 = vmatprep.mubr.msk.f32.mxu1 %vm89_vm1, %v5844_v39 }
  0x35   :  { %4991 = vmatmul.mubr.msk.f32.gmra.mxu0 %vm89_vm1, %v61_v42  ;;  %5053 = vmatmul.mubr.msk.f32.gmra.mxu1 %vm89_vm1, %v59_v40 }
  0x36   :  { %4993 = vmatprep.mubr.msk.f32.mxu0 %vm89_vm1, %v62_v43  ;;  %5055 = vmatprep.mubr.msk.f32.mxu1 %vm89_vm1, %v60_v41 }
  0x39   :  { %4994 = vmatmul.mubr.msk.f32.gmra.mxu0 %vm89_vm1, %v63_v44  ;;  %5056 = vmatmul.mubr.msk.f32.gmra.mxu1 %vm89_vm1, %v61_v42 }
  0x3a   :  { %4996 = vmatprep.mubr.msk.f32.mxu0 %vm89_vm1, %v64_v45  ;;  %5058 = vmatprep.mubr.msk.f32.mxu1 %vm89_vm1, %v62_v43 }
  0x3d   :  { %4997 = vmatmul.mubr.msk.f32.gmra.mxu0 %vm89_vm1, %v65_v46  ;;  %5059 = vmatmul.mubr.msk.f32.gmra.mxu1 %vm89_vm1, %v63_v44 }
  0x3e   :  { %4999 = vmatprep.mubr.msk.f32.mxu0 %vm89_vm1, %v66_v47  ;;  %5061 = vmatprep.mubr.msk.f32.mxu1 %vm89_vm1, %v64_v45 }
  0x41   :  { %5000 = vmatmul.mubr.msk.f32.gmra.mxu0 %vm89_vm1, %v67_v48  ;;  %5062 = vmatmul.mubr.msk.f32.gmra.mxu1 %vm89_vm1, %v65_v46 }
  0x42   :  { %5002 = vmatprep.mubr.msk.f32.mxu0 %vm89_vm1, %v68_v49  ;;  %5064 = vmatprep.mubr.msk.f32.mxu1 %vm89_vm1, %v66_v47 }
  0x45   :  { %5003 = vmatmul.mubr.msk.f32.gmra.mxu0 %vm89_vm1, %v69_v50  ;;  %5065 = vmatmul.mubr.msk.f32.gmra.mxu1 %vm89_vm1, %v67_v48 }
  0x46   :  { %5005 = vmatprep.mubr.msk.f32.mxu0 %vm89_vm1, %v70_v51  ;;  %5067 = vmatprep.mubr.msk.f32.mxu1 %vm89_vm1, %v68_v49 }
  0x49   :  { %5006 = vmatmul.mubr.msk.f32.gmra.mxu0 %vm89_vm1, %v71_v52  ;;  %5068 = vmatmul.mubr.msk.f32.gmra.mxu1 %vm89_vm1, %v69_v50 }
  0x4a   :  { %5008 = vmatprep.mubr.msk.f32.mxu0 %vm89_vm1, %v79_v53  ;;  %5070 = vmatprep.mubr.msk.f32.mxu1 %vm89_vm1, %v70_v51 }
  0x4d   :  { %5009 = vmatmul.mubr.msk.f32.gmra.mxu0 %vm89_vm1, %v80_v54  ;;  %5071 = vmatmul.mubr.msk.f32.gmra.mxu1 %vm89_vm1, %v71_v52 }
  0x4e   :  { %5087 = vmatprep.mubr.msk.f32.mxu0 %vm89_vm1, %v5701_v19 }
  0x51   :  { %5088 = vmatmul.mubr.msk.f32.vlgmr.msra.gmra.mxu0 %vm89_vm1, %v5715_v21 }
  0x52   :  { %5090 = vmatprep.mubr.msk.f32.mxu0 %vm89_vm1, %v5722_v22 }
  0x55   :  { %5091 = vmatmul.mubr.msk.f32.gmra.mxu0 %vm89_vm1, %v5737_v24 }
  0x56   :  { %5093 = vmatprep.mubr.msk.f32.mxu0 %vm89_vm1, %v5742_v25 }
  0x59   :  { %5094 = vmatmul.mubr.msk.f32.gmra.mxu0 %vm89_vm1, %v5758_v27 }
  0x5a   :  { %5096 = vmatprep.mubr.msk.f32.mxu0 %vm89_vm1, %v5763_v28 }
  0x5d   :  { %5097 = vmatmul.mubr.msk.f32.gmra.mxu0 %vm89_vm1, %v5779_v30 }
  0x5e   :  { %5099 = vmatprep.mubr.msk.f32.mxu0 %vm89_vm1, %v5784_v31 }
  0x61   :  { %5100 = vmatmul.mubr.msk.f32.gmra.mxu0 %vm89_vm1, %v5800_v33 }
  0x62   :  { %5102 = vmatprep.mubr.msk.f32.mxu0 %vm89_vm1, %v5805_v34 }
  0x65   :  { %5103 = vmatmul.mubr.msk.f32.gmra.mxu0 %vm89_vm1, %v5821_v36 }
  0x66   :  { %5105 = vmatprep.mubr.msk.f32.mxu0 %vm89_vm1, %v5826_v37 }
  0x69   :  { %5106 = vmatmul.mubr.msk.f32.gmra.mxu0 %vm89_vm1, %v5839_v38 }
  0x6a   :  { %5108 = vmatprep.mubr.msk.f32.mxu0 %vm89_vm1, %v5844_v39 }
  0x6d   :  { %5109 = vmatmul.mubr.msk.f32.gmra.mxu0 %vm89_vm1, %v59_v40 }
  0x6e   :  { %5111 = vmatprep.mubr.msk.f32.mxu0 %vm89_vm1, %v60_v41 }
  0x71   :  { %5112 = vmatmul.mubr.msk.f32.gmra.mxu0 %vm89_vm1, %v61_v42 }
  0x72   :  { %5114 = vmatprep.mubr.msk.f32.mxu0 %vm89_vm1, %v62_v43 }
  0x75   :  { %5115 = vmatmul.mubr.msk.f32.gmra.mxu0 %vm89_vm1, %v63_v44 }
  0x76   :  { %5117 = vmatprep.mubr.msk.f32.mxu0 %vm89_vm1, %v64_v45 }
  0x79   :  { %5118 = vmatmul.mubr.msk.f32.gmra.mxu0 %vm89_vm1, %v65_v46 }
  0x7a   :  { %5120 = vmatprep.mubr.msk.f32.mxu0 %vm89_vm1, %v66_v47  ;;  %v6061_v47 = vld [vmem:[%s7608_s2] ss:$0 sm:$0xff]  ;;  %s5569_s2 = smov 120  }
  0x7d   :  { %5121 = vmatmul.mubr.msk.f32.gmra.mxu0 %vm89_vm1, %v67_v48 }
  0x7e   :  { %5123 = vmatprep.mubr.msk.f32.mxu0 %vm89_vm1, %v68_v49 }
  0x81   :  { %5124 = vmatmul.mubr.msk.f32.gmra.mxu0 %vm89_vm1, %v69_v50 }
  0x82   :  { %5126 = vmatprep.mubr.msk.f32.mxu0 %vm89_vm1, %v70_v51 }
  0x85   :  { %5127 = vmatmul.mubr.msk.f32.gmra.mxu0 %vm89_vm1, %v71_v52 }
  0x86   :  { %5129 = vmatprep.mubr.msk.f32.mxu0 %vm89_vm1, %v79_v53 }
  0x89   :  { %5130 = vmatmul.mubr.msk.f32.gmra.mxu0 %vm89_vm1, %v80_v54 }
  0x8a   :  { %5132 = vmatprep.mubr.msk.f32.mxu0 %vm89_vm1, %v679_v55 }
  0x8d   :  { %5133 = vmatmul.mubr.msk.f32.gmra.mxu0 %vm89_vm1, %v680_v56 }
  0xd1   :  { %v4965_v57 = vpop.f32.mrf.mxu0  ;;  %v5027_v58 = vpop.f32.mrf.mxu1 }
  0xd2   :  { %v496_v42 = vadd.f32 %v5027_v58, %v4965_v57 }
  0xd3   :  { %v256_v59 = vpop.f32.mrf.mxu0  ;;  %v490_v60 = vpop.f32.mrf.mxu1 }
  0xd4   :  { %v491_v44 = vadd.f32 %v490_v60, %v256_v59 }
  0xd5   :  { %v4968_v61 = vpop.f32.mrf.mxu0  ;;  %v5030_v62 = vpop.f32.mrf.mxu1 }
  0xd6   :  { %v506_v49 = vadd.f32 %v5030_v62, %v4968_v61 }
  0xd7   :  { %v266_v63 = vpop.f32.mrf.mxu0  ;;  %v500_v1 = vpop.f32.mrf.mxu1 }
  0xd8   :  { %v501_v52 = vadd.f32 %v500_v1, %v266_v63 }
  0xd9   :  { %v4971_v0 = vpop.f32.mrf.mxu0  ;;  %v5033_v4 = vpop.f32.mrf.mxu1 }
  0xda   :  { %v516_v58 = vadd.f32 %v5033_v4, %v4971_v0 }
  0xdb   :  { %v276_v2 = vpop.f32.mrf.mxu0  ;;  %v510_v7 = vpop.f32.mrf.mxu1 }
  0xdd   :  { %v5984_v3 = vpop.f32.mrf.mxu0  ;;  %v5036_v10 = vpop.f32.mrf.mxu1 }
  0xdf   :  { %v5986_v5 = vpop.f32.mrf.mxu0  ;;  %v5998_v13 = vpop.f32.mrf.mxu1 }
  0xe1   :  { %v5988_v6 = vpop.f32.mrf.mxu0  ;;  %v6004_v16 = vpop.f32.mrf.mxu1 }
  0xe3   :  { %v5990_v8 = vpop.f32.mrf.mxu0  ;;  %v6010_v19 = vpop.f32.mrf.mxu1 }
  0xe5   :  { %v5992_v9 = vpop.f32.mrf.mxu0  ;;  %v6016_v22 = vpop.f32.mrf.mxu1 }
  0xe7   :  { %v5994_v11 = vpop.f32.mrf.mxu0  ;;  %v6022_v25 = vpop.f32.mrf.mxu1 }
  0xe9   :  { %v5996_v12 = vpop.f32.mrf.mxu0  ;;  %v6028_v28 = vpop.f32.mrf.mxu1 }
  0xeb   :  { %v6000_v14 = vpop.f32.mrf.mxu0  ;;  %v6034_v31 = vpop.f32.mrf.mxu1 }
  0xed   :  { %v6002_v15 = vpop.f32.mrf.mxu0  ;;  %v6040_v34 = vpop.f32.mrf.mxu1 }
  0xef   :  { %v6006_v17 = vpop.f32.mrf.mxu0  ;;  %v6046_v37 = vpop.f32.mrf.mxu1 }
  0xf1   :  { %v6008_v18 = vpop.f32.mrf.mxu0  ;;  %v6052_v40 = vpop.f32.mrf.mxu1 }
  0xf3   :  { %v6012_v20 = vpop.f32.mrf.mxu0  ;;  %v6056_v45 = vpop.f32.mrf.mxu1 }
  0xf5   :  { %v6014_v21 = vpop.f32.mrf.mxu0  ;;  %v6063_v53 = vpop.f32.mrf.mxu1 }
  0xf7   :  { %v6018_v23 = vpop.f32.mrf.mxu0 }
  0xf9   :  { %v6020_v24 = vpop.f32.mrf.mxu0 }
  0xfb   :  { %v6024_v26 = vpop.f32.mrf.mxu0 }
  0xfd   :  { %v6026_v27 = vpop.f32.mrf.mxu0 }
  0xff   :  { %v6030_v29 = vpop.f32.mrf.mxu0 }
 0x101   :  { %v6032_v30 = vpop.f32.mrf.mxu0 }
 0x103   :  { %v6036_v32 = vpop.f32.mrf.mxu0 }
 0x105   :  { %v6038_v33 = vpop.f32.mrf.mxu0 }
 0x107   :  { %v6042_v35 = vpop.f32.mrf.mxu0 }
 0x109   :  { %v6044_v36 = vpop.f32.mrf.mxu0 }
 0x10b   :  { %v6048_v38 = vpop.f32.mrf.mxu0 }
 0x10d   :  { %v6050_v39 = vpop.f32.mrf.mxu0 }
 0x10f   :  { %v6054_v41 = vpop.f32.mrf.mxu0 }
 0x110   :  { %7618 = vst [vmem:[#allocation4_spill] sm:$0xff] %v6054_v41  ;;  %v6068_v41 = vpop.f32.mrf.mxu1 }
 0x111   :  { %v5089_v43 = vpop.f32.mrf.mxu0 }
 0x112   :  { %v1014_v46 = vadd.f32 %v5089_v43, %v496_v42  ;;  %v511_v42 = vadd.f32 %v510_v7, %v276_v2  ;;  %v521_v2 = vadd.f32 %v5998_v13, %v5986_v5 }
 0x113   :  { %v854_v48 = vpop.f32.mrf.mxu0 }
 0x114   :  { %v1013_v50 = vadd.f32 %v854_v48, %v491_v44  ;;  %v1053_v54 = vadd.f32 %v6061_v47, %v1014_v46  ;;  %v526_v44 = vadd.f32 %v5036_v10, %v5984_v3  ;;  %v536_v3 = vadd.f32 %v6004_v16, %v5988_v6 }
 0x115   :  { %v5092_v51 = vpop.f32.mrf.mxu0  ;;  %v546_v16 = vadd.f32 %v6016_v22, %v5992_v9 }
 0x116   :  { %v1016_v55 = vadd.f32 %v5092_v51, %v506_v49  ;;  %v1052_v56 = vadd.f32 %v6061_v47, %v1013_v50  ;;  %v1085_v61 = vmax.f32 %v1053_v54, 0.0  ;;  %v6075_v51 = vpop.f32.mrf.mxu1 }
 0x117   :  { %v864_v57 = vpop.f32.mrf.mxu0 }
 0x118   :  { %v1055_v59 = vadd.f32 %v6061_v47, %v1016_v55  ;;  %v1015_v60 = vadd.f32 %v864_v57, %v501_v52  ;;  %v1084_v46 = vmax.f32 %v1052_v56, 0.0  ;;  %v6083_v5 = vpop.f32.mrf.mxu1 }
 0x119   :  { %v5095_v43 = vpop.f32.mrf.mxu0 }
 0x11a   :  { %v1087_v62 = vmax.f32 %v1055_v59, 0.0  ;;  %v1054_v63 = vadd.f32 %v6061_v47, %v1015_v60  ;;  %v1018_v1 = vadd.f32 %v5095_v43, %v516_v58 }
 0x11b   :  { %v874_v48 = vpop.f32.mrf.mxu0 }
 0x11c   :  { %v1117_v49 = vmax.f32 %v1085_v61, %v1087_v62  ;;  %v1086_v50 = vmax.f32 %v1054_v63, 0.0  ;;  %v1057_v0 = vadd.f32 %v6061_v47, %v1018_v1  ;;  %v1017_v4 = vadd.f32 %v874_v48, %v511_v42 }
 0x11d   :  { %v5098_v7 = vpop.f32.mrf.mxu0  ;;  %v531_v63 = vadd.f32 %v6010_v19, %v5990_v8  ;;  %v541_v48 = vadd.f32 %v6022_v25, %v5994_v11  ;;  %v556_v19 = vadd.f32 %v6028_v28, %v5996_v12 }
 0x11e   :  { %v1116_v52 = vmax.f32 %v1084_v46, %v1086_v50  ;;  %v1089_v54 = vmax.f32 %v1057_v0, 0.0  ;;  %v1056_v55 = vadd.f32 %v6061_v47, %v1017_v4  ;;  %v1020_v57 = vadd.f32 %v5098_v7, %v526_v44  ;;  %v6095_v0 = vpop.f32.mrf.mxu1 }
 0x11f   :  { %v884_v10 = vpop.f32.mrf.mxu0 }
 0x120   :  { %v6080_v56 = vmax.f32 %v1117_v49, %v1089_v54  ;;  %v1088_v58 = vmax.f32 %v1056_v55, 0.0  ;;  %v1059_v59 = vadd.f32 %v6061_v47, %v1020_v57  ;;  %v1019_v60 = vadd.f32 %v884_v10, %v521_v2 }
 0x121   :  { %v5101_v42 = vpop.f32.mrf.mxu0  ;;  %v551_v10 = vadd.f32 %v6034_v31, %v6000_v14 }
 0x122   :  { %v6085_v13 = vmax.f32 %v1116_v52, %v1088_v58  ;;  %v1091_v43 = vmax.f32 %v1059_v59, 0.0  ;;  %v1058_v61 = vadd.f32 %v6061_v47, %v1019_v60  ;;  %v1022_v62 = vadd.f32 %v5101_v42, %v536_v3 }
 0x123   :  { %v894_v6 = vpop.f32.mrf.mxu0  ;;  %v566_v60 = vadd.f32 %v6040_v34, %v6002_v15  ;;  %v561_v15 = vadd.f32 %v6046_v37, %v6006_v17  ;;  %v576_v34 = vadd.f32 %v6052_v40, %v6008_v18  ;;  %v586_v18 = vadd.f32 %v6063_v53, %v6014_v21 }
 0x124   :  { %v1300_v1 = vmax.f32 %v1089_v54, %v1091_v43  ;;  %v1090_v44 = vmax.f32 %v1058_v61, 0.0  ;;  %v1061_v46 = vadd.f32 %v6061_v47, %v1022_v62  ;;  %v1021_v49 = vadd.f32 %v894_v6, %v531_v63 }
 0x125   :  { %v5104_v50 = vpop.f32.mrf.mxu0  ;;  %v1121_v4 = vmax.f32 %v6080_v56, %v1091_v43 }
 0x126   :  { %v1299_v2 = vmax.f32 %v1088_v58, %v1090_v44  ;;  %v1093_v7 = vmax.f32 %v1061_v46, 0.0  ;;  %v1024_v8 = vadd.f32 %v5104_v50, %v546_v16  ;;  %v1060_v9 = vadd.f32 %v6061_v47, %v1021_v49  ;;  %v6105_v58 = vpop.f32.mrf.mxu1 }
 0x127   :  { %v904_v22 = vpop.f32.mrf.mxu0  ;;  %v1120_v25 = vmax.f32 %v6085_v13, %v1090_v44 }
 0x128   :  { %v1123_v52 = vmax.f32 %v1121_v4, %v1093_v7  ;;  %v1302_v54 = vmax.f32 %v1300_v1, %v1093_v7  ;;  %v1063_v55 = vadd.f32 %v6061_v47, %v1024_v8  ;;  %v1023_v11 = vadd.f32 %v904_v22, %v541_v48  ;;  %v6113_v14 = vpop.f32.mrf.mxu1 }
 0x129   :  { %v1092_v57 = vmax.f32 %v1060_v9, 0.0  ;;  %v5107_v3 = vpop.f32.mrf.mxu0  ;;  %v571_v9 = vadd.f32 %v6056_v45, %v6012_v20 }
 0x12a   :  { %v1095_v59 = vmax.f32 %v1063_v55, 0.0  ;;  %v1062_v12 = vadd.f32 %v6061_v47, %v1023_v11  ;;  %v1026_v28 = vadd.f32 %v5107_v3, %v556_v19 }
 0x12b   :  { %v1122_v42 = vmax.f32 %v1120_v25, %v1092_v57  ;;  %v1301_v43 = vmax.f32 %v1299_v2, %v1092_v57  ;;  %v914_v61 = vpop.f32.mrf.mxu0 }
 0x12c   :  { %v1094_v62 = vmax.f32 %v1062_v12, 0.0  ;;  %v1065_v63 = vadd.f32 %v6061_v47, %v1026_v28  ;;  %v1125_v6 = vmax.f32 %v1123_v52, %v1095_v59  ;;  %v1025_v16 = vadd.f32 %v914_v61, %v551_v10 }
 0x12d   :  { %v5110_v1 = vpop.f32.mrf.mxu0  ;;  %v6111_v44 = vmax.f32 %v1302_v54, %v1095_v59  ;;  %v6125_v54 = vpop.f32.mrf.mxu1  ;;  %v581_v12 = vadd.f32 %v6068_v41, %v6018_v23 }
 0x12e   :  { %v1097_v31 = vmax.f32 %v1065_v63, 0.0  ;;  %v1064_v46 = vadd.f32 %v6061_v47, %v1025_v16  ;;  %v1124_v48 = vmax.f32 %v1122_v42, %v1094_v62  ;;  %v1028_v49 = vadd.f32 %v5110_v1, %v566_v60 }
 0x12f   :  { %v924_v50 = vpop.f32.mrf.mxu0  ;;  %v6120_v4 = vmax.f32 %v1301_v43, %v1094_v62  ;;  %v5066_v28 = vpop.f32.mrf.mxu1 }
 0x130   :  { %v1127_v2 = vmax.f32 %v1125_v6, %v1097_v31  ;;  %v1338_v7 = vmax.f32 %v1095_v59, %v1097_v31  ;;  %v1096_v8 = vmax.f32 %v1064_v46, 0.0  ;;  %v1067_v19 = vadd.f32 %v6061_v47, %v1028_v49 }
 0x131   :  { %v1027_v22 = vadd.f32 %v924_v50, %v561_v15  ;;  %v5113_v52 = vpop.f32.mrf.mxu0  ;;  %v620_v41 = vpop.f32.mrf.mxu1  ;;  %v591_v49 = vadd.f32 %v6083_v5, %v6024_v26 }
 0x132   :  { %v1126_v55 = vmax.f32 %v1124_v48, %v1096_v8  ;;  %v1337_v17 = vmax.f32 %v1094_v62, %v1096_v8  ;;  %v1099_v37 = vmax.f32 %v1067_v19, 0.0  ;;  %v1030_v11 = vadd.f32 %v5113_v52, %v576_v34 }
 0x133   :  { %v1066_v40 = vadd.f32 %v6061_v47, %v1027_v22  ;;  %v934_v25 = vpop.f32.mrf.mxu0  ;;  %v596_v62 = vadd.f32 %v6075_v51, %v6020_v24  ;;  %v606_v24 = vadd.f32 %v6095_v0, %v6026_v27  ;;  %v601_v8 = vadd.f32 %v6105_v58, %v6030_v29  ;;  %v5069_v22 = vpop.f32.mrf.mxu1 }
 0x134   :  { %v6130_v57 = vmax.f32 %v1127_v2, %v1099_v37  ;;  %v6132_v3 = vmax.f32 %v1338_v7, %v1099_v37  ;;  %v1069_v20 = vadd.f32 %v6061_v47, %v1030_v11  ;;  %v1029_v45 = vadd.f32 %v934_v25, %v571_v9 }
 0x135   :  { %v1098_v10 = vmax.f32 %v1066_v40, 0.0  ;;  %v5116_v59 = vpop.f32.mrf.mxu0  ;;  %v616_v27 = vadd.f32 %v6113_v14, %v6032_v30  ;;  %v630_v25 = vpop.f32.mrf.mxu1 }
 0x136   :  { %v1101_v60 = vmax.f32 %v1069_v20, 0.0  ;;  %v1068_v42 = vadd.f32 %v6061_v47, %v1029_v45  ;;  %v1032_v21 = vadd.f32 %v5116_v59, %v586_v18  ;;  %v611_v59 = vadd.f32 %v6125_v54, %v6036_v32 }
 0x137   :  { %v944_v53 = vpop.f32.mrf.mxu0  ;;  %v6138_v43 = vmax.f32 %v1126_v55, %v1098_v10  ;;  %v6140_v61 = vmax.f32 %v1337_v17, %v1098_v10 }
 0x138   :  { %v1100_v63 = vmax.f32 %v1068_v42, 0.0  ;;  %v1071_v6 = vadd.f32 %v6061_v47, %v1032_v21  ;;  %v1031_v16 = vadd.f32 %v944_v53, %v581_v12  ;;  %v1131_v1 = vmax.f32 %v6130_v57, %v1101_v60 }
 0x139   :  { %1191 = vrot.lane.b32.xlu1 %v6138_v43, %s5569_s2  ;;  %v5119_v23 = vpop.f32.mrf.mxu0 }
 0x13a   :  { %v1103_v31 = vmax.f32 %v1071_v6, 0.0  ;;  %v1070_v46 = vadd.f32 %v6061_v47, %v1031_v16  ;;  %v1034_v48 = vadd.f32 %v5119_v23, %v596_v62  ;;  %v1130_v51 = vmax.f32 %v6138_v43, %v1100_v63  ;;  %v5072_v23 = vpop.f32.mrf.mxu1 }
 0x13b   :  { %v954_v15 = vpop.f32.mrf.mxu0  ;;  %v621_v16 = vadd.f32 %v620_v41, %v6042_v35 }
 0x13c   :  { %v1133_v34 = vmax.f32 %v1131_v1, %v1103_v31  ;;  %v1222_v50 = vmax.f32 %v1101_v60, %v1103_v31  ;;  %v1102_v2 = vmax.f32 %v1070_v46, 0.0  ;;  %v1073_v7 = vadd.f32 %v6061_v47, %v1034_v48 }
 0x13d   :  { %v1033_v19 = vadd.f32 %v954_v15, %v591_v49  ;;  %v5122_v9 = vpop.f32.mrf.mxu0  ;;  %v626_v60 = vadd.f32 %v5066_v28, %v6038_v33  ;;  %v636_v33 = vadd.f32 %v5069_v22, %v6044_v36 }
 0x13e   :  { %v1221_v52 = vmax.f32 %v1100_v63, %v1102_v2  ;;  %v1132_v55 = vmax.f32 %v1130_v51, %v1102_v2  ;;  %v1105_v26 = vmax.f32 %v1073_v7, 0.0  ;;  %v1036_v5 = vadd.f32 %v5122_v9, %v606_v24  ;;  %v640_v7 = vpop.f32.mrf.mxu1 }
 0x13f   :  { %v1072_v0 = vadd.f32 %v6061_v47, %v1033_v19  ;;  %v964_v17 = vpop.f32.mrf.mxu0  ;;  %v631_v2 = vadd.f32 %v630_v25, %v6048_v38 }
 0x140   :  { %v1135_v37 = vmax.f32 %v1133_v34, %v1105_v26  ;;  %v6160_v11 = vmax.f32 %v1222_v50, %v1105_v26  ;;  %v1075_v18 = vadd.f32 %v6061_v47, %v1036_v5  ;;  %v1035_v40 = vadd.f32 %v964_v17, %v601_v8 }
 0x141   :  { %v1104_v29 = vmax.f32 %v1072_v0, 0.0  ;;  %v5125_v58 = vpop.f32.mrf.mxu0 }
 0x142   :  { %v1107_v20 = vmax.f32 %v1075_v18, 0.0  ;;  %v1074_v45 = vadd.f32 %v6061_v47, %v1035_v40  ;;  %v1038_v10 = vadd.f32 %v5125_v58, %v616_v27 }
 0x143   :  { %v1134_v30 = vmax.f32 %v1132_v55, %v1104_v29  ;;  %v6166_v14 = vmax.f32 %v1221_v52, %v1104_v29  ;;  %v974_v12 = vpop.f32.mrf.mxu0  ;;  %v646_v52 = vadd.f32 %v5072_v23, %v6050_v39 }
 0x144   :  { %v1137_v42 = vmax.f32 %v1135_v37, %v1107_v20  ;;  %v1406_v21 = vmax.f32 %v1105_v26, %v1107_v20  ;;  %v1106_v53 = vmax.f32 %v1074_v45, 0.0  ;;  %v1077_v62 = vadd.f32 %v6061_v47, %v1038_v10  ;;  %v7619_v37 = vld [vmem:[#allocation4_spill] sm:$0xff] }
 0x145   :  { %v1037_v63 = vadd.f32 %v974_v12, %v611_v59  ;;  %v5128_v6 = vpop.f32.mrf.mxu0  ;;  %v1226_v32 = vmax.f32 %v6160_v11, %v1107_v20  ;;  %v641_v18 = vadd.f32 %v640_v7, %v7619_v37  ;;  %v1521_v37 = vld [vmem:[%s7609_s3 + $0x60] sm:$0xff] }
 0x146   :  { %v1136_v1 = vmax.f32 %v1134_v30, %v1106_v53  ;;  %v1405_v31 = vmax.f32 %v1104_v29, %v1106_v53  ;;  %v1040_v46 = vadd.f32 %v5128_v6, %v626_v60  ;;  %v1109_v54 = vmax.f32 %v1077_v62, 0.0 }
 0x147   :  { %v1076_v48 = vadd.f32 %v6061_v47, %v1037_v63  ;;  %v984_v49 = vpop.f32.mrf.mxu0  ;;  %v1225_v28 = vmax.f32 %v6166_v14, %v1106_v53 }
 0x148   :  { %v1079_v24 = vadd.f32 %v6061_v47, %v1040_v46  ;;  %v1039_v51 = vadd.f32 %v984_v49, %v621_v16  ;;  %v1139_v15 = vmax.f32 %v1137_v42, %v1109_v54  ;;  %v1228_v34 = vmax.f32 %v1226_v32, %v1109_v54 }
 0x149   :  { %v1408_v35 = vmax.f32 %v1406_v21, %v1109_v54  ;;  %v1108_v41 = vmax.f32 %v1076_v48, 0.0  ;;  %v5131_v50 = vpop.f32.mrf.mxu0 }
 0x14a   :  { %v1111_v8 = vmax.f32 %v1079_v24, 0.0  ;;  %v1078_v19 = vadd.f32 %v6061_v47, %v1039_v51  ;;  %v1042_v9 = vadd.f32 %v5131_v50, %v636_v33 }
 0x14b   :  { %v1227_v36 = vmax.f32 %v1225_v28, %v1108_v41  ;;  %v994_v22 = vpop.f32.mrf.mxu0  ;;  %v1138_v55 = vmax.f32 %v1136_v1, %v1108_v41  ;;  %v1407_v26 = vmax.f32 %v1405_v31, %v1108_v41 }
 0x14c   :  { %v1110_v5 = vmax.f32 %v1078_v19, 0.0  ;;  %v1081_v27 = vadd.f32 %v6061_v47, %v1042_v9  ;;  %v1041_v0 = vadd.f32 %v994_v22, %v631_v2  ;;  %v1141_v17 = vmax.f32 %v1139_v15, %v1111_v8  ;;  %v1540_v22 = vld [vmem:[%s7609_s3 + $0xf8] sm:$0xff] }
 0x14d   :  { %v5134_v40 = vpop.f32.mrf.mxu0  ;;  %v1230_v38 = vmax.f32 %v1228_v34, %v1111_v8  ;;  %v6181_v29 = vmax.f32 %v1408_v35, %v1111_v8  ;;  %v5372_v9 = vpack.i.bf16 %v6120_v4, %v6080_v56  ;;  %4576 = vmatprep.subr.mxu1 %v1540_v22  ;;  %v1582_v22 = vld [vmem:[%s7609_s3 + $0x248] sm:$0xff] }
 0x14e   :  { %v1113_v58 = vmax.f32 %v1081_v27, 0.0  ;;  %v1080_v25 = vadd.f32 %v6061_v47, %v1041_v0  ;;  %v1044_v20 = vadd.f32 %v5134_v40, %v646_v52  ;;  %v1140_v39 = vmax.f32 %v1138_v55, %v1110_v5  ;;  %v1524_v55 = vld [vmem:[%s7609_s3 + $0x78] sm:$0xff]  ;;  %v1538_v27 = vld [vmem:[%s7609_s3 + $0xe8] sm:$0xff] }
 0x14f   :  { %v1004_v45 = vpop.f32.mrf.mxu0  ;;  %v1229_v10 = vmax.f32 %v1227_v36, %v1110_v5  ;;  %v6184_v59 = vmax.f32 %v1407_v26, %v1110_v5  ;;  %v1539_v26 = vld [vmem:[%s7609_s3 + $0xf0] sm:$0xff]  ;;  %4577 = vmatpush3.msra.mxu1 %v1524_v55  ;;  %v1522_v0 = vld [vmem:[%s7609_s3 + $0x68] sm:$0xff]  ;;  %v1520_v40 = vld [vmem:[%s7609_s3 + $0x58] sm:$0xff] }
 0x150   :  { %v1112_v30 = vmax.f32 %v1080_v25, 0.0  ;;  %v1083_v12 = vadd.f32 %v6061_v47, %v1044_v20  ;;  %v1043_v60 = vadd.f32 %v1004_v45, %v641_v18  ;;  %v1143_v42 = vmax.f32 %v1141_v17, %v1113_v58  ;;  %4578 = vmatprep.subr.mxu1 %v1539_v26  ;;  %v1537_v17 = vld [vmem:[%s7609_s3 + $0xe0] sm:$0xff]  ;;  %v1536_v18 = vld [vmem:[%s7609_s3 + $0xd8] sm:$0xff]  ;;  %v1534_v20 = vld [vmem:[%s7609_s3 + $0xc8] sm:$0xff] }
 0x151   :  { %v1232_v21 = vmax.f32 %v1230_v38, %v1113_v58  ;;  %v1444_v53 = vmax.f32 %v1111_v8, %v1113_v58  ;;  %v1535_v38 = vld [vmem:[%s7609_s3 + $0xd0] sm:$0xff]  ;;  %v1604_v25 = vld [vmem:[%s7609_s3 + $0x2f8] sm:$0xff]  ;;  %v1597_v26 = vld [vmem:[%s7609_s3 + $0x2c0] sm:$0xff] }
 0x152   :  { %v1443_v62 = vmax.f32 %v1110_v5, %v1112_v30  ;;  %v1115_v63 = vmax.f32 %v1083_v12, 0.0  ;;  %v1082_v6 = vadd.f32 %v6061_v47, %v1043_v60  ;;  %v1142_v16 = vmax.f32 %v1140_v39, %v1112_v30  ;;  %v1523_v5 = vld [vmem:[%s7609_s3 + $0x70] sm:$0xff]  ;;  %4652 = vmatprep.subr.mxu0 %v1604_v25  ;;  %v1588_v39 = vld [vmem:[%s7609_s3 + $0x278] sm:$0xff]  ;;  %v1533_v12 = vld [vmem:[%s7609_s3 + $0xc0] sm:$0xff] }
 0x153   :  { %v1231_v23 = vmax.f32 %v1229_v10, %v1112_v30  ;;  %4579 = vmatpush3.msra.mxu1 %v1523_v5  ;;  %v1519_v58 = vld [vmem:[%s7609_s3 + $0x50] sm:$0xff]  ;;  %v1518_v10 = vld [vmem:[%s7609_s3 + $0x48] sm:$0xff]  ;;  %4653 = vmatpush3.msra.mxu0 %v1588_v39  ;;  %v1517_v60 = vld [vmem:[%s7609_s3 + $0x40] sm:$0xff] }
 0x154   :  { %v1114_v1 = vmax.f32 %v1082_v6, 0.0  ;;  %v1145_v31 = vmax.f32 %v1143_v42, %v1115_v63  ;;  %v1234_v46 = vmax.f32 %v1232_v21, %v1115_v63  ;;  %v6188_v32 = vmax.f32 %v1444_v53, %v1115_v63  ;;  %4580 = vmatprep.subr.mxu1 %v1538_v27  ;;  %v1603_v45 = vld [vmem:[%s7609_s3 + $0x2f0] sm:$0xff]  ;;  %v1532_v42 = vld [vmem:[%s7609_s3 + $0xb8] sm:$0xff]  ;;  %v1530_v63 = vld [vmem:[%s7609_s3 + $0xa8] sm:$0xff] }
 0x155   :  { %4581 = vmatpush3.msra.mxu1 %v1522_v0  ;;  %v1587_v30 = vld [vmem:[%s7609_s3 + $0x270] sm:$0xff]  ;;  %4654 = vmatprep.subr.mxu0 %v1603_v45  ;;  %v1516_v21 = vld [vmem:[%s7609_s3 + $0x38] sm:$0xff]  ;;  %v1514_v6 = vld [vmem:[%s7609_s3 + $0x28] sm:$0xff] }
 0x156   :  { %v1144_v54 = vmax.f32 %v1142_v16, %v1114_v1  ;;  %v6190_v48 = vmax.f32 %v1443_v62, %v1114_v1  ;;  %v1233_v49 = vmax.f32 %v1231_v23, %v1114_v1  ;;  %4582 = vmatprep.subr.mxu1 %v1537_v17  ;;  %4655 = vmatpush3.msra.mxu0 %v1587_v30  ;;  %v1531_v53 = vld [vmem:[%s7609_s3 + $0xb0] sm:$0xff]  ;;  %v1529_v16 = vld [vmem:[%s7609_s3 + $0xa0] sm:$0xff]  ;;  %v1528_v1 = vld [vmem:[%s7609_s3 + $0x98] sm:$0xff] }
 0x157   :  { %4583 = vmatpush3.msra.mxu1 %v1521_v37  ;;  %v1515_v62 = vld [vmem:[%s7609_s3 + $0x30] sm:$0xff]  ;;  %v1513_v23 = vld [vmem:[%s7609_s3 + $0x20] sm:$0xff]  ;;  %v1596_v0 = vld [vmem:[%s7609_s3 + $0x2b8] sm:$0xff] }
 0x158   :  { %1148 = vrot.lane.b32.xlu0 %v1144_v54, %s5569_s2  ;;  %4584 = vmatprep.subr.mxu1 %v1536_v18  ;;  %v1581_v27 = vld [vmem:[%s7609_s3 + $0x240] sm:$0xff]  ;;  %v1595_v18 = vld [vmem:[%s7609_s3 + $0x2b0] sm:$0xff] }
 0x159   :  { %4585 = vmatpush3.msra.mxu1 %v1520_v40  ;;  %v1593_v39 = vld [vmem:[%s7609_s3 + $0x2a0] sm:$0xff] }
 0x15a   :  { %4586 = vmatprep.subr.mxu1 %v1535_v38  ;;  %v1579_v38 = vld [vmem:[%s7609_s3 + $0x230] sm:$0xff]  ;;  %v1577_v30 = vld [vmem:[%s7609_s3 + $0x220] sm:$0xff] }
 0x15b   :  { %4587 = vmatpush3.msra.mxu1 %v1519_v58  ;;  %v1594_v58 = vld [vmem:[%s7609_s3 + $0x2a8] sm:$0xff] }
 0x15c   :  { %1150 = vrot.lane.b32.xlu0 %v1145_v31, %s5569_s2  ;;  %4588 = vmatprep.subr.mxu1 %v1534_v20 }
 0x15d   :  { %4589 = vmatpush3.msra.mxu1 %v1518_v10 }
 0x15e   :  { %4590 = vmatprep.subr.mxu1 %v1533_v12  ;;  %v1592_v12 = vld [vmem:[%s7609_s3 + $0x298] sm:$0xff] }
 0x15f   :  { %4591 = vmatpush3.msra.mxu1 %v1517_v60 }
 0x160   :  { %1193 = vrot.lane.b32.xlu0 %v6130_v57, %s5569_s2  ;;  %4592 = vmatprep.subr.mxu1 %v1532_v42 }
 0x161   :  { %4593 = vmatpush3.msra.mxu1 %v1516_v21  ;;  %v1591_v21 = vld [vmem:[%s7609_s3 + $0x290] sm:$0xff] }
 0x162   :  { %4594 = vmatprep.subr.mxu1 %v1531_v53 }
 0x163   :  { %4595 = vmatpush3.msra.mxu1 %v1515_v62 }
 0x164   :  { %1237 = vrot.lane.b32.xlu0 %v1233_v49, %s5569_s2  ;;  %4596 = vmatprep.subr.mxu1 %v1530_v63 }
 0x165   :  { %4597 = vmatpush3.msra.mxu1 %v1514_v6  ;;  %v1575_v6 = vld [vmem:[%s7609_s3 + $0x210] sm:$0xff] }
 0x166   :  { %4598 = vmatprep.subr.mxu1 %v1529_v16  ;;  %v1590_v16 = vld [vmem:[%s7609_s3 + $0x288] sm:$0xff] }
 0x167   :  { %4599 = vmatpush3.msra.mxu1 %v1513_v23 }
 0x168   :  { %4600 = vmatprep.subr.mxu1 %v1528_v1 }
 0x1ab   :  { %v1192_v51 = vpop.permute.xlu1 %1191 }
 0x1ac   :  { %v1197_v15 = vmax.f32 %v6138_v43, %v1192_v51  ;;  %v1572_v51 = vld [vmem:[%s7609_s3 + $0x1f8] sm:$0xff] }
 0x1ca   :  { %v1149_v47 = vpop.permute.xlu0 %1148 }
 0x1cb   :  { %v1154_v33 = vmax.f32 %v1144_v54, %v1149_v47  ;;  %v1511_v54 = vld [vmem:[%s7609_s3 + $0x10] sm:$0xff]  ;;  %v1510_v47 = vld [vmem:[%s7609_s3 + $0x8] sm:$0xff] }
 0x1cd   :  { %1158 = vrot.lane.b32.xlu1 %v1154_v33, %s5570_s16 }
 0x1ce   :  { %v1151_v28 = vpop.permute.xlu0 %1150 }
 0x1cf   :  { %v1155_v24 = vmax.f32 %v1145_v31, %v1151_v28  ;;  %v1512_v31 = vld [vmem:[%s7609_s3 + $0x18] sm:$0xff]  ;;  %v1509_v28 = vld [vmem:[%s7609_s3] sm:$0xff] }
 0x1d0   :  { %4601 = vmatpush3.msra.mxu1 %v1512_v31  ;;  %v1589_v31 = vld [vmem:[%s7609_s3 + $0x280] sm:$0xff] }
 0x1d1   :  { %1160 = vrot.lane.b32.xlu1 %v1155_v24, %s5570_s16 }
 0x1d2   :  { %v1194_v34 = vpop.permute.xlu0 %1193 }
 0x1d3   :  { %v6207_v2 = vmax.f32 %v6130_v57, %v1194_v34  ;;  %v1601_v34 = vld [vmem:[%s7609_s3 + $0x2e0] sm:$0xff] }
 0x1d5   :  { %1201 = vrot.lane.b32.xlu1 %v1197_v15, %s5570_s16 }
 0x1d6   :  { %v1238_v8 = vpop.permute.xlu0 %1237 }
 0x1d7   :  { %v6215_v19 = vmax.f32 %v1233_v49, %v1238_v8  ;;  %v1526_v49 = vld [vmem:[%s7609_s3 + $0x88] sm:$0xff]  ;;  %v1584_v8 = vld [vmem:[%s7609_s3 + $0x258] sm:$0xff] }
 0x1d9   :  { %1239 = vrot.lane.b32.xlu1 %v1234_v46, %s5569_s2 }
 0x23f   :  { %v1159_v35 = vpop.permute.xlu1 %1158 }
 0x240   :  { %v6202_v41 = vmax.f32 %v1154_v33, %v1159_v35  ;;  %v1525_v33 = vld [vmem:[%s7609_s3 + $0x80] sm:$0xff] }
 0x241   :  { %v1585_v35 = vld [vmem:[%s7609_s3 + $0x260] sm:$0xff] }
 0x242   :  { %1168 = vrot.lane.b32.xlu0 %v6202_v41, %s5571_s1 }
 0x243   :  { %v1161_v50 = vpop.permute.xlu1 %1160 }
 0x244   :  { %v6209_v7 = vmax.f32 %v1155_v24, %v1161_v50  ;;  %v1602_v24 = vld [vmem:[%s7609_s3 + $0x2e8] sm:$0xff]  ;;  %v1600_v50 = vld [vmem:[%s7609_s3 + $0x2d8] sm:$0xff] }
 0x245   :  { %4656 = vmatprep.subr.mxu0 %v1602_v24  ;;  %v1556_v24 = vld [vmem:[%s7609_s3 + $0x178] sm:$0xff] }
 0x246   :  { %1170 = vrot.lane.b32.xlu1 %v6209_v7, %s5571_s1  ;;  %1203 = vrot.lane.b32.xlu0 %v6207_v2, %s5570_s16 }
 0x247   :  { %v1202_v43 = vpop.permute.xlu1 %1201 }
 0x248   :  { %v6221_v57 = vmax.f32 %v1197_v15, %v1202_v43  ;;  %v1586_v15 = vld [vmem:[%s7609_s3 + $0x268] sm:$0xff]  ;;  %v1599_v43 = vld [vmem:[%s7609_s3 + $0x2d0] sm:$0xff] }
 0x249   :  { %4657 = vmatpush3.msra.mxu0 %v1586_v15  ;;  %v1555_v15 = vld [vmem:[%s7609_s3 + $0x170] sm:$0xff] }
 0x24a   :  { %1269 = vrot.lane.b32.xlu0 %v6085_v13, %s5569_s2  ;;  %1247 = vrot.lane.b32.xlu1 %v6215_v19, %s5570_s16 }
 0x24b   :  { %v1240_v52 = vpop.permute.xlu1 %1239  ;;  %4658 = vmatprep.subr.mxu0 %v1601_v34 }
 0x24c   :  { %v6228_v36 = vmax.f32 %v1234_v46, %v1240_v52  ;;  %v1527_v46 = vld [vmem:[%s7609_s3 + $0x90] sm:$0xff]  ;;  %4659 = vmatpush3.msra.mxu0 %v1585_v35  ;;  %v1598_v52 = vld [vmem:[%s7609_s3 + $0x2c8] sm:$0xff] }
 0x24d   :  { %4602 = vmatprep.subr.mxu1 %v1527_v46  ;;  %4660 = vmatprep.subr.mxu0 %v1600_v50  ;;  %v1573_v46 = vld [vmem:[%s7609_s3 + $0x200] sm:$0xff]  ;;  %v1570_v50 = vld [vmem:[%s7609_s3 + $0x1e8] sm:$0xff] }
 0x24e   :  { %1211 = vrot.lane.b32.xlu0 %v6221_v57, %s5571_s1  ;;  %5373 = vrot.lane.b32.xlu1 %v5372_v9, %s5569_s2  ;;  %v1583_v9 = vld [vmem:[%s7609_s3 + $0x250] sm:$0xff] }
 0x24f   :  { %4603 = vmatpush3.msra.mxu1 %v1511_v54  ;;  %4661 = vmatpush3.msra.mxu0 %v1584_v8 }
 0x250   :  { %4604 = vmatprep.subr.mxu1 %v1526_v49  ;;  %4662 = vmatprep.subr.mxu0 %v1599_v43 }
 0x251   :  { %4605 = vmatpush3.msra.mxu1 %v1510_v47  ;;  %4663 = vmatpush3.msra.mxu0 %v1583_v9  ;;  %v1554_v9 = vld [vmem:[%s7609_s3 + $0x168] sm:$0xff] }
 0x252   :  { %1249 = vrot.lane.b32.xlu1 %v6228_v36, %s5570_s16  ;;  %4606 = vmatprep.subr.mxu1 %v1525_v33 }
 0x253   :  { %4607 = vmatpush3.msra.mxu1 %v1509_v28  ;;  %4664 = vmatprep.subr.mxu0 %v1598_v52  ;;  %v1569_v52 = vld [vmem:[%s7609_s3 + $0x1e0] sm:$0xff] }
 0x254   :  { %4614 = vmatprep.subr.mxu1 %v1572_v51  ;;  %4665 = vmatpush3.msra.mxu0 %v1582_v22  ;;  %v1571_v51 = vld [vmem:[%s7609_s3 + $0x1f0] sm:$0xff]  ;;  %v1553_v22 = vld [vmem:[%s7609_s3 + $0x160] sm:$0xff] }
 0x255   :  { %4666 = vmatprep.subr.mxu0 %v1597_v26  ;;  %v1568_v26 = vld [vmem:[%s7609_s3 + $0x1d8] sm:$0xff] }
 0x256   :  { %4667 = vmatpush3.msra.mxu0 %v1581_v27  ;;  %v1552_v27 = vld [vmem:[%s7609_s3 + $0x158] sm:$0xff] }
 0x257   :  { %4668 = vmatprep.subr.mxu0 %v1596_v0 }
 0x2b4   :  { %v1169_v55 = vpop.permute.xlu0 %1168 }
 0x2b5   :  { %v6377_v5 = vmax.f32 %v6202_v41, %v1169_v55  ;;  %v1580_v41 = vld [vmem:[%s7609_s3 + $0x238] sm:$0xff] }
 0x2b6   :  { %4669 = vmatpush3.msra.mxu0 %v1580_v41  ;;  %v1567_v41 = vld [vmem:[%s7609_s3 + $0x1d0] sm:$0xff] }
 0x2b7   :  { %1178 = vrot.lane.b32.xlu0 %v6377_v5, %s5572_s22  ;;  %4670 = vmatprep.subr.mxu0 %v1595_v18  ;;  %v1551_v18 = vld [vmem:[%s7609_s3 + $0x150] sm:$0xff] }
 0x2b8   :  { %v1171_v17 = vpop.permute.xlu1 %1170  ;;  %v1204_v37 = vpop.permute.xlu0 %1203  ;;  %4671 = vmatpush3.msra.mxu0 %v1579_v38  ;;  %v1566_v38 = vld [vmem:[%s7609_s3 + $0x1c8] sm:$0xff] }
 0x2b9   :  { %v6394_v40 = vmax.f32 %v6207_v2, %v1204_v37  ;;  %v1578_v2 = vld [vmem:[%s7609_s3 + $0x228] sm:$0xff]  ;;  %4672 = vmatprep.subr.mxu0 %v1594_v58  ;;  %v6413_v45 = vmax.f32 %v6209_v7, %v1171_v17 }
 0x2ba   :  { %4673 = vmatpush3.msra.mxu0 %v1578_v2  ;;  %v1550_v2 = vld [vmem:[%s7609_s3 + $0x148] sm:$0xff] }
 0x2bb   :  { %1343 = vrot.lane.b32.xlu0 %v6140_v61, %s5569_s2  ;;  %1213 = vrot.lane.b32.xlu1 %v6394_v40, %s5571_s1 }
 0x2bc   :  { %v1248_v25 = vpop.permute.xlu1 %1247  ;;  %v1270_v20 = vpop.permute.xlu0 %1269  ;;  %4674 = vmatprep.subr.mxu0 %v1593_v39 }
 0x2bd   :  { %v6416_v10 = vmax.f32 %v6085_v13, %v1270_v20  ;;  %4675 = vmatpush3.msra.mxu0 %v1577_v30  ;;  %v1576_v13 = vld [vmem:[%s7609_s3 + $0x218] sm:$0xff]  ;;  %v6435_v53 = vmax.f32 %v6215_v19, %v1248_v25  ;;  %v5382_v19 = vpack.i.bf16 %v6166_v14, %v6132_v3  ;;  %v1565_v20 = vld [vmem:[%s7609_s3 + $0x1c0] sm:$0xff] }
 0x2be   :  { %4676 = vmatprep.subr.mxu0 %v1592_v12  ;;  %v1549_v30 = vld [vmem:[%s7609_s3 + $0x140] sm:$0xff]  ;;  %v1564_v12 = vld [vmem:[%s7609_s3 + $0x1b8] sm:$0xff] }
 0x2bf   :  { %1180 = vrot.lane.b32.xlu1 %v6413_v45, %s5572_s22  ;;  %v5377_v7 = vpack.i.bf16 %v6416_v10, %v6111_v44  ;;  %4677 = vmatpush3.msra.mxu0 %v1576_v13 }
 0x2c0   :  { %v5374_v60 = vpop.permute.xlu1 %5373  ;;  %v1212_v42 = vpop.permute.xlu0 %1211  ;;  %4678 = vmatprep.subr.mxu0 %v1591_v21 }
 0x2c1   :  { %v5375_v62 = vunpack.i.l.bf16 %v5374_v60  ;;  %v1217_v63 = vmax.f32 %v6221_v57, %v1212_v42  ;;  %5378 = vrot.lane.b32.xlu0 %v5377_v7, %s5569_s2  ;;  %v5376_v23 = vunpack.i.h.bf16 %v5374_v60  ;;  %v1574_v57 = vld [vmem:[%s7609_s3 + $0x208] sm:$0xff]  ;;  %4679 = vmatpush3.msra.mxu0 %v1575_v6  ;;  %v1563_v42 = vld [vmem:[%s7609_s3 + $0x1b0] sm:$0xff] }
 0x2c2   :  { %4680 = vmatprep.subr.mxu0 %v1590_v16  ;;  %v1562_v16 = vld [vmem:[%s7609_s3 + $0x1a8] sm:$0xff] }
 0x2c3   :  { %v6446_v1 = vmax.f32 %v6080_v56, %v5375_v62  ;;  %1257 = vrot.lane.b32.xlu1 %v6435_v53, %s5571_s1  ;;  %1813 = vmatprep.mubr.f32.mxu1 %v1217_v63  ;;  %v6465_v49 = vmax.f32 %v6120_v4, %v5376_v23  ;;  %v1668_v4 = vld [vmem:[%s7609_s3 + $0x4f8] sm:$0xff]  ;;  %v1546_v23 = vld [vmem:[%s7609_s3 + $0x128] sm:$0xff] }
 0x2c4   :  { %v1250_v54 = vpop.permute.xlu1 %1249  ;;  %4681 = vmatpush3.msra.mxu0 %v1574_v57  ;;  %v1561_v57 = vld [vmem:[%s7609_s3 + $0x1a0] sm:$0xff] }
 0x2c5   :  { %5383 = vrot.lane.b32.xlu0 %v5382_v19, %s5569_s2  ;;  %v5387_v56 = vpack.i.bf16 %v6446_v1, %v6160_v11  ;;  %4682 = vmatprep.subr.mxu0 %v1589_v31  ;;  %v6469_v47 = vmax.f32 %v6228_v36, %v1250_v54  ;;  %v5392_v33 = vpack.i.bf16 %v6181_v29, %v6465_v49 }
 0x2c6   :  { %4683 = vmatpush3.msra.mxu0 %v1573_v46  ;;  %v1545_v46 = vld [vmem:[%s7609_s3 + $0x120] sm:$0xff] }
 0x2c7   :  { %5388 = vrot.lane.b32.xlu1 %v5387_v56, %s5569_s2  ;;  %4728 = vmatprep.subr.mxu0 %v1668_v4 }
 0x2c9   :  { %1413 = vrot.lane.b32.xlu0 %v6184_v59, %s5569_s2 }
 0x2cb   :  { %1259 = vrot.lane.b32.xlu1 %v6469_v47, %s5571_s1 }
 0x2cd   :  { %5393 = vrot.lane.b32.xlu0 %v5392_v33, %s5569_s2  ;;  %v1560_v33 = vld [vmem:[%s7609_s3 + $0x198] sm:$0xff] }
 0x2d1   :  { %1289 = vrot.lane.b32.xlu0 %v6416_v10, %s5570_s16 }
 0x2d5   :  { %1327 = vrot.lane.b32.xlu0 %v6465_v49, %s5570_s16 }
 0x329   :  { %v1179_v36 = vpop.permute.xlu0 %1178 }
 0x32a   :  { %v1185_v28 = vmax.f32 %v6377_v5, %v1179_v36 }
 0x32c   :  { %1814 = vmatmul.mubr.f32.vlgmr.msra.gmra.mxu1 %v1185_v28  ;;  %v1559_v28 = vld [vmem:[%s7609_s3 + $0x190] sm:$0xff] }
 0x32d   :  { %4615 = vmatpush3.msra.mxu1 %v1556_v24  ;;  %v1214_v34 = vpop.permute.xlu1 %1213  ;;  %v1344_v35 = vpop.permute.xlu0 %1343 }
 0x32e   :  { %v1218_v8 = vmax.f32 %v6394_v40, %v1214_v34  ;;  %4616 = vmatprep.subr.mxu1 %v1571_v51  ;;  %v6500_v43 = vmax.f32 %v6140_v61, %v1344_v35  ;;  %v1543_v51 = vld [vmem:[%s7609_s3 + $0x110] sm:$0xff]  ;;  %v1558_v34 = vld [vmem:[%s7609_s3 + $0x188] sm:$0xff] }
 0x32f   :  { %4617 = vmatpush3.msra.mxu1 %v1555_v15 }
 0x330   :  { %4618 = vmatprep.subr.mxu1 %v1570_v50  ;;  %1818 = vmatprep.mubr.f32.mxu1 %v1218_v8  ;;  %v5397_v55 = vpack.i.bf16 %v6500_v43, %v6190_v48  ;;  %v1652_v8 = vld [vmem:[%s7609_s3 + $0x478] sm:$0xff] }
 0x331   :  { %4619 = vmatpush3.msra.mxu1 %v1554_v9  ;;  %v1181_v61 = vpop.permute.xlu1 %1180 }
 0x332   :  { %v1186_v5 = vmax.f32 %v6413_v45, %v1181_v61  ;;  %4620 = vmatprep.subr.mxu1 %v1569_v52  ;;  %5398 = vrot.lane.b32.xlu1 %v5397_v55, %s5569_s2  ;;  %v1541_v52 = vld [vmem:[%s7609_s3 + $0x100] sm:$0xff] }
 0x333   :  { %4621 = vmatpush3.msra.mxu1 %v1553_v22  ;;  %v5379_v0 = vpop.permute.xlu0 %5378  ;;  %v1651_v22 = vld [vmem:[%s7609_s3 + $0x470] sm:$0xff] }
 0x334   :  { %4622 = vmatprep.subr.mxu1 %v1568_v26  ;;  %v5381_v17 = vunpack.i.h.bf16 %v5379_v0  ;;  %v5380_v37 = vunpack.i.l.bf16 %v5379_v0  ;;  %1819 = vmatmul.mubr.f32.gmra.mxu1 %v1186_v5  ;;  %v1636_v26 = vld [vmem:[%s7609_s3 + $0x3f8] sm:$0xff] }
 0x335   :  { %4623 = vmatpush3.msra.mxu1 %v1552_v27  ;;  %v6527_v40 = vpop.permute.xlu1 %1257  ;;  %v1620_v0 = vld [vmem:[%s7609_s3 + $0x378] sm:$0xff] }
 0x336   :  { %v1285_v58 = vmax.f32 %v6416_v10, %v5381_v17  ;;  %4624 = vmatprep.subr.mxu1 %v1567_v41  ;;  %1451 = vrot.lane.b32.xlu1 %v6188_v32, %s5569_s2  ;;  %v6542_v39 = vmax.f32 %v6111_v44, %v5380_v37  ;;  %v1548_v44 = vld [vmem:[%s7609_s3 + $0x138] sm:$0xff]  ;;  %v1263_v55 = vmax.f32 %v6435_v53, %v6527_v40  ;;  %v1666_v53 = vld [vmem:[%s7609_s3 + $0x4e8] sm:$0xff]  ;;  %v1635_v41 = vld [vmem:[%s7609_s3 + $0x3f0] sm:$0xff] }
 0x337   :  { %4625 = vmatpush3.msra.mxu1 %v1551_v18  ;;  %v5384_v25 = vpop.permute.xlu0 %5383  ;;  %v1650_v17 = vld [vmem:[%s7609_s3 + $0x468] sm:$0xff]  ;;  %v1665_v37 = vld [vmem:[%s7609_s3 + $0x4e0] sm:$0xff]  ;;  %v1619_v40 = vld [vmem:[%s7609_s3 + $0x370] sm:$0xff] }
 0x338   :  { %4626 = vmatprep.subr.mxu1 %v1566_v38  ;;  %v5385_v45 = vunpack.i.l.bf16 %v5384_v25  ;;  %1888 = vmatprep.mubr.f32.mxu1 %v1285_v58  ;;  %v5386_v21 = vunpack.i.h.bf16 %v5384_v25  ;;  %v5407_v62 = vpack.i.bf16 %v6500_v43, %v6542_v39  ;;  %v1649_v38 = vld [vmem:[%s7609_s3 + $0x460] sm:$0xff]  ;;  %v1634_v58 = vld [vmem:[%s7609_s3 + $0x3e8] sm:$0xff]  ;;  %v1648_v25 = vld [vmem:[%s7609_s3 + $0x458] sm:$0xff] }
 0x339   :  { %4627 = vmatpush3.msra.mxu1 %v1550_v2  ;;  %v6553_v13 = vpop.permute.xlu1 %5388  ;;  %v1618_v2 = vld [vmem:[%s7609_s3 + $0x368] sm:$0xff] }
 0x33a   :  { %v6551_v7 = vmax.f32 %v6132_v3, %v5385_v45  ;;  %4628 = vmatprep.subr.mxu1 %v1565_v20  ;;  %1291 = vrot.lane.b32.xlu1 %v6446_v1, %s5570_s16  ;;  %v1547_v3 = vld [vmem:[%s7609_s3 + $0x130] sm:$0xff]  ;;  %v5390_v6 = vunpack.i.l.bf16 %v6553_v13  ;;  %v6583_v31 = vmax.f32 %v6166_v14, %v5386_v21  ;;  %v1544_v14 = vld [vmem:[%s7609_s3 + $0x118] sm:$0xff]  ;;  %v5391_v9 = vunpack.i.h.bf16 %v6553_v13  ;;  %v1633_v20 = vld [vmem:[%s7609_s3 + $0x3e0] sm:$0xff] }
 0x33b   :  { %4629 = vmatpush3.msra.mxu1 %v1549_v30  ;;  %v1414_v60 = vpop.permute.xlu0 %1413  ;;  %v1663_v45 = vld [vmem:[%s7609_s3 + $0x4d0] sm:$0xff]  ;;  %v1617_v30 = vld [vmem:[%s7609_s3 + $0x360] sm:$0xff]  ;;  %v1632_v13 = vld [vmem:[%s7609_s3 + $0x3d8] sm:$0xff] }
 0x33c   :  { %4630 = vmatprep.subr.mxu1 %v1564_v12  ;;  %v5402_v63 = vpack.i.bf16 %v6551_v7, %v6542_v39  ;;  %v6589_v54 = vmax.f32 %v6160_v11, %v5390_v6  ;;  %v6615_v35 = vmax.f32 %v6184_v59, %v1414_v60  ;;  %v1667_v59 = vld [vmem:[%s7609_s3 + $0x4f0] sm:$0xff]  ;;  %v1286_v5 = vmax.f32 %v6446_v1, %v5391_v9  ;;  %v1616_v60 = vld [vmem:[%s7609_s3 + $0x358] sm:$0xff]  ;;  %v1630_v6 = vld [vmem:[%s7609_s3 + $0x3c8] sm:$0xff] }
 0x33d   :  { %4631 = vmatpush3.msra.mxu1 %v1548_v44  ;;  %v1260_v27 = vpop.permute.xlu1 %1259  ;;  %v1647_v12 = vld [vmem:[%s7609_s3 + $0x450] sm:$0xff]  ;;  %v1662_v44 = vld [vmem:[%s7609_s3 + $0x4c8] sm:$0xff]  ;;  %v1640_v9 = vld [vmem:[%s7609_s3 + $0x418] sm:$0xff] }
 0x33e   :  { %4632 = vmatprep.subr.mxu1 %v1563_v42  ;;  %5408 = vrot.lane.b32.xlu1 %v5407_v62, %s5570_s16  ;;  %v5417_v15 = vpack.i.bf16 %v6589_v54, %v6551_v7  ;;  %v1264_v18 = vmax.f32 %v6469_v47, %v1260_v27  ;;  %v1664_v47 = vld [vmem:[%s7609_s3 + $0x4d8] sm:$0xff]  ;;  %v1646_v42 = vld [vmem:[%s7609_s3 + $0x448] sm:$0xff]  ;;  %v1631_v21 = vld [vmem:[%s7609_s3 + $0x3d0] sm:$0xff] }
 0x33f   :  { %4633 = vmatpush3.msra.mxu1 %v1547_v3  ;;  %5403 = vrot.lane.b32.xlu0 %v5402_v63, %s5569_s2  ;;  %v5394_v19 = vpop.permute.xlu0 %5393  ;;  %v1661_v3 = vld [vmem:[%s7609_s3 + $0x4c0] sm:$0xff]  ;;  %v1615_v62 = vld [vmem:[%s7609_s3 + $0x350] sm:$0xff] }
 0x340   :  { %4634 = vmatprep.subr.mxu1 %v1562_v16  ;;  %v5395_v56 = vunpack.i.l.bf16 %v5394_v19  ;;  %v5396_v4 = vunpack.i.h.bf16 %v5394_v19  ;;  %v1645_v63 = vld [vmem:[%s7609_s3 + $0x440] sm:$0xff]  ;;  %v1660_v16 = vld [vmem:[%s7609_s3 + $0x4b8] sm:$0xff]  ;;  %v1623_v27 = vld [vmem:[%s7609_s3 + $0x390] sm:$0xff] }
 0x341   :  { %4635 = vmatpush3.msra.mxu1 %v1546_v23  ;;  %v1614_v23 = vld [vmem:[%s7609_s3 + $0x348] sm:$0xff]  ;;  %v1644_v19 = vld [vmem:[%s7609_s3 + $0x438] sm:$0xff] }
 0x342   :  { %v1323_v36 = vmax.f32 %v6465_v49, %v5395_v56  ;;  %4636 = vmatprep.subr.mxu1 %v1561_v57  ;;  %1395 = vrot.lane.b32.xlu1 %v6583_v31, %s5570_s16  ;;  %v6618_v50 = vmax.f32 %v6181_v29, %v5396_v4  ;;  %v1557_v29 = vld [vmem:[%s7609_s3 + $0x180] sm:$0xff]  ;;  %v1659_v56 = vld [vmem:[%s7609_s3 + $0x4b0] sm:$0xff]  ;;  %v1628_v4 = vld [vmem:[%s7609_s3 + $0x3b8] sm:$0xff] }
 0x343   :  { %4637 = vmatpush3.msra.mxu1 %v1545_v46  ;;  %1385 = vrot.lane.b32.xlu0 %v6583_v31, %s5569_s2  ;;  %v1290_v11 = vpop.permute.xlu0 %1289  ;;  %v1629_v57 = vld [vmem:[%s7609_s3 + $0x3c0] sm:$0xff] }
 0x344   :  { %4638 = vmatprep.subr.mxu1 %v1560_v33  ;;  %v1295_v24 = vmax.f32 %v6416_v10, %v1290_v11  ;;  %1963 = vmatprep.mubr.f32.mxu0 %v1323_v36  ;;  %v1542_v10 = vld [vmem:[%s7609_s3 + $0x108] sm:$0xff]  ;;  %v5412_v61 = vpack.i.bf16 %v6618_v50, %v6589_v54  ;;  %v1613_v46 = vld [vmem:[%s7609_s3 + $0x340] sm:$0xff]  ;;  %v1643_v33 = vld [vmem:[%s7609_s3 + $0x430] sm:$0xff] }
 0x345   :  { %4639 = vmatpush3.msra.mxu1 %v1544_v14  ;;  %v1658_v36 = vld [vmem:[%s7609_s3 + $0x4a8] sm:$0xff]  ;;  %v1612_v14 = vld [vmem:[%s7609_s3 + $0x338] sm:$0xff] }
 0x346   :  { %4640 = vmatprep.subr.mxu1 %v1559_v28  ;;  %1964 = vmatmul.mubr.f32.vlgmr.msra.gmra.mxu0 %v1295_v24  ;;  %v1642_v11 = vld [vmem:[%s7609_s3 + $0x428] sm:$0xff]  ;;  %v1627_v28 = vld [vmem:[%s7609_s3 + $0x3b0] sm:$0xff]  ;;  %v1657_v24 = vld [vmem:[%s7609_s3 + $0x4a0] sm:$0xff] }
 0x347   :  { %4641 = vmatpush3.msra.mxu1 %v1543_v51  ;;  %5418 = vrot.lane.b32.xlu1 %v5417_v15, %s5570_s16  ;;  %v1611_v51 = vld [vmem:[%s7609_s3 + $0x330] sm:$0xff]  ;;  %v1641_v15 = vld [vmem:[%s7609_s3 + $0x420] sm:$0xff] }
 0x348   :  { %1423 = vrot.lane.b32.xlu0 %v6615_v35, %s5569_s2  ;;  %4642 = vmatprep.subr.mxu1 %v1558_v34  ;;  %v1626_v34 = vld [vmem:[%s7609_s3 + $0x3a8] sm:$0xff] }
 0x349   :  { %4643 = vmatpush3.msra.mxu1 %v1542_v10  ;;  %4729 = vmatpush3.msra.mxu0 %v1652_v8  ;;  %v1656_v10 = vld [vmem:[%s7609_s3 + $0x498] sm:$0xff]  ;;  %v1610_v8 = vld [vmem:[%s7609_s3 + $0x328] sm:$0xff] }
 0x34a   :  { %4644 = vmatprep.subr.mxu1 %v1557_v29  ;;  %4730 = vmatprep.subr.mxu0 %v1667_v59  ;;  %v1625_v29 = vld [vmem:[%s7609_s3 + $0x3a0] sm:$0xff]  ;;  %v1655_v59 = vld [vmem:[%s7609_s3 + $0x490] sm:$0xff] }
 0x34b   :  { %4645 = vmatpush3.msra.mxu1 %v1541_v52  ;;  %4731 = vmatpush3.msra.mxu0 %v1651_v22  ;;  %v1609_v52 = vld [vmem:[%s7609_s3 + $0x320] sm:$0xff]  ;;  %v1639_v22 = vld [vmem:[%s7609_s3 + $0x410] sm:$0xff] }
 0x34c   :  { %5413 = vrot.lane.b32.xlu0 %v5412_v61, %s5569_s2  ;;  %1889 = vmatmul.mubr.f32.vlgmr.msra.gmra.mxu1 %v1263_v55  ;;  %v1624_v55 = vld [vmem:[%s7609_s3 + $0x398] sm:$0xff]  ;;  %v1654_v61 = vld [vmem:[%s7609_s3 + $0x488] sm:$0xff] }
 0x34d   :  { %1893 = vmatprep.mubr.f32.mxu1 %v1286_v5  ;;  %4690 = vmatprep.subr.mxu1 %v1636_v26  ;;  %v1608_v26 = vld [vmem:[%s7609_s3 + $0x318] sm:$0xff]  ;;  %v1638_v5 = vld [vmem:[%s7609_s3 + $0x408] sm:$0xff] }
 0x34e   :  { %4691 = vmatpush3.msra.mxu1 %v1620_v0  ;;  %4732 = vmatprep.subr.mxu0 %v1666_v53  ;;  %v1653_v0 = vld [vmem:[%s7609_s3 + $0x480] sm:$0xff]  ;;  %v1607_v53 = vld [vmem:[%s7609_s3 + $0x310] sm:$0xff] }
 0x34f   :  { %4692 = vmatprep.subr.mxu1 %v1635_v41  ;;  %4733 = vmatpush3.msra.mxu0 %v1650_v17  ;;  %v1637_v41 = vld [vmem:[%s7609_s3 + $0x400] sm:$0xff]  ;;  %v1622_v17 = vld [vmem:[%s7609_s3 + $0x388] sm:$0xff] }
 0x350   :  { %1894 = vmatmul.mubr.f32.gmra.mxu1 %v1264_v18  ;;  %4734 = vmatprep.subr.mxu0 %v1665_v37  ;;  %v1606_v37 = vld [vmem:[%s7609_s3 + $0x308] sm:$0xff]  ;;  %v1621_v18 = vld [vmem:[%s7609_s3 + $0x380] sm:$0xff] }
 0x351   :  { %4693 = vmatpush3.msra.mxu1 %v1619_v40  ;;  %4735 = vmatpush3.msra.mxu0 %v1649_v38  ;;  %v1605_v40 = vld [vmem:[%s7609_s3 + $0x300] sm:$0xff]  ;;  %v1700_v38 = vld [vmem:[%s7609_s3 + $0x5f8] sm:$0xff] }
 0x352   :  { %4694 = vmatprep.subr.mxu1 %v1634_v58  ;;  %4736 = vmatprep.subr.mxu0 %v1664_v47  ;;  %v1732_v58 = vld [vmem:[%s7609_s3 + $0x6f8] sm:$0xff] }
 0x353   :  { %4695 = vmatpush3.msra.mxu1 %v1618_v2  ;;  %4737 = vmatpush3.msra.mxu0 %v1648_v25  ;;  %v1328_v2 = vpop.permute.xlu0 %1327 }
 0x354   :  { %4696 = vmatprep.subr.mxu1 %v1633_v20  ;;  %4738 = vmatprep.subr.mxu0 %v1663_v45 }
 0x355   :  { %4697 = vmatpush3.msra.mxu1 %v1617_v30  ;;  %4739 = vmatpush3.msra.mxu0 %v1647_v12  ;;  %v1333_v12 = vmax.f32 %v6465_v49, %v1328_v2  ;;  %v1729_v2 = vld [vmem:[%s7609_s3 + $0x6e0] sm:$0xff] }
 0x356   :  { %4698 = vmatprep.subr.mxu1 %v1632_v13  ;;  %4740 = vmatprep.subr.mxu0 %v1662_v44  ;;  %v1684_v44 = vld [vmem:[%s7609_s3 + $0x578] sm:$0xff] }
 0x357   :  { %4699 = vmatpush3.msra.mxu1 %v1616_v60  ;;  %4741 = vmatpush3.msra.mxu0 %v1646_v42  ;;  %v1699_v42 = vld [vmem:[%s7609_s3 + $0x5f0] sm:$0xff] }
 0x358   :  { %4700 = vmatprep.subr.mxu1 %v1631_v21  ;;  %4742 = vmatprep.subr.mxu0 %v1661_v3 }
 0x359   :  { %4701 = vmatpush3.msra.mxu1 %v1615_v62  ;;  %4743 = vmatpush3.msra.mxu0 %v1645_v63  ;;  %v1682_v62 = vld [vmem:[%s7609_s3 + $0x568] sm:$0xff]  ;;  %v1697_v63 = vld [vmem:[%s7609_s3 + $0x5e0] sm:$0xff] }
 0x35a   :  { %4702 = vmatprep.subr.mxu1 %v1630_v6  ;;  %4744 = vmatprep.subr.mxu0 %v1660_v16  ;;  %v1681_v6 = vld [vmem:[%s7609_s3 + $0x560] sm:$0xff]  ;;  %v1696_v16 = vld [vmem:[%s7609_s3 + $0x5d8] sm:$0xff] }
 0x35b   :  { %4703 = vmatpush3.msra.mxu1 %v1614_v23  ;;  %4745 = vmatpush3.msra.mxu0 %v1644_v19 }
 0x35c   :  { %4704 = vmatprep.subr.mxu1 %v1629_v57  ;;  %4746 = vmatprep.subr.mxu0 %v1659_v56  ;;  %v1680_v57 = vld [vmem:[%s7609_s3 + $0x558] sm:$0xff] }
 0x35d   :  { %4705 = vmatpush3.msra.mxu1 %v1613_v46  ;;  %4747 = vmatpush3.msra.mxu0 %v1643_v33  ;;  %v1695_v33 = vld [vmem:[%s7609_s3 + $0x5d0] sm:$0xff] }
 0x35e   :  { %4706 = vmatprep.subr.mxu1 %v1628_v4  ;;  %4748 = vmatprep.subr.mxu0 %v1658_v36 }
 0x35f   :  { %4707 = vmatpush3.msra.mxu1 %v1612_v14  ;;  %4749 = vmatpush3.msra.mxu0 %v1642_v11  ;;  %v1679_v14 = vld [vmem:[%s7609_s3 + $0x550] sm:$0xff] }
 0x360   :  { %4708 = vmatprep.subr.mxu1 %v1627_v28  ;;  %4750 = vmatprep.subr.mxu0 %v1657_v24 }
 0x361   :  { %4709 = vmatpush3.msra.mxu1 %v1611_v51  ;;  %4751 = vmatpush3.msra.mxu0 %v1641_v15  ;;  %v1694_v51 = vld [vmem:[%s7609_s3 + $0x5c8] sm:$0xff] }
 0x362   :  { %4710 = vmatprep.subr.mxu1 %v1626_v34  ;;  %4752 = vmatprep.subr.mxu0 %v1656_v10 }
 0x363   :  { %4711 = vmatpush3.msra.mxu1 %v1610_v8  ;;  %4753 = vmatpush3.msra.mxu0 %v1640_v9 }
 0x364   :  { %4712 = vmatprep.subr.mxu1 %v1625_v29  ;;  %4754 = vmatprep.subr.mxu0 %v1655_v59  ;;  %v1693_v29 = vld [vmem:[%s7609_s3 + $0x5c0] sm:$0xff] }
 0x365   :  { %4713 = vmatpush3.msra.mxu1 %v1609_v52  ;;  %4755 = vmatpush3.msra.mxu0 %v1639_v22  ;;  %v1692_v52 = vld [vmem:[%s7609_s3 + $0x5b8] sm:$0xff] }
 0x366   :  { %4714 = vmatprep.subr.mxu1 %v1624_v55  ;;  %4756 = vmatprep.subr.mxu0 %v1654_v61  ;;  %v1716_v22 = vld [vmem:[%s7609_s3 + $0x678] sm:$0xff] }
 0x367   :  { %4715 = vmatpush3.msra.mxu1 %v1608_v26  ;;  %4757 = vmatpush3.msra.mxu0 %v1638_v5  ;;  %v1676_v61 = vld [vmem:[%s7609_s3 + $0x538] sm:$0xff]  ;;  %v1691_v5 = vld [vmem:[%s7609_s3 + $0x5b0] sm:$0xff] }
 0x368   :  { %4716 = vmatprep.subr.mxu1 %v1623_v27  ;;  %4758 = vmatprep.subr.mxu0 %v1653_v0  ;;  %v1731_v27 = vld [vmem:[%s7609_s3 + $0x6f0] sm:$0xff] }
 0x369   :  { %4717 = vmatpush3.msra.mxu1 %v1607_v53  ;;  %4759 = vmatpush3.msra.mxu0 %v1637_v41  ;;  %v1675_v0 = vld [vmem:[%s7609_s3 + $0x530] sm:$0xff]  ;;  %v1690_v41 = vld [vmem:[%s7609_s3 + $0x5a8] sm:$0xff] }
 0x36a   :  { %4718 = vmatprep.subr.mxu1 %v1622_v17  ;;  %4804 = vmatprep.subr.mxu0 %v1732_v58  ;;  %v1715_v53 = vld [vmem:[%s7609_s3 + $0x670] sm:$0xff]  ;;  %v1730_v17 = vld [vmem:[%s7609_s3 + $0x6e8] sm:$0xff] }
 0x36b   :  { %4719 = vmatpush3.msra.mxu1 %v1606_v37 }
 0x36c   :  { %4720 = vmatprep.subr.mxu1 %v1621_v18 }
 0x36d   :  { %4721 = vmatpush3.msra.mxu1 %v1605_v40  ;;  %v1674_v40 = vld [vmem:[%s7609_s3 + $0x528] sm:$0xff] }
 0x36e   :  { %4766 = vmatprep.subr.mxu1 %v1700_v38  ;;  %v1714_v38 = vld [vmem:[%s7609_s3 + $0x668] sm:$0xff] }
 0x3a4   :  { %v5399_v47 = vpop.permute.xlu1 %5398 }
 0x3a5   :  { %v5401_v25 = vunpack.i.h.bf16 %v5399_v47  ;;  %v5400_v20 = vunpack.i.l.bf16 %v5399_v47  ;;  %v1689_v47 = vld [vmem:[%s7609_s3 + $0x5a0] sm:$0xff] }
 0x3a7   :  { %v1359_v45 = vmax.f32 %v6500_v43, %v5401_v25  ;;  %v6837_v30 = vmax.f32 %v6190_v48, %v5400_v20  ;;  %v1683_v48 = vld [vmem:[%s7609_s3 + $0x570] sm:$0xff]  ;;  %v1673_v25 = vld [vmem:[%s7609_s3 + $0x520] sm:$0xff] }
 0x3a8   :  { %v1452_v13 = vpop.permute.xlu1 %1451 }
 0x3a9   :  { %v6844_v60 = vmax.f32 %v6188_v32, %v1452_v13  ;;  %2038 = vmatprep.mubr.f32.mxu1 %v1359_v45  ;;  %v5427_v21 = vpack.i.bf16 %v6837_v30, %v6615_v35  ;;  %v1698_v32 = vld [vmem:[%s7609_s3 + $0x5e8] sm:$0xff]  ;;  %v1688_v45 = vld [vmem:[%s7609_s3 + $0x598] sm:$0xff] }
 0x3aa   :  { %2039 = vmatmul.mubr.f32.vlgmr.msra.gmra.mxu1 %v1333_v12  ;;  %v1672_v13 = vld [vmem:[%s7609_s3 + $0x518] sm:$0xff] }
 0x3ab   :  { %4767 = vmatpush3.msra.mxu1 %v1684_v44  ;;  %5428 = vrot.lane.b32.xlu1 %v5427_v21, %s5570_s16  ;;  %v5422_v49 = vpack.i.bf16 %v6844_v60, %v6837_v30  ;;  %v5432_v23 = vpack.i.bf16 %v6844_v60, %v6618_v50  ;;  %v1713_v44 = vld [vmem:[%s7609_s3 + $0x660] sm:$0xff]  ;;  %v1671_v21 = vld [vmem:[%s7609_s3 + $0x510] sm:$0xff] }
 0x3ac   :  { %4768 = vmatprep.subr.mxu1 %v1699_v42  ;;  %v1292_v3 = vpop.permute.xlu1 %1291  ;;  %v1687_v42 = vld [vmem:[%s7609_s3 + $0x590] sm:$0xff] }
 0x3ad   :  { %4769 = vmatpush3.msra.mxu1 %v1683_v48  ;;  %5423 = vrot.lane.b32.xlu0 %v5422_v49, %s5569_s2  ;;  %v1296_v15 = vmax.f32 %v6446_v1, %v1292_v3  ;;  %v1677_v1 = vld [vmem:[%s7609_s3 + $0x540] sm:$0xff]  ;;  %v1712_v48 = vld [vmem:[%s7609_s3 + $0x658] sm:$0xff]  ;;  %v1727_v49 = vld [vmem:[%s7609_s3 + $0x6d0] sm:$0xff] }
 0x3ae   :  { %4770 = vmatprep.subr.mxu1 %v1698_v32  ;;  %v1686_v32 = vld [vmem:[%s7609_s3 + $0x588] sm:$0xff] }
 0x3af   :  { %4771 = vmatpush3.msra.mxu1 %v1682_v62  ;;  %v1670_v3 = vld [vmem:[%s7609_s3 + $0x508] sm:$0xff]  ;;  %v1711_v62 = vld [vmem:[%s7609_s3 + $0x650] sm:$0xff] }
 0x3b0   :  { %4772 = vmatprep.subr.mxu1 %v1697_v63  ;;  %v5409_v19 = vpop.permute.xlu1 %5408 }
 0x3b1   :  { %4773 = vmatpush3.msra.mxu1 %v1681_v6  ;;  %v5410_v56 = vunpack.i.l.bf16 %v5409_v19  ;;  %v5404_v46 = vpop.permute.xlu0 %5403  ;;  %5433 = vrot.lane.b32.xlu0 %v5432_v23, %s5570_s16  ;;  %v5411_v34 = vunpack.i.h.bf16 %v5409_v19  ;;  %v1685_v6 = vld [vmem:[%s7609_s3 + $0x580] sm:$0xff]  ;;  %v1710_v19 = vld [vmem:[%s7609_s3 + $0x648] sm:$0xff] }
 0x3b2   :  { %v5406_v4 = vunpack.i.h.bf16 %v5404_v46  ;;  %v5405_v36 = vunpack.i.l.bf16 %v5404_v46  ;;  %4774 = vmatprep.subr.mxu1 %v1696_v16  ;;  %v1726_v16 = vld [vmem:[%s7609_s3 + $0x6c8] sm:$0xff]  ;;  %v1669_v23 = vld [vmem:[%s7609_s3 + $0x500] sm:$0xff] }
 0x3b3   :  { %4775 = vmatpush3.msra.mxu1 %v1680_v57  ;;  %v1334_v11 = vmax.f32 %v6542_v39, %v5410_v56  ;;  %v1369_v59 = vmax.f32 %v6500_v43, %v5411_v34  ;;  %v1748_v57 = vld [vmem:[%s7609_s3 + $0x778] sm:$0xff]  ;;  %v1707_v34 = vld [vmem:[%s7609_s3 + $0x630] sm:$0xff] }
 0x3b4   :  { %v1360_v28 = vmax.f32 %v6551_v7, %v5406_v4  ;;  %v1324_v24 = vmax.f32 %v6542_v39, %v5405_v36  ;;  %4776 = vmatprep.subr.mxu1 %v1695_v33  ;;  %v6892_v10 = vpop.permute.xlu1 %1395  ;;  %v1678_v39 = vld [vmem:[%s7609_s3 + $0x548] sm:$0xff]  ;;  %v1747_v4 = vld [vmem:[%s7609_s3 + $0x770] sm:$0xff]  ;;  %v1725_v36 = vld [vmem:[%s7609_s3 + $0x6c0] sm:$0xff] }
 0x3b5   :  { %4777 = vmatpush3.msra.mxu1 %v1679_v14  ;;  %v1386_v8 = vpop.permute.xlu0 %1385  ;;  %v1401_v56 = vmax.f32 %v6583_v31, %v6892_v10  ;;  %v1746_v14 = vld [vmem:[%s7609_s3 + $0x768] sm:$0xff] }
 0x3b6   :  { %v1391_v9 = vmax.f32 %v6583_v31, %v1386_v8  ;;  %1968 = vmatprep.mubr.f32.mxu0 %v1324_v24  ;;  %2043 = vmatprep.mubr.f32.mxu1 %v1360_v28  ;;  %v1709_v31 = vld [vmem:[%s7609_s3 + $0x640] sm:$0xff]  ;;  %v1724_v28 = vld [vmem:[%s7609_s3 + $0x6b8] sm:$0xff]  ;;  %v1722_v10 = vld [vmem:[%s7609_s3 + $0x6a8] sm:$0xff] }
 0x3b7   :  { %4778 = vmatprep.subr.mxu1 %v1694_v51  ;;  %1969 = vmatmul.mubr.f32.gmra.mxu0 %v1296_v15  ;;  %v1745_v24 = vld [vmem:[%s7609_s3 + $0x760] sm:$0xff]  ;;  %v1708_v51 = vld [vmem:[%s7609_s3 + $0x638] sm:$0xff]  ;;  %v1743_v8 = vld [vmem:[%s7609_s3 + $0x750] sm:$0xff] }
 0x3b8   :  { %2044 = vmatmul.mubr.f32.gmra.mxu1 %v1334_v11  ;;  %2113 = vmatprep.mubr.f32.mxu0 %v1391_v9  ;;  %v1744_v15 = vld [vmem:[%s7609_s3 + $0x758] sm:$0xff]  ;;  %v1706_v9 = vld [vmem:[%s7609_s3 + $0x628] sm:$0xff] }
 0x3b9   :  { %4779 = vmatpush3.msra.mxu1 %v1678_v39  ;;  %v6914_v26 = vpop.permute.xlu1 %5418  ;;  %v1721_v39 = vld [vmem:[%s7609_s3 + $0x6a0] sm:$0xff] }
 0x3ba   :  { %4780 = vmatprep.subr.mxu1 %v1693_v29  ;;  %v1424_v55 = vpop.permute.xlu0 %1423  ;;  %v5420_v37 = vunpack.i.l.bf16 %v6914_v26  ;;  %v5421_v46 = vunpack.i.h.bf16 %v6914_v26  ;;  %v1742_v29 = vld [vmem:[%s7609_s3 + $0x748] sm:$0xff]  ;;  %v1703_v26 = vld [vmem:[%s7609_s3 + $0x610] sm:$0xff] }
 0x3bb   :  { %4781 = vmatpush3.msra.mxu1 %v1677_v1  ;;  %v1429_v43 = vmax.f32 %v6615_v35, %v1424_v55  ;;  %2114 = vmatmul.mubr.f32.vlgmr.msra.gmra.mxu0 %v1369_v59  ;;  %v1705_v1 = vld [vmem:[%s7609_s3 + $0x620] sm:$0xff]  ;;  %v1720_v59 = vld [vmem:[%s7609_s3 + $0x698] sm:$0xff]  ;;  %v1719_v55 = vld [vmem:[%s7609_s3 + $0x690] sm:$0xff] }
 0x3bc   :  { %4782 = vmatprep.subr.mxu1 %v1692_v52  ;;  %4805 = vmatpush3.msra.mxu0 %v1716_v22  ;;  %v1370_v12 = vmax.f32 %v6551_v7, %v5420_v37  ;;  %v1728_v7 = vld [vmem:[%s7609_s3 + $0x6d8] sm:$0xff]  ;;  %v1402_v11 = vmax.f32 %v6589_v54, %v5421_v46  ;;  %v1741_v52 = vld [vmem:[%s7609_s3 + $0x740] sm:$0xff] }
 0x3bd   :  { %4783 = vmatpush3.msra.mxu1 %v1676_v61  ;;  %2188 = vmatprep.mubr.f32.mxu1 %v1429_v43  ;;  %v1704_v22 = vld [vmem:[%s7609_s3 + $0x618] sm:$0xff]  ;;  %v1718_v43 = vld [vmem:[%s7609_s3 + $0x688] sm:$0xff] }
 0x3be   :  { %4784 = vmatprep.subr.mxu1 %v1691_v5  ;;  %v5414_v18 = vpop.permute.xlu0 %5413  ;;  %4806 = vmatprep.subr.mxu0 %v1731_v27  ;;  %v1740_v61 = vld [vmem:[%s7609_s3 + $0x738] sm:$0xff]  ;;  %v1739_v5 = vld [vmem:[%s7609_s3 + $0x730] sm:$0xff]  ;;  %v1702_v27 = vld [vmem:[%s7609_s3 + $0x608] sm:$0xff] }
 0x3bf   :  { %4785 = vmatpush3.msra.mxu1 %v1675_v0  ;;  %v5415_v58 = vunpack.i.l.bf16 %v5414_v18  ;;  %4807 = vmatpush3.msra.mxu0 %v1715_v53  ;;  %v5416_v63 = vunpack.i.h.bf16 %v5414_v18  ;;  %v1717_v0 = vld [vmem:[%s7609_s3 + $0x680] sm:$0xff]  ;;  %v1738_v53 = vld [vmem:[%s7609_s3 + $0x728] sm:$0xff]  ;;  %v1736_v37 = vld [vmem:[%s7609_s3 + $0x718] sm:$0xff] }
 0x3c0   :  { %4786 = vmatprep.subr.mxu1 %v1690_v41  ;;  %4808 = vmatprep.subr.mxu0 %v1730_v17  ;;  %v1701_v41 = vld [vmem:[%s7609_s3 + $0x600] sm:$0xff]  ;;  %v1735_v18 = vld [vmem:[%s7609_s3 + $0x710] sm:$0xff] }
 0x3c1   :  { %v1392_v20 = vmax.f32 %v6589_v54, %v5415_v58  ;;  %4787 = vmatpush3.msra.mxu1 %v1674_v40  ;;  %4809 = vmatpush3.msra.mxu0 %v1714_v38  ;;  %v1430_v33 = vmax.f32 %v6618_v50, %v5416_v63  ;;  %v1723_v54 = vld [vmem:[%s7609_s3 + $0x6b0] sm:$0xff]  ;;  %v1737_v17 = vld [vmem:[%s7609_s3 + $0x720] sm:$0xff]  ;;  %v1734_v40 = vld [vmem:[%s7609_s3 + $0x708] sm:$0xff] }
 0x3c2   :  { %4788 = vmatprep.subr.mxu1 %v1689_v47  ;;  %4810 = vmatprep.subr.mxu0 %v1729_v2  ;;  %v1733_v38 = vld [vmem:[%s7609_s3 + $0x700] sm:$0xff]  ;;  %v2352_v63 = vld [vmem:[%s7610_s4 + $0x18] sm:$0xff] }
 0x3c3   :  { %4789 = vmatpush3.msra.mxu1 %v1673_v25  ;;  %2118 = vmatprep.mubr.f32.mxu0 %v1392_v20 }
 0x3c4   :  { %4790 = vmatprep.subr.mxu1 %v1688_v45  ;;  %2119 = vmatmul.mubr.f32.gmra.mxu0 %v1370_v12 }
 0x3c5   :  { %4791 = vmatpush3.msra.mxu1 %v1672_v13  ;;  %4811 = vmatpush3.msra.mxu0 %v1713_v44 }
 0x3c6   :  { %4792 = vmatprep.subr.mxu1 %v1687_v42  ;;  %4812 = vmatprep.subr.mxu0 %v1728_v7 }
 0x3c7   :  { %4793 = vmatpush3.msra.mxu1 %v1671_v21  ;;  %4813 = vmatpush3.msra.mxu0 %v1712_v48 }
 0x3c8   :  { %4794 = vmatprep.subr.mxu1 %v1686_v32  ;;  %4814 = vmatprep.subr.mxu0 %v1727_v49 }
 0x3c9   :  { %4795 = vmatpush3.msra.mxu1 %v1670_v3  ;;  %4815 = vmatpush3.msra.mxu0 %v1711_v62  ;;  %v2354_v3 = vld [vmem:[%s7610_s4 + $0x28] sm:$0xff]  ;;  %v7127_v62 = vld [vmem:[%s7611_s6 + $0x18] sm:$0xff] }
 0x3ca   :  { %4796 = vmatprep.subr.mxu1 %v1685_v6  ;;  %4816 = vmatprep.subr.mxu0 %v1726_v16  ;;  %v2351_v6 = vld [vmem:[%s7610_s4 + $0x10] sm:$0xff] }
 0x3cb   :  { %4797 = vmatpush3.msra.mxu1 %v1669_v23  ;;  %4817 = vmatpush3.msra.mxu0 %v1710_v19  ;;  %v7141_v16 = vld [vmem:[%s7611_s6 + $0x10] sm:$0xff]  ;;  %v2350_v23 = vld [vmem:[%s7610_s4 + $0x8] sm:$0xff]  ;;  %v2349_v19 = vld [vmem:[%s7610_s4] sm:$0xff] }
 0x3cc   :  { %2189 = vmatmul.mubr.f32.vlgmr.msra.gmra.mxu1 %v1401_v56  ;;  %5135 = vmatprep.subr.mxu1 %v1748_v57  ;;  %v7160_v56 = vld [vmem:[%s7611_s6] sm:$0xff] }
 0x3cd   :  { %2193 = vmatprep.mubr.f32.mxu1 %v1430_v33  ;;  %5136 = vmatpush3.msra.mxu1 %v1748_v57  ;;  %v7154_v57 = vld [vmem:[%s7611_s6 + $0x8] sm:$0xff] }
 0x3ce   :  { %5137 = vmatprep.subr.mxu1 %v1747_v4  ;;  %4818 = vmatprep.subr.mxu0 %v1725_v36 }
 0x3cf   :  { %5138 = vmatpush3.msra.mxu1 %v1747_v4  ;;  %4819 = vmatpush3.msra.mxu0 %v1709_v31 }
 0x3d0   :  { %2194 = vmatmul.mubr.f32.gmra.mxu1 %v1402_v11  ;;  %5139 = vmatprep.subr.mxu1 %v1746_v14 }
 0x3d1   :  { %5140 = vmatpush3.msra.mxu1 %v1746_v14  ;;  %4820 = vmatprep.subr.mxu0 %v1724_v28 }
 0x3d2   :  { %5141 = vmatprep.subr.mxu1 %v1745_v24  ;;  %4821 = vmatpush3.msra.mxu0 %v1708_v51 }
 0x3d3   :  { %5142 = vmatpush3.msra.mxu1 %v1745_v24  ;;  %4822 = vmatprep.subr.mxu0 %v1723_v54 }
 0x3d4   :  { %5143 = vmatprep.subr.mxu1 %v1744_v15  ;;  %4823 = vmatpush3.msra.mxu0 %v1707_v34 }
 0x3d5   :  { %5144 = vmatpush3.msra.mxu1 %v1744_v15  ;;  %4824 = vmatprep.subr.mxu0 %v1722_v10 }
 0x3d6   :  { %5145 = vmatprep.subr.mxu1 %v1743_v8  ;;  %4825 = vmatpush3.msra.mxu0 %v1706_v9 }
 0x3d7   :  { %5146 = vmatpush3.msra.mxu1 %v1743_v8  ;;  %4826 = vmatprep.subr.mxu0 %v1721_v39 }
 0x3d8   :  { %5147 = vmatprep.subr.mxu1 %v1742_v29  ;;  %4827 = vmatpush3.msra.mxu0 %v1705_v1 }
 0x3d9   :  { %5148 = vmatpush3.msra.mxu1 %v1742_v29  ;;  %4828 = vmatprep.subr.mxu0 %v1720_v59 }
 0x3da   :  { %5149 = vmatprep.subr.mxu1 %v1741_v52  ;;  %4829 = vmatpush3.msra.mxu0 %v1704_v22 }
 0x3db   :  { %5150 = vmatpush3.msra.mxu1 %v1741_v52  ;;  %4830 = vmatprep.subr.mxu0 %v1719_v55 }
 0x3dc   :  { %5151 = vmatprep.subr.mxu1 %v1740_v61  ;;  %4831 = vmatpush3.msra.mxu0 %v1703_v26 }
 0x3dd   :  { %5152 = vmatpush3.msra.mxu1 %v1740_v61  ;;  %4832 = vmatprep.subr.mxu0 %v1718_v43 }
 0x3de   :  { %5153 = vmatprep.subr.mxu1 %v1739_v5  ;;  %4833 = vmatpush3.msra.mxu0 %v1702_v27 }
 0x3df   :  { %5154 = vmatpush3.msra.mxu1 %v1739_v5  ;;  %4834 = vmatprep.subr.mxu0 %v1717_v0 }
 0x3e0   :  { %5155 = vmatprep.subr.mxu1 %v1738_v53  ;;  %4835 = vmatpush3.msra.mxu0 %v1701_v41 }
 0x3e1   :  { %5156 = vmatpush3.msra.mxu1 %v1738_v53 }
 0x3e2   :  { %5157 = vmatprep.subr.mxu1 %v1737_v17 }
 0x3e3   :  { %5158 = vmatpush3.msra.mxu1 %v1737_v17 }
 0x3e4   :  { %5159 = vmatprep.subr.mxu1 %v1736_v37 }
 0x3e5   :  { %5160 = vmatpush3.msra.mxu1 %v1736_v37 }
 0x3e6   :  { %5161 = vmatprep.subr.mxu1 %v1735_v18 }
 0x3e7   :  { %5162 = vmatpush3.msra.mxu1 %v1735_v18 }
 0x3e8   :  { %5163 = vmatprep.subr.mxu1 %v1734_v40 }
 0x3e9   :  { %5164 = vmatpush3.msra.mxu1 %v1734_v40 }
 0x3ea   :  { %5165 = vmatprep.subr.mxu1 %v1733_v38 }
 0x3eb   :  { %5166 = vmatpush3.msra.mxu1 %v1733_v38 }
 0x3ec   :  { %v4608_v46 = vpop.f32.mrf.mxu1 }
 0x3ee   :  { %v4609_v33 = vpop.f32.mrf.mxu1 }
 0x3ef   :  { %v4610_v59 = vadd.f32 %v4609_v33, %v4608_v46  ;;  %v7196_v33 = vld [vmem:[%s7611_s6 + $0x28] sm:$0xff] }
 0x3f4   :  { %v4611_v4 = vpop.f32.mrf.mxu1 }
 0x3f6   :  { %v4612_v36 = vpop.f32.mrf.mxu1 }
 0x3f7   :  { %v4613_v43 = vadd.f32 %v4612_v36, %v4611_v4  ;;  %v7204_v4 = vld [vmem:[%s7611_s6 + $0x20] sm:$0xff] }
 0x406   :  { %v4684_v28 = vpop.f32.mrf.mxu0 }
 0x408   :  { %v4685_v54 = vpop.f32.mrf.mxu0 }
 0x409   :  { %v4686_v5 = vadd.f32 %v4685_v54, %v4684_v28 }
 0x40c   :  { %v4646_v31 = vpop.f32.mrf.mxu1 }
 0x40e   :  { %v4647_v14 = vpop.f32.mrf.mxu1 }
 0x40f   :  { %v4648_v1 = vadd.f32 %v4647_v14, %v4646_v31  ;;  %v2359_v14 = vlaneseq }
 0x410   :  { %v4649_v11 = vpop.f32.mrf.mxu1 }
 0x411   :  { %v1891_v55 = vadd.f32 %v4648_v1, %v4610_v59 }
 0x412   :  { %v4650_v24 = vpop.f32.mrf.mxu1 }
 0x413   :  { %v4651_v61 = vadd.f32 %v4650_v24, %v4649_v11  ;;  %v1966_v17 = vadd.f32 %v4686_v5, %v1891_v55  ;;  %v2360_v11 = vshrl.u32 %v2359_v14, 7  ;;  %v2357_v24 = vld [vmem:[%s7612_s5] sm:$0x3]  ;;  %s5575_s5 = smov 32  }
 0x415   :  { %v1896_v41 = vadd.f32 %v4651_v61, %v4613_v43  ;;  %v2361_v28 = vsub.s32 0, %v2360_v11 }
 0x417   :  { %v2362_v54 = vrot.slane %v2357_v24, %v2361_v28 }
 0x41d   :  { %v5429_v58 = vpop.permute.xlu1 %5428 }
 0x41e   :  { %v5431_v47 = vunpack.i.h.bf16 %v5429_v58  ;;  %v5430_v2 = vunpack.i.l.bf16 %v5429_v58 }
 0x41f   :  { %v5424_v25 = vpop.permute.xlu0 %5423 }
 0x420   :  { %v1475_v20 = vmax.f32 %v6837_v30, %v5431_v47  ;;  %v5426_v45 = vunpack.i.h.bf16 %v5424_v25  ;;  %v5425_v12 = vunpack.i.l.bf16 %v5424_v25  ;;  %v1439_v44 = vmax.f32 %v6615_v35, %v5430_v2  ;;  %v2355_v35 = vld [vmem:[%s7610_s4 + $0x30] sm:$0xff] }
 0x422   :  { %v1465_v13 = vmax.f32 %v6837_v30, %v5425_v12  ;;  %5167 = vmatprep.mubr.f32.mxu1 %v1475_v20  ;;  %v1466_v7 = vmax.f32 %v6844_v60, %v5426_v45  ;;  %v2356_v30 = vld [vmem:[%s7610_s4 + $0x38] sm:$0xff] }
 0x423   :  { %v5434_v42 = vpop.permute.xlu0 %5433  ;;  %2400 = vmatprep.subr.mxu0 %v2356_v30 }
 0x424   :  { %v5436_v21 = vunpack.i.h.bf16 %v5434_v42  ;;  %v5435_v48 = vunpack.i.l.bf16 %v5434_v42  ;;  %2263 = vmatprep.mubr.f32.mxu0 %v1465_v13 }
 0x425   :  { %2264 = vmatmul.mubr.f32.vlgmr.msra.gmra.mxu0 %v1439_v44 }
 0x426   :  { %v1476_v32 = vmax.f32 %v6844_v60, %v5436_v21  ;;  %v1440_v49 = vmax.f32 %v6618_v50, %v5435_v48  ;;  %2268 = vmatprep.mubr.f32.mxu0 %v1466_v7  ;;  %2401 = vmatpush1.msra.mxu0 %v2355_v35  ;;  %v5573_v60 = vmov 0.0   ;;  %v2353_v50 = vld [vmem:[%s7610_s4 + $0x20] sm:$0xff] }
 0x427   :  { %5170 = vmatprep.subr.mxu1 %v5573_v60  ;;  %2402 = vmatprep.subr.mxu0 %v2354_v3 }
 0x428   :  { %5168 = vmatmul.mubr.f32.vlgmr.msra.gmra.mxu1 %v1476_v32  ;;  %2403 = vmatpush1.msra.mxu0 %v2353_v50 }
 0x429   :  { %2269 = vmatmul.mubr.f32.gmra.mxu0 %v1440_v49  ;;  %5171 = vmatpush3.msra.mxu1 %v7127_v62 }
 0x42a   :  { %2440 = vmatprep.mubr.f32.mxu0 %v5573_v60  ;;  %5172 = vmatprep.subr.mxu1 %v5573_v60 }
 0x42b   :  { %2404 = vmatprep.subr.mxu0 %v2352_v63  ;;  %5173 = vmatpush3.msra.mxu1 %v7141_v16 }
 0x42c   :  { %2405 = vmatpush1.msra.mxu0 %v2351_v6  ;;  %5174 = vmatprep.subr.mxu1 %v5573_v60  ;;  %v7182_v6 = vld [vmem:[%s7611_s6 + $0x38] sm:$0xff] }
 0x42d   :  { %2406 = vmatprep.subr.mxu0 %v2350_v23  ;;  %5175 = vmatpush3.msra.mxu1 %v7154_v57 }
 0x42e   :  { %2407 = vmatpush1.msra.mxu0 %v2349_v19  ;;  %5176 = vmatprep.subr.mxu1 %v5573_v60  ;;  %v7188_v19 = vld [vmem:[%s7611_s6 + $0x30] sm:$0xff] }
 0x42f   :  { %5181 = vmatprep.subr.mxu0 %v5573_v60  ;;  %5177 = vmatpush3.msra.mxu1 %v7160_v56 }
 0x430   :  { %5178 = vmatprep.mubr.msk.f32.mxu1 %vm5574_vm2, %v5573_v60  ;;  %5192 = vmatprep.subr.mxu1 %v5573_v60 }
 0x431   :  { %5179 = vmatmul.mubr.f32.vlgmr.msra.gmra.mxu1 %v5573_v60 }
 0x432   :  { %5193 = vmatpush3.msra.mxu1 %v7127_v62  ;;  %5200 = vmatprep.mubr.msk.f32.mxu1 %vm5574_vm2, %v5573_v60 }
 0x433   :  { %5194 = vmatprep.subr.mxu1 %v5573_v60 }
 0x434   :  { %5195 = vmatpush3.msra.mxu1 %v7141_v16 }
 0x435   :  { %5196 = vmatprep.subr.mxu1 %v5573_v60 }
 0x436   :  { %5197 = vmatpush3.msra.mxu1 %v7154_v57 }
 0x437   :  { %5198 = vmatprep.subr.mxu1 %v5573_v60 }
 0x438   :  { %5199 = vmatpush3.msra.mxu1 %v7160_v56 }
 0x439   :  { %5214 = vmatprep.subr.mxu1 %v5573_v60 }
 0x46a   :  { %v4722_v51 = vpop.f32.mrf.mxu1 }
 0x46c   :  { %v4723_v15 = vpop.f32.mrf.mxu1 }
 0x46d   :  { %v4724_v27 = vadd.f32 %v4723_v15, %v4722_v51  ;;  %v2365_v51 = vsub.s32 1, %v2360_v11 }
 0x46f   :  { %v2041_v40 = vadd.f32 %v4724_v27, %v1966_v17  ;;  %v2366_v15 = vrot.slane %v2357_v24, %v2365_v51 }
 0x477   :  { %v4687_v34 = vpop.f32.mrf.mxu0 }
 0x478   :  { %v4725_v10 = vpop.f32.mrf.mxu1 }
 0x479   :  { %v4688_v8 = vpop.f32.mrf.mxu0 }
 0x47a   :  { %v4726_v9 = vpop.f32.mrf.mxu1  ;;  %v4689_v0 = vadd.f32 %v4688_v8, %v4687_v34 }
 0x47b   :  { %v4760_v39 = vpop.f32.mrf.mxu0  ;;  %v4727_v25 = vadd.f32 %v4726_v9, %v4725_v10 }
 0x47c   :  { %v1971_v38 = vadd.f32 %v4689_v0, %v1896_v41 }
 0x47d   :  { %v4761_v52 = vpop.f32.mrf.mxu0 }
 0x47e   :  { %v4762_v37 = vadd.f32 %v4761_v52, %v4760_v39  ;;  %v2046_v13 = vadd.f32 %v4727_v25, %v1971_v38 }
 0x480   :  { %v2116_v20 = vadd.f32 %v4762_v37, %v2041_v40 }
 0x484   :  { %v4763_v26 = vpop.f32.mrf.mxu0 }
 0x486   :  { %v4764_v18 = vpop.f32.mrf.mxu0 }
 0x487   :  { %v4765_v45 = vadd.f32 %v4764_v18, %v4763_v26 }
 0x489   :  { %v2121_v32 = vadd.f32 %v4765_v45, %v2046_v13 }
 0x48c   :  { %v4798_v29 = vpop.f32.mrf.mxu1 }
 0x48e   :  { %v4799_v22 = vpop.f32.mrf.mxu1 }
 0x48f   :  { %v4800_v58 = vadd.f32 %v4799_v22, %v4798_v29 }
 0x490   :  { %v4801_v53 = vpop.f32.mrf.mxu1 }
 0x491   :  { %v2191_v44 = vadd.f32 %v4800_v58, %v2116_v20 }
 0x492   :  { %v4802_v47 = vpop.f32.mrf.mxu1 }
 0x493   :  { %v4803_v42 = vadd.f32 %v4802_v47, %v4801_v53 }
 0x495   :  { %v2196_v3 = vadd.f32 %v4803_v42, %v2121_v32 }
 0x4e5   :  { %v4836_v2 = vpop.f32.mrf.mxu0 }
 0x4e7   :  { %v4837_v12 = vpop.f32.mrf.mxu0 }
 0x4e8   :  { %v4838_v7 = vadd.f32 %v4837_v12, %v4836_v2  ;;  %v5169_v21 = vpop.f32.mrf.mxu1 }
 0x4e9   :  { %v4839_v48 = vpop.f32.mrf.mxu0 }
 0x4ea   :  { %v2266_v49 = vadd.f32 %v4838_v7, %v2191_v44  ;;  %v2340_v30 = vpop.f32.mrf.mxu1 }
 0x4eb   :  { %v4840_v35 = vpop.f32.mrf.mxu0 }
 0x4ec   :  { %v2341_v50 = vadd.f32 %v2340_v30, %v2266_v49  ;;  %v4841_v63 = vadd.f32 %v4840_v35, %v4839_v48 }
 0x4ee   :  { %v2271_v23 = vadd.f32 %v4841_v63, %v2196_v3  ;;  %4419 = vmatmul.mubr.msk.f32.vlgmr.msra.gmra.mxu0 %vm2369_vm3, %v2341_v50 }
 0x4ef   :  { %5182 = vmatpush3.msra.mxu0 %v7182_v6  ;;  %2446 = vmatprep.mubr.f32.mxu0 %v5573_v60 }
 0x4f0   :  { %v2346_v46 = vadd.f32 %v5169_v21, %v2271_v23  ;;  %5183 = vmatprep.subr.mxu0 %v5573_v60 }
 0x4f1   :  { %5184 = vmatpush3.msra.mxu0 %v7188_v19  ;;  %v2531_v36 = vpop.f32.mrf.mxu1 }
 0x4f2   :  { %4420 = vmatmul.mubr.msk.f32.gmra.mxu0 %vm2369_vm3, %v2346_v46  ;;  %5185 = vmatprep.subr.mxu0 %v5573_v60 }
 0x4f3   :  { %5186 = vmatpush3.msra.mxu0 %v7196_v33  ;;  %5189 = vmatprep.mubr.msk.f32.mxu0 %vm5574_vm2, %v5573_v60  ;;  %v5180_v31 = vpop.f32.mrf.mxu1 }
 0x4f4   :  { %5187 = vmatprep.subr.mxu0 %v5573_v60 }
 0x4f5   :  { %5188 = vmatpush3.msra.mxu0 %v7204_v4 }
 0x4f6   :  { %5190 = vmatmul.mubr.f32.vlgmr.msra.gmra.mxu0 %v5573_v60  ;;  %5203 = vmatprep.subr.mxu0 %v5573_v60 }
 0x4f7   :  { %5204 = vmatpush3.msra.mxu0 %v7182_v6  ;;  %5211 = vmatprep.mubr.msk.f32.mxu0 %vm5574_vm2, %v5573_v60 }
 0x4f8   :  { %5205 = vmatprep.subr.mxu0 %v5573_v60 }
 0x4f9   :  { %5206 = vmatpush3.msra.mxu0 %v7188_v19 }
 0x4fa   :  { %5207 = vmatprep.subr.mxu0 %v5573_v60 }
 0x4fb   :  { %5208 = vmatpush3.msra.mxu0 %v7196_v33 }
 0x4fc   :  { %5209 = vmatprep.subr.mxu0 %v5573_v60 }
 0x4fd   :  { %5210 = vmatpush3.msra.mxu0 %v7204_v4 }
 0x4fe   :  { %5225 = vmatprep.subr.mxu0 %v5573_v60 }
 0x5ae   :  { %v2442_v34 = vpop.f32.mrf.mxu0 }
 0x5af   :  { %v7226_v10 = vadd.f32 %v2442_v34, %v2362_v54 }
 0x5b0   :  { %v2444_v8 = vpop.f32.mrf.mxu0 }
 0x5b1   :  { %v7228_v9 = vadd.f32 %v2444_v8, %v2366_v15  ;;  %v2535_v39 = vadd.f32 %v2531_v36, %v7226_v10 }
 0x5b2   :  { %v2448_v29 = vpop.f32.mrf.mxu0 }
 0x5b3   :  { %5437 = vtanh.f32 %v2535_v39  ;;  %v7231_v1 = vadd.f32 %v2448_v29, %v2362_v54  ;;  %v4425_v27 = vmul.f32 -1.442695, %v2535_v39 }
 0x5b4   :  { %v2450_v59 = vpop.f32.mrf.mxu0 }
 0x5b5   :  { %v7233_v22 = vadd.f32 %v2450_v59, %v2366_v15 }
 0x5b6   :  { %v2602_v52 = vpop.f32.mrf.mxu0 }
 0x5b7   :  { %v2607_v55 = vrot.slane %v2602_v52, 2 }
 0x5b8   :  { %v5191_v61 = vpop.f32.mrf.mxu0 }
 0x5b9   :  { %v2609_v26 = vadd.f32 %v2607_v55, %v7233_v22 }
 0x5bb   :  { %5439 = vtanh.f32 %v2609_v26  ;;  %v4426_v0 = vmul.f32 -1.442695, %v2609_v26 }
 0x5bc   :  { %5441 = vpow2.f32 %v4425_v27 }
 0x5bd   :  { %5443 = vpow2.f32 %v4426_v0 }
 0x5c0   :  { %v5438_v43 = vpop.eup %5437 }
 0x5c1   :  { %2619 = vrot.lane.b32.xlu0 %v5438_v43, %s5572_s22 }
 0x5c8   :  { %v5440_v5 = vpop.eup %5439 }
 0x5c9   :  { %2643 = vrot.lane.b32.xlu1 %v5440_v5, %s5572_s22  ;;  %v5442_v53 = vpop.eup %5441 }
 0x5ca   :  { %v2613_v41 = vadd.f32 1.0, %v5442_v53  ;;  %v5444_v17 = vpop.eup %5443 }
 0x5cb   :  { %v2637_v37 = vadd.f32 1.0, %v5444_v17 }
 0x5cc   :  { %5445 = vrcp.f32 %v2613_v41 }
 0x5cd   :  { %5447 = vrcp.f32 %v2637_v37 }
 0x5d9   :  { %v5446_v18 = vpop.eup %5445 }
 0x5da   :  { %v5448_v58 = vpop.eup %5447  ;;  %v2617_v25 = vmul.f32 0.0, %v5446_v18 }
 0x5db   :  { %v2641_v12 = vmul.f32 0.0, %v5448_v58 }
 0x633   :  { %v2620_v40 = vpop.permute.xlu0 %2619 }
 0x634   :  { %v2622_v38 = vmul.f32 %v5446_v18, %v2620_v40 }
 0x636   :  { %2624 = vrot.lane.b32.xlu0 %v2622_v38, %s5575_s5 }
 0x63b   :  { %v2644_v47 = vpop.permute.xlu1 %2643 }
 0x63c   :  { %v2646_v2 = vmul.f32 %v5448_v58, %v2644_v47 }
 0x63e   :  { %2648 = vrot.lane.b32.xlu1 %v2646_v2, %s5575_s5 }
 0x6a8   :  { %v2625_v20 = vpop.permute.xlu0 %2624 }
 0x6a9   :  { %v7240_v45 = vadd.f32 %v2625_v20, %v2617_v25 }
 0x6ab   :  { %5449 = vtanh.f32 %v7240_v45  ;;  %v2825_v43 = vrot.slane %v7240_v45, 6 }
 0x6b0   :  { %v2649_v13 = vpop.permute.xlu1 %2648 }
 0x6b1   :  { %v7243_v44 = vadd.f32 %v2649_v13, %v2641_v12 }
 0x6b3   :  { %5451 = vtanh.f32 %v7243_v44  ;;  %v2852_v53 = vrot.slane %v7243_v44, 2 }
 0x6b8   :  { %v5450_v42 = vpop.eup %5449 }
 0x6b9   :  { %2630 = vrot.lane.b32.xlu0 %v5450_v42, %s5572_s22 }
 0x6c0   :  { %v5452_v7 = vpop.eup %5451 }
 0x6c1   :  { %2654 = vrot.lane.b32.xlu1 %v5452_v7, %s5572_s22 }
 0x72b   :  { %v2631_v21 = vpop.permute.xlu0 %2630 }
 0x72c   :  { %v7248_v48 = vmul.f32 %v5446_v18, %v2631_v21 }
 0x72e   :  { %2659 = vrot.lane.b32.xlu1 %v7248_v48, %s5575_s5 }
 0x733   :  { %v2655_v32 = vpop.permute.xlu1 %2654 }
 0x734   :  { %v7252_v49 = vmul.f32 %v5448_v58, %v2655_v32 }
 0x736   :  { %v2738_v30 = vrot.slane %v7252_v49, 6 }
 0x738   :  { %2739 = vrot.lane.b32.xlu0 %v2738_v30, %s5575_s5 }
 0x7a0   :  { %v2660_v35 = vpop.permute.xlu1 %2659 }
 0x7a1   :  { %5201 = vmatmul.mubr.msk.f32.vlgmr.msra.gmra.mxu1 %vm2369_vm3, %v2660_v35 }
 0x7a2   :  { %5215 = vmatpush3.msra.mxu1 %v7127_v62  ;;  %5222 = vmatprep.mubr.msk.f32.mxu1 %vm5574_vm2, %v5573_v60 }
 0x7a3   :  { %5216 = vmatprep.subr.mxu1 %v5573_v60 }
 0x7a4   :  { %5217 = vmatpush3.msra.mxu1 %v7141_v16 }
 0x7a5   :  { %5218 = vmatprep.subr.mxu1 %v5573_v60 }
 0x7a6   :  { %5219 = vmatpush3.msra.mxu1 %v7154_v57 }
 0x7a7   :  { %5220 = vmatprep.subr.mxu1 %v5573_v60 }
 0x7a8   :  { %5221 = vmatpush3.msra.mxu1 %v7160_v56 }
 0x7a9   :  { %5236 = vmatprep.subr.mxu1 %v5573_v60 }
 0x7aa   :  { %v2740_v3 = vpop.permute.xlu0 %2739 }
 0x7ab   :  { %5212 = vmatmul.mubr.msk.f32.vlgmr.msra.gmra.mxu0 %vm2369_vm3, %v2740_v3 }
 0x7ac   :  { %5226 = vmatpush3.msra.mxu0 %v7182_v6  ;;  %5233 = vmatprep.mubr.msk.f32.mxu0 %vm5574_vm2, %v5573_v60 }
 0x7ad   :  { %5227 = vmatprep.subr.mxu0 %v5573_v60 }
 0x7ae   :  { %5228 = vmatpush3.msra.mxu0 %v7188_v19 }
 0x7af   :  { %5229 = vmatprep.subr.mxu0 %v5573_v60 }
 0x7b0   :  { %5230 = vmatpush3.msra.mxu0 %v7196_v33 }
 0x7b1   :  { %5231 = vmatprep.subr.mxu0 %v5573_v60 }
 0x7b2   :  { %5232 = vmatpush3.msra.mxu0 %v7204_v4 }
 0x7b3   :  { %5247 = vmatprep.subr.mxu0 %v5573_v60 }
 0x861   :  { %v2729_v50 = vpop.f32.mrf.mxu1 }
 0x862   :  { %v2734_v63 = vrot.slane %v2729_v50, 6 }
 0x863   :  { %v5202_v23 = vpop.f32.mrf.mxu1 }
 0x864   :  { %v2736_v46 = vadd.f32 %v2734_v63, %v7226_v10 }
 0x866   :  { %5453 = vtanh.f32 %v2736_v46  ;;  %v4429_v51 = vmul.f32 -1.442695, %v2736_v46 }
 0x86b   :  { %v2809_v36 = vpop.f32.mrf.mxu0 }
 0x86c   :  { %v2814_v31 = vrot.slane %v2809_v36, 4 }
 0x86d   :  { %v5213_v14 = vpop.f32.mrf.mxu0 }
 0x86e   :  { %v2816_v11 = vadd.f32 %v2814_v31, %v7233_v22 }
 0x870   :  { %5455 = vtanh.f32 %v2816_v11  ;;  %v4430_v54 = vmul.f32 -1.442695, %v2816_v11 }
 0x871   :  { %5457 = vpow2.f32 %v4429_v51 }
 0x872   :  { %5459 = vpow2.f32 %v4430_v54 }
 0x873   :  { %v5454_v28 = vpop.eup %5453 }
 0x874   :  { %2829 = vrot.lane.b32.xlu1 %v5454_v28, %s5572_s22 }
 0x87d   :  { %v5456_v24 = vpop.eup %5455 }
 0x87e   :  { %2856 = vrot.lane.b32.xlu0 %v5456_v24, %s5572_s22  ;;  %v5458_v15 = vpop.eup %5457 }
 0x87f   :  { %v2820_v34 = vadd.f32 1.0, %v5458_v15  ;;  %v5460_v8 = vpop.eup %5459 }
 0x880   :  { %v2847_v39 = vadd.f32 1.0, %v5460_v8 }
 0x881   :  { %5461 = vrcp.f32 %v2820_v34 }
 0x882   :  { %5463 = vrcp.f32 %v2847_v39 }
 0x88e   :  { %v5462_v29 = vpop.eup %5461 }
 0x88f   :  { %v5464_v55 = vpop.eup %5463  ;;  %v2827_v5 = vmul.f32 %v5462_v29, %v2825_v43 }
 0x890   :  { %v2854_v41 = vmul.f32 %v5464_v55, %v2852_v53 }
 0x8e6   :  { %v2830_v59 = vpop.permute.xlu1 %2829 }
 0x8e7   :  { %v2832_v52 = vmul.f32 %v5462_v29, %v2830_v59 }
 0x8e9   :  { %2834 = vrot.lane.b32.xlu1 %v2832_v52, %s5575_s5 }
 0x8f0   :  { %v2857_v61 = vpop.permute.xlu0 %2856 }
 0x8f1   :  { %v2859_v26 = vmul.f32 %v5464_v55, %v2857_v61 }
 0x8f3   :  { %2861 = vrot.lane.b32.xlu0 %v2859_v26, %s5575_s5 }
 0x95b   :  { %v2835_v27 = vpop.permute.xlu1 %2834 }
 0x95c   :  { %v7285_v0 = vadd.f32 %v2835_v27, %v2827_v5 }
 0x95e   :  { %5465 = vtanh.f32 %v7285_v0  ;;  %v3044_v34 = vrot.slane %v7285_v0, 6 }
 0x965   :  { %v2862_v17 = vpop.permute.xlu0 %2861 }
 0x966   :  { %v7289_v37 = vadd.f32 %v2862_v17, %v2854_v41 }
 0x968   :  { %5467 = vtanh.f32 %v7289_v37  ;;  %v3071_v59 = vrot.slane %v7289_v37, 2 }
 0x96b   :  { %v5466_v18 = vpop.eup %5465 }
 0x96c   :  { %2840 = vrot.lane.b32.xlu1 %v5466_v18, %s5572_s22 }
 0x975   :  { %v5468_v40 = vpop.eup %5467 }
 0x976   :  { %2867 = vrot.lane.b32.xlu0 %v5468_v40, %s5572_s22 }
 0x9de   :  { %v2841_v38 = vpop.permute.xlu1 %2840 }
 0x9df   :  { %v7294_v58 = vmul.f32 %v5462_v29, %v2841_v38 }
 0x9e1   :  { %v2872_v47 = vrot.slane %v7294_v58, 2 }
 0x9e3   :  { %2879 = vrot.lane.b32.xlu1 %v2872_v47, %s5575_s5  ;;  %v2874_v0 = vmax.f32 %v7248_v48, %v2872_v47 }
 0x9e8   :  { %v2868_v2 = vpop.permute.xlu0 %2867 }
 0x9e9   :  { %v7300_v25 = vmul.f32 %v5464_v55, %v2868_v2 }
 0x9eb   :  { %v2957_v20 = vrot.slane %v7300_v25, 4  ;;  %v2876_v17 = vrot.slane %v7300_v25, 6 }
 0x9ed   :  { %2958 = vrot.lane.b32.xlu0 %v2957_v20, %s5575_s5  ;;  %v2878_v40 = vmax.f32 %v7252_v49, %v2876_v17 }
 0xa55   :  { %v2880_v45 = vpop.permute.xlu1 %2879 }
 0xa56   :  { %5223 = vmatmul.mubr.msk.f32.vlgmr.msra.gmra.mxu1 %vm2369_vm3, %v2880_v45 }
 0xa57   :  { %5237 = vmatpush3.msra.mxu1 %v7127_v62  ;;  %5244 = vmatprep.mubr.msk.f32.mxu1 %vm5574_vm2, %v5573_v60 }
 0xa58   :  { %5238 = vmatprep.subr.mxu1 %v5573_v60 }
 0xa59   :  { %5239 = vmatpush3.msra.mxu1 %v7141_v16 }
 0xa5a   :  { %5240 = vmatprep.subr.mxu1 %v5573_v60 }
 0xa5b   :  { %5241 = vmatpush3.msra.mxu1 %v7154_v57 }
 0xa5c   :  { %5242 = vmatprep.subr.mxu1 %v5573_v60 }
 0xa5d   :  { %5243 = vmatpush3.msra.mxu1 %v7160_v56 }
 0xa5e   :  { %5258 = vmatprep.subr.mxu1 %v5573_v60 }
 0xa5f   :  { %v2959_v12 = vpop.permute.xlu0 %2958 }
 0xa60   :  { %5234 = vmatmul.mubr.msk.f32.vlgmr.msra.gmra.mxu0 %vm2369_vm3, %v2959_v12 }
 0xa61   :  { %5248 = vmatpush3.msra.mxu0 %v7182_v6  ;;  %5255 = vmatprep.mubr.msk.f32.mxu0 %vm5574_vm2, %v5573_v60 }
 0xa62   :  { %5249 = vmatprep.subr.mxu0 %v5573_v60 }
 0xa63   :  { %5250 = vmatpush3.msra.mxu0 %v7188_v19 }
 0xa64   :  { %5251 = vmatprep.subr.mxu0 %v5573_v60 }
 0xa65   :  { %5252 = vmatpush3.msra.mxu0 %v7196_v33 }
 0xa66   :  { %5253 = vmatprep.subr.mxu0 %v5573_v60 }
 0xa67   :  { %5254 = vmatpush3.msra.mxu0 %v7204_v4 }
 0xa68   :  { %5269 = vmatprep.subr.mxu0 %v5573_v60 }
 0xb16   :  { %v2949_v13 = vpop.f32.mrf.mxu1 }
 0xb17   :  { %v2954_v44 = vrot.slane %v2949_v13, 4 }
 0xb18   :  { %v5224_v42 = vpop.f32.mrf.mxu1 }
 0xb19   :  { %v2956_v7 = vadd.f32 %v2954_v44, %v7226_v10 }
 0xb1b   :  { %5469 = vtanh.f32 %v2956_v7  ;;  %v4433_v63 = vmul.f32 -1.442695, %v2956_v7 }
 0xb20   :  { %v3028_v21 = vpop.f32.mrf.mxu0 }
 0xb21   :  { %v3033_v32 = vrot.slane %v3028_v21, 6 }
 0xb22   :  { %v5235_v30 = vpop.f32.mrf.mxu0 }
 0xb23   :  { %v3035_v35 = vadd.f32 %v3033_v32, %v7233_v22 }
 0xb25   :  { %5471 = vtanh.f32 %v3035_v35  ;;  %v4434_v23 = vmul.f32 -1.442695, %v3035_v35 }
 0xb26   :  { %5473 = vpow2.f32 %v4433_v63 }
 0xb27   :  { %5475 = vpow2.f32 %v4434_v23 }
 0xb28   :  { %v5470_v3 = vpop.eup %5469 }
 0xb29   :  { %3048 = vrot.lane.b32.xlu1 %v5470_v3, %s5572_s22 }
 0xb32   :  { %v5472_v50 = vpop.eup %5471 }
 0xb33   :  { %3075 = vrot.lane.b32.xlu0 %v5472_v50, %s5572_s22  ;;  %v5474_v46 = vpop.eup %5473 }
 0xb34   :  { %v3039_v36 = vadd.f32 1.0, %v5474_v46  ;;  %v5476_v31 = vpop.eup %5475 }
 0xb35   :  { %v3066_v14 = vadd.f32 1.0, %v5476_v31 }
 0xb36   :  { %5477 = vrcp.f32 %v3039_v36 }
 0xb37   :  { %5479 = vrcp.f32 %v3066_v14 }
 0xb43   :  { %v5478_v11 = vpop.eup %5477 }
 0xb44   :  { %v5480_v51 = vpop.eup %5479  ;;  %v3046_v8 = vmul.f32 %v5478_v11, %v3044_v34 }
 0xb45   :  { %v3073_v52 = vmul.f32 %v5480_v51, %v3071_v59 }
 0xb9b   :  { %v3049_v28 = vpop.permute.xlu1 %3048 }
 0xb9c   :  { %v3051_v24 = vmul.f32 %v5478_v11, %v3049_v28 }
 0xb9e   :  { %3053 = vrot.lane.b32.xlu1 %v3051_v24, %s5575_s5 }
 0xba5   :  { %v3076_v54 = vpop.permute.xlu0 %3075 }
 0xba6   :  { %v3078_v15 = vmul.f32 %v5480_v51, %v3076_v54 }
 0xba8   :  { %3080 = vrot.lane.b32.xlu0 %v3078_v15, %s5575_s5 }
 0xc10   :  { %v3054_v39 = vpop.permute.xlu1 %3053 }
 0xc11   :  { %v7333_v29 = vadd.f32 %v3054_v39, %v3046_v8 }
 0xc13   :  { %5481 = vtanh.f32 %v7333_v29  ;;  %v3260_v31 = vrot.slane %v7333_v29, 6 }
 0xc1a   :  { %v3081_v55 = vpop.permute.xlu0 %3080 }
 0xc1b   :  { %v7337_v61 = vadd.f32 %v3081_v55, %v3073_v52 }
 0xc1d   :  { %5483 = vtanh.f32 %v7337_v61  ;;  %v3287_v24 = vrot.slane %v7337_v61, 2 }
 0xc20   :  { %v5482_v26 = vpop.eup %5481 }
 0xc21   :  { %3059 = vrot.lane.b32.xlu1 %v5482_v26, %s5572_s22 }
 0xc2a   :  { %v5484_v43 = vpop.eup %5483 }
 0xc2b   :  { %3086 = vrot.lane.b32.xlu0 %v5484_v43, %s5572_s22 }
 0xc93   :  { %v3060_v5 = vpop.permute.xlu1 %3059 }
 0xc94   :  { %v3062_v27 = vmul.f32 %v5478_v11, %v3060_v5 }
 0xc96   :  { %v3091_v53 = vrot.slane %v3062_v27, 4 }
 0xc98   :  { %v7345_v41 = vmax.f32 %v2874_v0, %v3091_v53  ;;  %3098 = vrot.lane.b32.xlu1 %v3091_v53, %s5575_s5 }
 0xc9d   :  { %v3087_v37 = vpop.permute.xlu0 %3086 }
 0xc9e   :  { %v3089_v18 = vmul.f32 %v5480_v51, %v3087_v37 }
 0xca0   :  { %v3095_v38 = vrot.slane %v3089_v18, 4  ;;  %v3176_v2 = vrot.slane %v3089_v18, 2 }
 0xca2   :  { %v7350_v20 = vmax.f32 %v2878_v40, %v3095_v38  ;;  %3177 = vrot.lane.b32.xlu0 %v3176_v2, %s5575_s5 }
 0xd0a   :  { %v3099_v58 = vpop.permute.xlu1 %3098 }
 0xd0b   :  { %5245 = vmatmul.mubr.msk.f32.vlgmr.msra.gmra.mxu1 %vm2369_vm3, %v3099_v58 }
 0xd0c   :  { %5259 = vmatpush3.msra.mxu1 %v7127_v62  ;;  %5266 = vmatprep.mubr.msk.f32.mxu1 %vm5574_vm2, %v5573_v60 }
 0xd0d   :  { %5260 = vmatprep.subr.mxu1 %v5573_v60 }
 0xd0e   :  { %5261 = vmatpush3.msra.mxu1 %v7141_v16 }
 0xd0f   :  { %5262 = vmatprep.subr.mxu1 %v5573_v60 }
 0xd10   :  { %5263 = vmatpush3.msra.mxu1 %v7154_v57 }
 0xd11   :  { %5264 = vmatprep.subr.mxu1 %v5573_v60 }
 0xd12   :  { %5265 = vmatpush3.msra.mxu1 %v7160_v56 }
 0xd13   :  { %5280 = vmatprep.subr.mxu1 %v5573_v60 }
 0xd14   :  { %v3178_v48 = vpop.permute.xlu0 %3177 }
 0xd15   :  { %5256 = vmatmul.mubr.msk.f32.vlgmr.msra.gmra.mxu0 %vm2369_vm3, %v3178_v48 }
 0xd16   :  { %5270 = vmatpush3.msra.mxu0 %v7182_v6  ;;  %5277 = vmatprep.mubr.msk.f32.mxu0 %vm5574_vm2, %v5573_v60 }
 0xd17   :  { %5271 = vmatprep.subr.mxu0 %v5573_v60 }
 0xd18   :  { %5272 = vmatpush3.msra.mxu0 %v7188_v19 }
 0xd19   :  { %5273 = vmatprep.subr.mxu0 %v5573_v60 }
 0xd1a   :  { %5274 = vmatpush3.msra.mxu0 %v7196_v33 }
 0xd1b   :  { %5275 = vmatprep.subr.mxu0 %v5573_v60 }
 0xd1c   :  { %5276 = vmatpush3.msra.mxu0 %v7204_v4 }
 0xd1d   :  { %5291 = vmatprep.subr.mxu0 %v5573_v60 }
 0xdcb   :  { %v3168_v49 = vpop.f32.mrf.mxu1 }
 0xdcc   :  { %v3173_v47 = vrot.slane %v3168_v49, 2 }
 0xdcd   :  { %v5246_v25 = vpop.f32.mrf.mxu1 }
 0xdce   :  { %v3175_v45 = vadd.f32 %v3173_v47, %v7226_v10 }
 0xdd0   :  { %5485 = vtanh.f32 %v3175_v45  ;;  %v4437_v21 = vmul.f32 -1.442695, %v3175_v45 }
 0xdd5   :  { %v3247_v12 = vpop.f32.mrf.mxu0 }
 0xdd6   :  { %v3251_v13 = vadd.f32 %v3247_v12, %v7233_v22 }
 0xdd7   :  { %v5257_v44 = vpop.f32.mrf.mxu0 }
 0xdd8   :  { %5487 = vtanh.f32 %v3251_v13  ;;  %v4438_v32 = vmul.f32 -1.442695, %v3251_v13 }
 0xdd9   :  { %5489 = vpow2.f32 %v4437_v21 }
 0xdda   :  { %5491 = vpow2.f32 %v4438_v32 }
 0xddd   :  { %v5486_v42 = vpop.eup %5485 }
 0xdde   :  { %3264 = vrot.lane.b32.xlu0 %v5486_v42, %s5572_s22 }
 0xde5   :  { %v5488_v7 = vpop.eup %5487 }
 0xde6   :  { %3291 = vrot.lane.b32.xlu1 %v5488_v7, %s5572_s22  ;;  %v5490_v30 = vpop.eup %5489 }
 0xde7   :  { %v3255_v35 = vadd.f32 1.0, %v5490_v30  ;;  %v5492_v10 = vpop.eup %5491 }
 0xde8   :  { %v3282_v3 = vadd.f32 1.0, %v5492_v10 }
 0xde9   :  { %5493 = vrcp.f32 %v3255_v35 }
 0xdea   :  { %5495 = vrcp.f32 %v3282_v3 }
 0xdf6   :  { %v5494_v50 = vpop.eup %5493 }
 0xdf7   :  { %v5496_v23 = vpop.eup %5495  ;;  %v3262_v14 = vmul.f32 %v5494_v50, %v3260_v31 }
 0xdf8   :  { %v3289_v51 = vmul.f32 %v5496_v23, %v3287_v24 }
 0xe50   :  { %v3265_v22 = vpop.permute.xlu0 %3264 }
 0xe51   :  { %v3267_v63 = vmul.f32 %v5494_v50, %v3265_v22 }
 0xe53   :  { %3269 = vrot.lane.b32.xlu0 %v3267_v63, %s5575_s5 }
 0xe58   :  { %v3292_v46 = vpop.permute.xlu1 %3291 }
 0xe59   :  { %v3294_v36 = vmul.f32 %v5496_v23, %v3292_v46 }
 0xe5b   :  { %3296 = vrot.lane.b32.xlu1 %v3294_v36, %s5575_s5 }
 0xec5   :  { %v3270_v11 = vpop.permute.xlu0 %3269 }
 0xec6   :  { %v7382_v28 = vadd.f32 %v3270_v11, %v3262_v14 }
 0xec8   :  { %5497 = vtanh.f32 %v7382_v28  ;;  %v3475_v21 = vrot.slane %v7382_v28, 6 }
 0xecd   :  { %v3297_v54 = vpop.permute.xlu1 %3296 }
 0xece   :  { %v7386_v15 = vadd.f32 %v3297_v54, %v3289_v51 }
 0xed0   :  { %5499 = vtanh.f32 %v7386_v15  ;;  %v3502_v10 = vrot.slane %v7386_v15, 2 }
 0xed5   :  { %v5498_v34 = vpop.eup %5497 }
 0xed6   :  { %3275 = vrot.lane.b32.xlu0 %v5498_v34, %s5572_s22 }
 0xedd   :  { %v5500_v8 = vpop.eup %5499 }
 0xede   :  { %3302 = vrot.lane.b32.xlu1 %v5500_v8, %s5572_s22 }
 0xf48   :  { %v3276_v39 = vpop.permute.xlu0 %3275 }
 0xf49   :  { %v3278_v29 = vmul.f32 %v5494_v50, %v3276_v39 }
 0xf4b   :  { %v3307_v59 = vrot.slane %v3278_v29, 6 }
 0xf4d   :  { %v7392_v52 = vmax.f32 %v7345_v41, %v3307_v59  ;;  %3314 = vrot.lane.b32.xlu0 %v3307_v59, %s5575_s5 }
 0xf50   :  { %v3303_v55 = vpop.permute.xlu1 %3302 }
 0xf51   :  { %v3305_v61 = vmul.f32 %v5496_v23, %v3303_v55 }
 0xf53   :  { %v3311_v26 = vrot.slane %v3305_v61, 2  ;;  %3389 = vrot.lane.b32.xlu1 %v3305_v61, %s5575_s5 }
 0xf55   :  { %v7397_v43 = vmax.f32 %v7350_v20, %v3311_v26 }
 0xfbf   :  { %v3315_v5 = vpop.permute.xlu0 %3314 }
 0xfc0   :  { %5267 = vmatmul.mubr.msk.f32.vlgmr.msra.gmra.mxu1 %vm2369_vm3, %v3315_v5 }
 0xfc1   :  { %5281 = vmatpush3.msra.mxu1 %v7127_v62  ;;  %5288 = vmatprep.mubr.msk.f32.mxu1 %vm5574_vm2, %v5573_v60 }
 0xfc2   :  { %5282 = vmatprep.subr.mxu1 %v5573_v60 }
 0xfc3   :  { %5283 = vmatpush3.msra.mxu1 %v7141_v16 }
 0xfc4   :  { %5284 = vmatprep.subr.mxu1 %v5573_v60 }
 0xfc5   :  { %v3390_v27 = vpop.permute.xlu1 %3389  ;;  %5285 = vmatpush3.msra.mxu1 %v7154_v57 }
 0xfc6   :  { %5278 = vmatmul.mubr.msk.f32.vlgmr.msra.gmra.mxu0 %vm2369_vm3, %v3390_v27  ;;  %5286 = vmatprep.subr.mxu1 %v5573_v60 }
 0xfc7   :  { %5287 = vmatpush3.msra.mxu1 %v7160_v56  ;;  %5292 = vmatpush3.msra.mxu0 %v7182_v6 }
 0xfc8   :  { %5293 = vmatprep.subr.mxu0 %v5573_v60  ;;  %5299 = vmatprep.mubr.msk.f32.mxu0 %vm5574_vm2, %v5573_v60 }
 0xfc9   :  { %5294 = vmatpush3.msra.mxu0 %v7188_v19  ;;  %5302 = vmatprep.subr.mxu1 %v5573_v60 }
 0xfca   :  { %5295 = vmatprep.subr.mxu0 %v5573_v60 }
 0xfcb   :  { %5296 = vmatpush3.msra.mxu0 %v7196_v33 }
 0xfcc   :  { %5297 = vmatprep.subr.mxu0 %v5573_v60 }
 0xfcd   :  { %5298 = vmatpush3.msra.mxu0 %v7204_v4 }
 0xfce   :  { %5313 = vmatprep.subr.mxu0 %v5573_v60 }
0x1080   :  { %v3384_v0 = vpop.f32.mrf.mxu1 }
0x1081   :  { %v3388_v53 = vadd.f32 %v3384_v0, %v7231_v1 }
0x1082   :  { %v5268_v41 = vpop.f32.mrf.mxu1 }
0x1083   :  { %5501 = vtanh.f32 %v3388_v53  ;;  %v4441_v20 = vmul.f32 -1.442695, %v3388_v53 }
0x1086   :  { %v3459_v17 = vpop.f32.mrf.mxu0 }
0x1087   :  { %v3464_v37 = vrot.slane %v3459_v17, 2 }
0x1088   :  { %v5279_v18 = vpop.f32.mrf.mxu0 }
0x1089   :  { %v3466_v40 = vadd.f32 %v3464_v37, %v7228_v9 }
0x108b   :  { %5503 = vtanh.f32 %v3466_v40  ;;  %v4442_v58 = vmul.f32 -1.442695, %v3466_v40 }
0x108c   :  { %5505 = vpow2.f32 %v4441_v20 }
0x108d   :  { %5507 = vpow2.f32 %v4442_v58 }
0x1090   :  { %v5502_v38 = vpop.eup %5501 }
0x1091   :  { %3479 = vrot.lane.b32.xlu0 %v5502_v38, %s5572_s22 }
0x1098   :  { %v5504_v2 = vpop.eup %5503 }
0x1099   :  { %3506 = vrot.lane.b32.xlu1 %v5504_v2, %s5572_s22  ;;  %v5506_v48 = vpop.eup %5505 }
0x109a   :  { %v3470_v49 = vadd.f32 1.0, %v5506_v48  ;;  %v5508_v47 = vpop.eup %5507 }
0x109b   :  { %v3497_v25 = vadd.f32 1.0, %v5508_v47 }
0x109c   :  { %5509 = vrcp.f32 %v3470_v49 }
0x109d   :  { %5511 = vrcp.f32 %v3497_v25 }
0x10a9   :  { %v5510_v45 = vpop.eup %5509 }
0x10aa   :  { %v5512_v44 = vpop.eup %5511  ;;  %v3477_v32 = vmul.f32 %v5510_v45, %v3475_v21 }
0x10ab   :  { %v3504_v3 = vmul.f32 %v5512_v44, %v3502_v10 }
0x1103   :  { %v3480_v12 = vpop.permute.xlu0 %3479 }
0x1104   :  { %v3482_v13 = vmul.f32 %v5510_v45, %v3480_v12 }
0x1106   :  { %3484 = vrot.lane.b32.xlu0 %v3482_v13, %s5575_s5 }
0x110b   :  { %v3507_v42 = vpop.permute.xlu1 %3506 }
0x110c   :  { %v3509_v7 = vmul.f32 %v5512_v44, %v3507_v42 }
0x110e   :  { %3511 = vrot.lane.b32.xlu1 %v3509_v7, %s5575_s5 }
0x1178   :  { %v3485_v30 = vpop.permute.xlu0 %3484 }
0x1179   :  { %v7428_v35 = vadd.f32 %v3485_v30, %v3477_v32 }
0x117b   :  { %5513 = vtanh.f32 %v7428_v35  ;;  %v3690_v38 = vrot.slane %v7428_v35, 6 }
0x1180   :  { %v3512_v50 = vpop.permute.xlu1 %3511 }
0x1181   :  { %v7432_v22 = vadd.f32 %v3512_v50, %v3504_v3  ;;  %v5567_v50 = vld [vmem:[%s7611_s6 + $0x8] sm:$0xff] }
0x1183   :  { %5515 = vtanh.f32 %v7432_v22  ;;  %v3717_v48 = vrot.slane %v7432_v22, 2  ;;  %v5568_v22 = vld [vmem:[%s7611_s6] sm:$0xff] }
0x1188   :  { %v5514_v63 = vpop.eup %5513 }
0x1189   :  { %3490 = vrot.lane.b32.xlu0 %v5514_v63, %s5572_s22 }
0x1190   :  { %v5516_v23 = vpop.eup %5515 }
0x1191   :  { %3517 = vrot.lane.b32.xlu1 %v5516_v23, %s5572_s22 }
0x11fb   :  { %v3491_v46 = vpop.permute.xlu0 %3490 }
0x11fc   :  { %v7437_v36 = vmul.f32 %v5510_v45, %v3491_v46 }
0x11fe   :  { %v3521_v31 = vmax.f32 %v7392_v52, %v7437_v36  ;;  %3524 = vrot.lane.b32.xlu1 %v7437_v36, %s5575_s5  ;;  %v5565_v52 = vld [vmem:[%s7611_s6 + $0x18] sm:$0xff] }
0x1203   :  { %v3518_v14 = vpop.permute.xlu1 %3517 }
0x1204   :  { %v7443_v11 = vmul.f32 %v5512_v44, %v3518_v14 }
0x1206   :  { %v3522_v28 = vmax.f32 %v7397_v43, %v7443_v11  ;;  %v3603_v24 = vrot.slane %v7443_v11, 6  ;;  %v5566_v43 = vld [vmem:[%s7611_s6 + $0x10] sm:$0xff] }
0x1208   :  { %3604 = vrot.lane.b32.xlu0 %v3603_v24, %s5575_s5 }
0x1270   :  { %v3525_v51 = vpop.permute.xlu1 %3524 }
0x1271   :  { %5289 = vmatmul.mubr.msk.f32.vlgmr.msra.gmra.mxu1 %vm2369_vm3, %v3525_v51 }
0x1272   :  { %5303 = vmatpush3.msra.mxu1 %v7127_v62  ;;  %5310 = vmatprep.mubr.msk.f32.mxu1 %vm5574_vm2, %v5573_v60 }
0x1273   :  { %5304 = vmatprep.subr.mxu1 %v5573_v60 }
0x1274   :  { %5305 = vmatpush3.msra.mxu1 %v7141_v16 }
0x1275   :  { %5306 = vmatprep.subr.mxu1 %v5573_v60 }
0x1276   :  { %5307 = vmatpush3.msra.mxu1 %v7154_v57 }
0x1277   :  { %5308 = vmatprep.subr.mxu1 %v5573_v60 }
0x1278   :  { %5309 = vmatpush3.msra.mxu1 %v7160_v56 }
0x1279   :  { %5324 = vmatprep.subr.mxu1 %v5573_v60 }
0x127a   :  { %v3605_v54 = vpop.permute.xlu0 %3604 }
0x127b   :  { %5300 = vmatmul.mubr.msk.f32.vlgmr.msra.gmra.mxu0 %vm2369_vm3, %v3605_v54 }
0x127c   :  { %5314 = vmatpush3.msra.mxu0 %v7182_v6  ;;  %5321 = vmatprep.mubr.msk.f32.mxu0 %vm5574_vm2, %v5573_v60 }
0x127d   :  { %5315 = vmatprep.subr.mxu0 %v5573_v60 }
0x127e   :  { %5316 = vmatpush3.msra.mxu0 %v7188_v19 }
0x127f   :  { %5317 = vmatprep.subr.mxu0 %v5573_v60 }
0x1280   :  { %5318 = vmatpush3.msra.mxu0 %v7196_v33 }
0x1281   :  { %5319 = vmatprep.subr.mxu0 %v5573_v60 }
0x1282   :  { %5320 = vmatpush3.msra.mxu0 %v7204_v4 }
0x1283   :  { %5335 = vmatprep.subr.mxu0 %v5573_v60 }
0x1331   :  { %v3594_v62 = vpop.f32.mrf.mxu1 }
0x1332   :  { %v3599_v16 = vrot.slane %v3594_v62, 6 }
0x1333   :  { %v5290_v57 = vpop.f32.mrf.mxu1 }
0x1334   :  { %v3601_v56 = vadd.f32 %v3599_v16, %v7231_v1 }
0x1336   :  { %5517 = vtanh.f32 %v3601_v56  ;;  %v4445_v55 = vmul.f32 -1.442695, %v3601_v56 }
0x133b   :  { %v3674_v15 = vpop.f32.mrf.mxu0 }
0x133c   :  { %v3679_v34 = vrot.slane %v3674_v15, 4 }
0x133d   :  { %v5301_v8 = vpop.f32.mrf.mxu0 }
0x133e   :  { %v3681_v39 = vadd.f32 %v3679_v34, %v7228_v9 }
0x1340   :  { %5519 = vtanh.f32 %v3681_v39  ;;  %v4446_v61 = vmul.f32 -1.442695, %v3681_v39 }
0x1341   :  { %5521 = vpow2.f32 %v4445_v55 }
0x1342   :  { %5523 = vpow2.f32 %v4446_v61 }
0x1343   :  { %v5518_v29 = vpop.eup %5517 }
0x1344   :  { %3694 = vrot.lane.b32.xlu1 %v5518_v29, %s5572_s22 }
0x134d   :  { %v5520_v59 = vpop.eup %5519 }
0x134e   :  { %3721 = vrot.lane.b32.xlu0 %v5520_v59, %s5572_s22  ;;  %v5522_v26 = vpop.eup %5521 }
0x134f   :  { %v3685_v5 = vadd.f32 1.0, %v5522_v26  ;;  %v5524_v27 = vpop.eup %5523 }
0x1350   :  { %v3712_v0 = vadd.f32 1.0, %v5524_v27 }
0x1351   :  { %5525 = vrcp.f32 %v3685_v5 }
0x1352   :  { %5527 = vrcp.f32 %v3712_v0 }
0x135e   :  { %v5526_v53 = vpop.eup %5525 }
0x135f   :  { %v5528_v37 = vpop.eup %5527  ;;  %v3692_v2 = vmul.f32 %v5526_v53, %v3690_v38 }
0x1360   :  { %v3719_v49 = vmul.f32 %v5528_v37, %v3717_v48 }
0x13b6   :  { %v3695_v41 = vpop.permute.xlu1 %3694 }
0x13b7   :  { %v3697_v17 = vmul.f32 %v5526_v53, %v3695_v41 }
0x13b9   :  { %3699 = vrot.lane.b32.xlu1 %v3697_v17, %s5575_s5 }
0x13c0   :  { %v3722_v18 = vpop.permute.xlu0 %3721 }
0x13c1   :  { %v3724_v40 = vmul.f32 %v5528_v37, %v3722_v18 }
0x13c3   :  { %3726 = vrot.lane.b32.xlu0 %v3724_v40, %s5575_s5 }
0x142b   :  { %v3700_v20 = vpop.permute.xlu1 %3699 }
0x142c   :  { %v7478_v58 = vadd.f32 %v3700_v20, %v3692_v2 }
0x142e   :  { %5529 = vtanh.f32 %v7478_v58  ;;  %v3909_v29 = vrot.slane %v7478_v58, 6 }
0x1435   :  { %v3727_v47 = vpop.permute.xlu0 %3726 }
0x1436   :  { %v7482_v25 = vadd.f32 %v3727_v47, %v3719_v49 }
0x1438   :  { %5531 = vtanh.f32 %v7482_v25  ;;  %v3936_v26 = vrot.slane %v7482_v25, 2 }
0x143b   :  { %v5530_v45 = vpop.eup %5529 }
0x143c   :  { %3705 = vrot.lane.b32.xlu1 %v5530_v45, %s5572_s22 }
0x1445   :  { %v5532_v12 = vpop.eup %5531 }
0x1446   :  { %3732 = vrot.lane.b32.xlu0 %v5532_v12, %s5572_s22 }
0x14ae   :  { %v3706_v13 = vpop.permute.xlu1 %3705 }
0x14af   :  { %v3708_v44 = vmul.f32 %v5526_v53, %v3706_v13 }
0x14b1   :  { %v3737_v42 = vrot.slane %v3708_v44, 2 }
0x14b3   :  { %v7490_v7 = vmax.f32 %v3521_v31, %v3737_v42  ;;  %3744 = vrot.lane.b32.xlu1 %v3737_v42, %s5575_s5 }
0x14b8   :  { %v3733_v21 = vpop.permute.xlu0 %3732 }
0x14b9   :  { %v3735_v32 = vmul.f32 %v5528_v37, %v3733_v21 }
0x14bb   :  { %v3741_v30 = vrot.slane %v3735_v32, 6  ;;  %v3822_v35 = vrot.slane %v3735_v32, 4 }
0x14bd   :  { %v7496_v10 = vmax.f32 %v3522_v28, %v3741_v30  ;;  %3823 = vrot.lane.b32.xlu0 %v3822_v35, %s5575_s5 }
0x1525   :  { %v3745_v3 = vpop.permute.xlu1 %3744 }
0x1526   :  { %5311 = vmatmul.mubr.msk.f32.vlgmr.msra.gmra.mxu1 %vm2369_vm3, %v3745_v3 }
0x1527   :  { %5325 = vmatpush3.msra.mxu1 %v5565_v52  ;;  %5332 = vmatprep.mubr.msk.f32.mxu1 %vm5574_vm2, %v5573_v60 }
0x1528   :  { %5326 = vmatprep.subr.mxu1 %v5573_v60 }
0x1529   :  { %5327 = vmatpush3.msra.mxu1 %v5566_v43 }
0x152a   :  { %5328 = vmatprep.subr.mxu1 %v5573_v60 }
0x152b   :  { %5329 = vmatpush3.msra.mxu1 %v5567_v50 }
0x152c   :  { %5330 = vmatprep.subr.mxu1 %v5573_v60 }
0x152d   :  { %5331 = vmatpush3.msra.mxu1 %v5568_v22 }
0x152e   :  { %5346 = vmatprep.subr.mxu1 %v5573_v60 }
0x152f   :  { %v3824_v63 = vpop.permute.xlu0 %3823 }
0x1530   :  { %5322 = vmatmul.mubr.msk.f32.vlgmr.msra.gmra.mxu0 %vm2369_vm3, %v3824_v63 }
0x1531   :  { %5336 = vmatpush3.msra.mxu0 %v7182_v6  ;;  %5343 = vmatprep.mubr.msk.f32.mxu0 %vm5574_vm2, %v5573_v60 }
0x1532   :  { %5337 = vmatprep.subr.mxu0 %v5573_v60 }
0x1533   :  { %5338 = vmatpush3.msra.mxu0 %v7188_v19 }
0x1534   :  { %5339 = vmatprep.subr.mxu0 %v5573_v60 }
0x1535   :  { %5340 = vmatpush3.msra.mxu0 %v7196_v33 }
0x1536   :  { %5341 = vmatprep.subr.mxu0 %v5573_v60 }
0x1537   :  { %5342 = vmatpush3.msra.mxu0 %v7204_v4 }
0x15e6   :  { %v3814_v23 = vpop.f32.mrf.mxu1 }
0x15e7   :  { %v3819_v46 = vrot.slane %v3814_v23, 4 }
0x15e8   :  { %v5312_v36 = vpop.f32.mrf.mxu1 }
0x15e9   :  { %v3821_v6 = vadd.f32 %v3819_v46, %v7231_v1 }
0x15eb   :  { %5533 = vtanh.f32 %v3821_v6  ;;  %v4449_v24 = vmul.f32 -1.442695, %v3821_v6 }
0x15f0   :  { %v3893_v31 = vpop.f32.mrf.mxu0 }
0x15f1   :  { %v3898_v14 = vrot.slane %v3893_v31, 6 }
0x15f2   :  { %v5323_v11 = vpop.f32.mrf.mxu0 }
0x15f3   :  { %v3900_v28 = vadd.f32 %v3898_v14, %v7228_v9 }
0x15f5   :  { %5535 = vtanh.f32 %v3900_v28  ;;  %v4450_v4 = vmul.f32 -1.442695, %v3900_v28 }
0x15f6   :  { %5537 = vpow2.f32 %v4449_v24  ;;  %v4196_v24 = vld [vmem:[%s7613_s7 + $0x38] sm:$0xff] }
0x15f7   :  { %5539 = vpow2.f32 %v4450_v4  ;;  %v4195_v4 = vld [vmem:[%s7613_s7 + $0x30] sm:$0xff] }
0x15f8   :  { %v5534_v19 = vpop.eup %5533 }
0x15f9   :  { %3913 = vrot.lane.b32.xlu1 %v5534_v19, %s5572_s22 }
0x1602   :  { %v5536_v33 = vpop.eup %5535 }
0x1603   :  { %3940 = vrot.lane.b32.xlu0 %v5536_v33, %s5572_s22  ;;  %v5538_v51 = vpop.eup %5537 }
0x1604   :  { %v3904_v54 = vadd.f32 1.0, %v5538_v51  ;;  %v5540_v62 = vpop.eup %5539 }
0x1605   :  { %v3931_v16 = vadd.f32 1.0, %v5540_v62  ;;  %v4193_v62 = vld [vmem:[%s7613_s7 + $0x20] sm:$0xff] }
0x1606   :  { %5541 = vrcp.f32 %v3904_v54  ;;  %v4194_v54 = vld [vmem:[%s7613_s7 + $0x28] sm:$0xff] }
0x1607   :  { %5543 = vrcp.f32 %v3931_v16  ;;  %v4192_v16 = vld [vmem:[%s7613_s7 + $0x18] sm:$0xff] }
0x1613   :  { %v5542_v57 = vpop.eup %5541 }
0x1614   :  { %v5544_v34 = vpop.eup %5543  ;;  %v3911_v59 = vmul.f32 %v5542_v57, %v3909_v29 }
0x1615   :  { %v3938_v5 = vmul.f32 %v5544_v34, %v3936_v26 }
0x166b   :  { %v3914_v56 = vpop.permute.xlu1 %3913 }
0x166c   :  { %v3916_v15 = vmul.f32 %v5542_v57, %v3914_v56  ;;  %v4190_v56 = vld [vmem:[%s7613_s7 + $0x8] sm:$0xff] }
0x166e   :  { %3918 = vrot.lane.b32.xlu1 %v3916_v15, %s5575_s5 }
0x1675   :  { %v3941_v8 = vpop.permute.xlu0 %3940 }
0x1676   :  { %v3943_v39 = vmul.f32 %v5544_v34, %v3941_v8 }
0x1678   :  { %3945 = vrot.lane.b32.xlu0 %v3943_v39, %s5575_s5  ;;  %v4189_v39 = vld [vmem:[%s7613_s7] sm:$0xff] }
0x16e0   :  { %v3919_v55 = vpop.permute.xlu1 %3918 }
0x16e1   :  { %v3921_v61 = vadd.f32 %v3919_v55, %v3911_v59 }
0x16e3   :  { %5545 = vtanh.f32 %v3921_v61  ;;  %v4125_v46 = vrot.slane %v3921_v61, 6 }
0x16ea   :  { %v3946_v27 = vpop.permute.xlu0 %3945 }
0x16eb   :  { %v3948_v0 = vadd.f32 %v3946_v27, %v3938_v5 }
0x16ed   :  { %5547 = vtanh.f32 %v3948_v0  ;;  %v4152_v14 = vrot.slane %v3948_v0, 2 }
0x16f0   :  { %v5546_v53 = vpop.eup %5545 }
0x16f1   :  { %3924 = vrot.lane.b32.xlu1 %v5546_v53, %s5572_s22  ;;  %v16_v53 = vstv %s7614_s10 }
0x16f2   :  { %17 = vst [vmem:[#allocation3] sm:$0x1] %v16_v53 }
0x16fa   :  { %v5548_v41 = vpop.eup %5547 }
0x16fb   :  { %3951 = vrot.lane.b32.xlu0 %v5548_v41, %s5572_s22  ;;  %v4455_v41 = vld [vmem:[%s7615_s8] ss:$0 sm:$0xff] }
0x1763   :  { %v3925_v17 = vpop.permute.xlu1 %3924 }
0x1764   :  { %v3927_v37 = vmul.f32 %v5542_v57, %v3925_v17  ;;  %v4191_v57 = vld [vmem:[%s7613_s7 + $0x10] sm:$0xff] }
0x1766   :  { %v3956_v18 = vrot.slane %v3927_v37, 4 }
0x1768   :  { %v7539_v40 = vmax.f32 %v7490_v7, %v3956_v18  ;;  %3963 = vrot.lane.b32.xlu1 %v3956_v18, %s5575_s5 }
0x176d   :  { %v3952_v38 = vpop.permute.xlu0 %3951 }
0x176e   :  { %v3954_v2 = vmul.f32 %v5544_v34, %v3952_v38  ;;  %v4457_v38 = vld [vmem:[%s7616_s9] ss:$0 sm:$0xff] }
0x1770   :  { %v3960_v20 = vrot.slane %v3954_v2, 4  ;;  %v4041_v58 = vrot.slane %v3954_v2, 2 }
0x1772   :  { %v7543_v48 = vmax.f32 %v7496_v10, %v3960_v20  ;;  %4042 = vrot.lane.b32.xlu0 %v4041_v58, %s5575_s5 }
0x17da   :  { %v3964_v49 = vpop.permute.xlu1 %3963 }
0x17db   :  { %5333 = vmatmul.mubr.msk.f32.vlgmr.msra.gmra.mxu1 %vm2369_vm3, %v3964_v49 }
0x17dc   :  { %5362 = vmatprep.mubr.msk.f32.mxu1 %vm5574_vm2, %v5573_v60  ;;  %5347 = vmatpush3.msra.mxu1 %v4196_v24 }
0x17dd   :  { %5348 = vmatprep.subr.mxu1 %v5573_v60 }
0x17de   :  { %5349 = vmatpush3.msra.mxu1 %v4195_v4 }
0x17df   :  { %5350 = vmatprep.subr.mxu1 %v5573_v60 }
0x17e0   :  { %5351 = vmatpush3.msra.mxu1 %v4194_v54 }
0x17e1   :  { %5352 = vmatprep.subr.mxu1 %v5573_v60 }
0x17e2   :  { %5353 = vmatpush3.msra.mxu1 %v4193_v62 }
0x17e3   :  { %5354 = vmatprep.subr.mxu1 %v5573_v60 }
0x17e4   :  { %v4043_v47 = vpop.permute.xlu0 %4042  ;;  %5355 = vmatpush3.msra.mxu1 %v4192_v16 }
0x17e5   :  { %5344 = vmatmul.mubr.msk.f32.vlgmr.msra.gmra.mxu0 %vm2369_vm3, %v4043_v47  ;;  %5356 = vmatprep.subr.mxu1 %v5573_v60 }
0x17e6   :  { %5357 = vmatpush3.msra.mxu1 %v4191_v57 }
0x17e7   :  { %5358 = vmatprep.subr.mxu1 %v5573_v60 }
0x17e8   :  { %5359 = vmatpush3.msra.mxu1 %v4190_v56 }
0x17e9   :  { %5360 = vmatprep.subr.mxu1 %v5573_v60 }
0x17ea   :  { %5361 = vmatpush3.msra.mxu1 %v4189_v39 }
0x189b   :  { %v4033_v25 = vpop.f32.mrf.mxu1 }
0x189c   :  { %v4038_v45 = vrot.slane %v4033_v25, 2 }
0x189d   :  { %v5334_v12 = vpop.f32.mrf.mxu1 }
0x189e   :  { %v4040_v13 = vadd.f32 %v4038_v45, %v7231_v1 }
0x18a0   :  { %5549 = vtanh.f32 %v4040_v13  ;;  %v4453_v30 = vmul.f32 -1.442695, %v4040_v13 }
0x18a5   :  { %v4112_v44 = vpop.f32.mrf.mxu0 }
0x18a6   :  { %v4116_v42 = vadd.f32 %v4112_v44, %v7228_v9 }
0x18a7   :  { %v5345_v7 = vpop.f32.mrf.mxu0 }
0x18a8   :  { %5551 = vtanh.f32 %v4116_v42  ;;  %v4454_v35 = vmul.f32 -1.442695, %v4116_v42 }
0x18a9   :  { %5553 = vpow2.f32 %v4453_v30 }
0x18aa   :  { %5555 = vpow2.f32 %v4454_v35 }
0x18ad   :  { %v5550_v21 = vpop.eup %5549 }
0x18ae   :  { %4129 = vrot.lane.b32.xlu0 %v5550_v21, %s5572_s22 }
0x18b5   :  { %v5552_v32 = vpop.eup %5551 }
0x18b6   :  { %4156 = vrot.lane.b32.xlu1 %v5552_v32, %s5572_s22  ;;  %v5554_v10 = vpop.eup %5553 }
0x18b7   :  { %v4120_v3 = vadd.f32 1.0, %v5554_v10  ;;  %v5556_v1 = vpop.eup %5555 }
0x18b8   :  { %v4147_v52 = vadd.f32 1.0, %v5556_v1 }
0x18b9   :  { %5557 = vrcp.f32 %v4120_v3 }
0x18ba   :  { %5559 = vrcp.f32 %v4147_v52 }
0x18c6   :  { %v5558_v43 = vpop.eup %5557 }
0x18c7   :  { %v5560_v22 = vpop.eup %5559  ;;  %v4127_v36 = vmul.f32 %v5558_v43, %v4125_v46 }
0x18c8   :  { %v4154_v11 = vmul.f32 %v5560_v22, %v4152_v14 }
0x1920   :  { %v4130_v9 = vpop.permute.xlu0 %4129 }
0x1921   :  { %v4132_v50 = vmul.f32 %v5558_v43, %v4130_v9 }
0x1923   :  { %4134 = vrot.lane.b32.xlu0 %v4132_v50, %s5575_s5 }
0x1928   :  { %v4157_v63 = vpop.permute.xlu1 %4156 }
0x1929   :  { %v4159_v23 = vmul.f32 %v5560_v22, %v4157_v63 }
0x192b   :  { %4161 = vrot.lane.b32.xlu1 %v4159_v23, %s5575_s5 }
0x1995   :  { %v4135_v6 = vpop.permute.xlu0 %4134 }
0x1996   :  { %v4137_v31 = vadd.f32 %v4135_v6, %v4127_v36 }
0x1998   :  { %5561 = vtanh.f32 %v4137_v31 }
0x199d   :  { %v4162_v28 = vpop.permute.xlu1 %4161 }
0x199e   :  { %v4164_v19 = vadd.f32 %v4162_v28, %v4154_v11 }
0x19a0   :  { %5563 = vtanh.f32 %v4164_v19 }
0x19a5   :  { %v5562_v33 = vpop.eup %5561 }
0x19a6   :  { %4140 = vrot.lane.b32.xlu0 %v5562_v33, %s5572_s22 }
0x19ad   :  { %v5564_v51 = vpop.eup %5563 }
0x19ae   :  { %4167 = vrot.lane.b32.xlu1 %v5564_v51, %s5572_s22 }
0x1a18   :  { %v4141_v15 = vpop.permute.xlu0 %4140 }
0x1a19   :  { %v4143_v34 = vmul.f32 %v5558_v43, %v4141_v15 }
0x1a1b   :  { %v4172_v8 = vrot.slane %v4143_v34, 6 }
0x1a1d   :  { %v4174_v29 = vmax.f32 %v7539_v40, %v4172_v8 }
0x1a1f   :  { %4180 = vrot.lane.b32.xlu1 %v4174_v29, %s5575_s5 }
0x1a20   :  { %v4168_v59 = vpop.permute.xlu1 %4167 }
0x1a21   :  { %v4170_v55 = vmul.f32 %v5560_v22, %v4168_v59 }
0x1a23   :  { %v4176_v61 = vrot.slane %v4170_v55, 2 }
0x1a25   :  { %v4178_v26 = vmax.f32 %v7543_v48, %v4176_v61  ;;  %v4458_v48 = vld [vmem:[#allocation3] ss:$0 sm:$0xff] }
0x1a27   :  { %v4184_v5 = vrot.slane %v4178_v26, 6 }
0x1a29   :  { %4185 = vrot.lane.b32.xlu0 %v4184_v5, %s5572_s22 }
0x1a91   :  { %v4181_v27 = vpop.permute.xlu1 %4180 }
0x1a9b   :  { %v4186_v60 = vpop.permute.xlu0 %4185 }
0x1a9c   :  { %v4188_v0 = vsel %vm2369_vm3, %v4181_v27, %v4186_v60 }
0x1a9d   :  { %5363 = vmatmul.mubr.msk.f32.vlgmr.msra.gmra.mxu1 %vm1184_vm4, %v4188_v0 }
0x1b5d   :  { %v4273_v17 = vpop.f32.mrf.mxu1 }
0x1b5e   :  { %v4274_v37 = vadd.f32 %v4455_v41, %v4273_v17 }
0x1b5f   :  { %v5364_v18 = vpop.f32.mrf.mxu1 }
0x1b60   :  { %v4277_v40 = vmax.f32 %v4274_v37, 0.0 }
0x1b62   :  { %v4278_v2 = vadd.f32 %v4277_v40, %v4188_v0 }
0x1b64   :  { %v4286_v20 = vmul.f32 %v4457_v38, %v4278_v2 }
0x1b66   :  { %v4288_v58 = vsel %vm4287_vm5, %v4286_v20, 0.0 }
0x1b67   :  { %4289 = vadd.xlane.f32.xlu1 %v4288_v58 }
0x1bf0   :  { %v4290_v49 = vpop.xlane.xlu1 %4289 }
0x1bf1   :  { %v4298_v47 = vadd.f32 %v4458_v48, %v4290_v49 }
0x1bf3   :  { %4300 = vst.msk [vmem:[%s7617_s11] sm:$0x3] %vm4299_vm6, %v4298_v47 }

</bundles_post_ra>
